<compile_context>
chip_gen: v6e
topology: v6e:2x2x1
jax: 0.10.0
libtpu: 0.0.40
codegen_flags: <defaults>
</compile_context>

<pallas_src>
import numpy as np
import jax
import jax.numpy as jnp
from jax.experimental import pallas as pl
from jax.experimental.pallas import tpu as pltpu

_EPS = 1e-5
_NEG = -1e30
_TAPS = [(dy, dx) for dy in (-1, 0, 1) for dx in (-1, 0, 1)]   # 3x3 neighbourhood


# ------------------------------ kernel helpers --------------------------------

def _bn_relu(h, gamma, beta, ones):
    """Training-mode BatchNorm over the lane axis (batch*spatial), then ReLU. f32.

    Cross-lane sums run on the MXU (matmul against a lane-replicating ones matrix)
    instead of XLU reduce chains; results come back lane-replicated, so no broadcast
    of mean/var is needed. Variance is clamped against f32 cancellation."""
    n = h.shape[1]
    inv_n = 1.0 / n
    mean = jnp.dot(h, ones, preferred_element_type=jnp.float32) * inv_n       # [C, N]
    ex2 = jnp.dot(h * h, ones, preferred_element_type=jnp.float32) * inv_n    # [C, N]
    var = jnp.maximum(ex2 - mean * mean, 0.0)
    y = (h - mean) * jax.lax.rsqrt(var + _EPS) * gamma + beta
    return jnp.maximum(y, 0.0)


def _taps_roll(h, masks_cm, w):
    """9 shifted, zero-padded copies of h [Cm, N] via lane rolls + hoisted border masks."""
    n = h.shape[1]
    taps = []
    for t, (dy, dx) in enumerate(_TAPS):
        d = dy * w + dx
        if d == 0:
            taps.append(h)                                     # centre tap: always valid
        else:
            taps.append(pltpu.roll(h, shift=(-d) % n, axis=1) * masks_cm[t])
    return taps


def _taps_gather(h, s4_all):
    """9 shifted copies via tiny exact 0/1 gather matmuls (32-lane 4x4 maps), bf16 MXU."""
    h16 = h.astype(jnp.bfloat16)
    return [jnp.dot(h16, s4_all[t], preferred_element_type=jnp.float32) for t in range(9)]


def _residual_block(x, g1, b1, w1, g2, b2, w2cat, g3, b3, w3, make_taps, ones):
    """Pre-activation bottleneck residual block on a [C, N] activation (f32 in/out)."""
    h = _bn_relu(x, g1, b1, ones)
    h = jnp.dot(w1, h.astype(jnp.bfloat16),
                preferred_element_type=jnp.float32)            # 1x1 conv: [Cm, N]
    h = _bn_relu(h, g2, b2, ones)
    taps = make_taps(h)                                        # 9 x [Cm, N]
    a = jnp.concatenate(taps, axis=0).astype(jnp.bfloat16)     # vreg-resident im2col [9*Cm, N]
    h = jnp.dot(w2cat, a, preferred_element_type=jnp.float32)  # 3x3 conv: one K=9*Cm matmul
    h = _bn_relu(h, g3, b3, ones)
    h = jnp.dot(w3, h.astype(jnp.bfloat16),
                preferred_element_type=jnp.float32)            # 1x1 conv: [C, N]
    return h + x


def _maxpool_3x3_s2(x, mask_all, sel16, w):
    """MaxPool2d(k=3, s=2, p=1): rolled-window running max, then bf16 0/1 column select."""
    n = x.shape[1]
    best = x                                                   # centre tap, always in-bounds
    for t, (dy, dx) in enumerate(_TAPS):
        d = dy * w + dx
        if d == 0:
            continue
        v = pltpu.roll(x, shift=(-d) % n, axis=1)
        best = jnp.maximum(best, jnp.where(mask_all[t] > 0.0, v, _NEG))
    return jnp.dot(best.astype(jnp.bfloat16), sel16,
                   preferred_element_type=jnp.float32)         # [C, N_out]


# ------------------------------- fused kernel ---------------------------------

def attention_stage2_kernel(x_ref,
                            g1_ref, b1_ref, w1_ref, g2_ref, b2_ref, w2_ref,
                            g3_ref, b3_ref, w3_ref,
                            mg1_ref, mb1_ref, mw1_ref, mg2_ref, mb2_ref, mw2_ref,
                            mask8_ref, s4_ref, sel_ref, upt_ref,
                            o_ref):
    x = x_ref[...]
    c, n8 = x.shape
    cm = w1_ref.shape[1]
    n4 = sel_ref.shape[1]
    w8 = 8                                  # 8x8 maps: lane stride of one image row

    # ---- hoisted kernel-entry values (loaded / broadcast once, reused everywhere) ----
    ones8 = jnp.ones((n8, n8), jnp.float32)                    # BN lane-sum matrices
    ones4 = jnp.ones((n4, n4), jnp.float32)
    mask_all = mask8_ref[...]                                  # [9, 1, n8] f32, single load
    masks_cm = [jnp.broadcast_to(mask_all[t], (cm, n8)) for t in range(9)]
    s4_all = s4_ref[...]                                       # [9, n4, n4] bf16, single load

    taps8 = lambda h: _taps_roll(h, masks_cm, w8)
    taps4 = lambda h: _taps_gather(h, s4_all)

    def block(h, i, make_taps, ones):
        return _residual_block(h, g1_ref[i], b1_ref[i], w1_ref[i],
                               g2_ref[i], b2_ref[i], w2_ref[i],
                               g3_ref[i], b3_ref[i], w3_ref[i],
                               make_taps, ones)

    x1 = block(x, 0, taps8, ones8)                             # first_residual_blocks
    trunk = block(block(x1, 1, taps8, ones8), 2, taps8, ones8)  # trunk_branches
    pooled = _maxpool_3x3_s2(x1, mask_all, sel_ref[...], w8)    # mpool1 (8x8 -> 4x4)
    # TODO(synk): on v7x run the trunk branch and this soft-mask branch on separate
    # TensorCores (pl.core_map + CMEM exchange + core_barrier before the gating multiply).
    mid = block(block(pooled, 3, taps4, ones4), 4, taps4, ones4)  # middle_2r_blocks
    interp = jnp.dot(mid.astype(jnp.bfloat16), upt_ref[...],     # bilinear up (align_corners)
                     preferred_element_type=jnp.float32) + trunk

    # conv1_1_blocks: BN -> ReLU -> 1x1 -> BN -> ReLU -> 1x1 -> sigmoid
    h = _bn_relu(interp, mg1_ref[...], mb1_ref[...], ones8)
    h = jnp.dot(mw1_ref[...], h.astype(jnp.bfloat16), preferred_element_type=jnp.float32)
    h = _bn_relu(h, mg2_ref[...], mb2_ref[...], ones8)
    h = jnp.dot(mw2_ref[...], h.astype(jnp.bfloat16), preferred_element_type=jnp.float32)
    gate = 0.5 * (jnp.tanh(0.5 * h) + 1.0)                     # stable sigmoid on the EUP

    out = (1.0 + gate) * trunk
    o_ref[...] = block(out, 5, taps8, ones8)                   # last_blocks


# ------------------------------ pallas wrapper ---------------------------------

def attention_module_stage2(x_cn, params, consts):
    mask8, s4, sel, upt = consts
    res, mk = params['res'], params['mask']
    c, n8 = x_cn.shape
    args = (x_cn,
            res['g1'], res['b1'], res['w1'], res['g2'], res['b2'], res['w2'],
            res['g3'], res['b3'], res['w3'],
            mk['g1'], mk['b1'], mk['w1'], mk['g2'], mk['b2'], mk['w2'],
            mask8, s4, sel, upt)
    in_specs = [pl.BlockSpec(a.shape, lambda i, nd=a.ndim: (0,) * nd) for a in args]
    return pl.pallas_call(
        attention_stage2_kernel,
        out_shape=jax.ShapeDtypeStruct((c, n8), jnp.float32),
        grid=(1,),
        in_specs=in_specs,
        out_specs=pl.BlockSpec((c, n8), lambda i: (0, 0)),
        compiler_params=pltpu.CompilerParams(
            dimension_semantics=("arbitrary",),
            vmem_limit_bytes=32 * 1024 * 1024),
    )(*args)


# ---------------------- host-side constant matrices / masks --------------------

def _conv_masks(b, h, w):
    """[9, 1, b*h*w] 0/1 masks: tap t valid at flattened position (b, y, x)."""
    n = b * h * w
    m = np.zeros((9, 1, n), np.float32)
    for t, (dy, dx) in enumerate(_TAPS):
        for bb in range(b):
            for y in range(h):
                for x in range(w):
                    if 0 <= y + dy < h and 0 <= x + dx < w:
                        m[t, 0, bb * h * w + y * w + x] = 1.0
    return m


def _shift_gather(b, h, w):
    """S[t, q, p] = 1 iff q is the (dy,dx)-neighbour of p (zero if out of bounds)."""
    n = b * h * w
    s = np.zeros((9, n, n), np.float32)
    for t, (dy, dx) in enumerate(_TAPS):
        for bb in range(b):
            for y in range(h):
                for x in range(w):
                    yy, xx = y + dy, x + dx
                    if 0 <= yy < h and 0 <= xx < w:
                        s[t, bb * h * w + yy * w + xx, bb * h * w + y * w + x] = 1.0
    return s


def _pool_select(b, h, w):
    """[b*h*w, b*ho*wo] 0/1 column-select of the stride-2 window centres."""
    ho, wo = (h - 1) // 2 + 1, (w - 1) // 2 + 1
    s = np.zeros((b * h * w, b * ho * wo), np.float32)
    for bb in range(b):
        for yo in range(ho):
            for xo in range(wo):
                s[bb * h * w + 2 * yo * w + 2 * xo, bb * ho * wo + yo * wo + xo] = 1.0
    return s


def _bilinear_1d(n_in, n_out):
    """align_corners=True bilinear interpolation matrix [n_out, n_in]."""
    m = np.zeros((n_out, n_in), np.float32)
    for o in range(n_out):
        src = 0.0 if n_out == 1 else o * (n_in - 1) / (n_out - 1)
        i0 = 0 if n_in == 1 else min(int(np.floor(src)), n_in - 2)
        frac = src - i0
        m[o, i0] += 1.0 - frac
        m[o, min(i0 + 1, n_in - 1)] += frac
    return m


def _upsample_T(b, hi, wi, ho, wo):
    """Transposed (right-multiply) per-batch block-diagonal upsample matrix [b*hi*wi, b*ho*wo]."""
    k = np.kron(_bilinear_1d(hi, ho), _bilinear_1d(wi, wo))   # [ho*wo, hi*wi]
    m = np.zeros((b * hi * wi, b * ho * wo), np.float32)
    for bb in range(b):
        m[bb * hi * wi:(bb + 1) * hi * wi, bb * ho * wo:(bb + 1) * ho * wo] = k.T
    return m


# --------------------------------- parameters ----------------------------------

def _init_params(key, c):
    cm = c // 4
    k0, k1, k2, k3, k4 = jax.random.split(key, 5)
    f32 = jnp.float32

    def w(k, shape, scale=0.2):
        return (jax.random.normal(k, shape, f32) * scale).astype(jnp.bfloat16)

    # 6 residual blocks (first, trunk x2, middle x2, last), parameters stacked on axis 0.
    res = dict(
        g1=jnp.ones((6, c, 1), f32), b1=jnp.zeros((6, c, 1), f32),
        w1=w(k0, (6, cm, c)),                 # 1x1: [Cout=Cm, Cin=C]
        g2=jnp.ones((6, cm, 1), f32), b2=jnp.zeros((6, cm, 1), f32),
        w2=w(k1, (6, cm, 9 * cm)),            # 3x3 im2col: [Cout=Cm, 9*Cm] (tap-major cols)
        g3=jnp.ones((6, cm, 1), f32), b3=jnp.zeros((6, cm, 1), f32),
        w3=w(k2, (6, c, cm)),                 # 1x1: [Cout=C, Cin=Cm]
    )
    mask = dict(                              # conv1_1_blocks (mask head)
        g1=jnp.ones((c, 1), f32), b1=jnp.zeros((c, 1), f32),
        w1=w(k3, (c, c)),
        g2=jnp.ones((c, 1), f32), b2=jnp.zeros((c, 1), f32),
        w2=w(k4, (c, c)),
    )
    return dict(res=res, mask=mask)


# ------------------------------------ main --------------------------------------

if __name__ == "__main__":
    # size=(8,8) in the module fixes the spatial size; C must be divisible by 4.
    B, C, H, W = 2, 16, 8, 8
    key = jax.random.PRNGKey(0)
    kx, kp = jax.random.split(key)
    x_nchw = jax.random.normal(kx, (B, C, H, W), jnp.float32)   # PyTorch NCHW input
    params = _init_params(kp, C)

    Hp, Wp = (H - 1) // 2 + 1, (W - 1) // 2 + 1                 # 4 x 4 after maxpool
    mask8 = jnp.asarray(_conv_masks(B, H, W), dtype=jnp.float32)      # [9, 1, 128]
    s4 = jnp.asarray(_shift_gather(B, Hp, Wp), dtype=jnp.bfloat16)    # [9, 32, 32] exact 0/1
    sel = jnp.asarray(_pool_select(B, H, W), dtype=jnp.bfloat16)      # [128, 32]  exact 0/1
    upt = jnp.asarray(_upsample_T(B, Hp, Wp, H, W), dtype=jnp.bfloat16)  # [32, 128]

    # NCHW -> lane-dense [C, B*H*W]: channels on sublanes, batch*spatial on 128 lanes.
    x_flat = jnp.transpose(x_nchw, (1, 0, 2, 3)).reshape(C, B * H * W)

    out_flat = attention_module_stage2(x_flat, params, (mask8, s4, sel, upt))
    out_nchw = out_flat.reshape(C, B, H, W).transpose(1, 0, 2, 3)
    jax.block_until_ready(out_nchw)
    assert out_nchw.shape == (B, C, H, W)
    print("KERNEL_OK")
</pallas_src>

<mosaic_0001>
module attributes {stable_mosaic.version = 11 : i64} {
  func.func @attention_stage2_kernel(%arg0: i32, %arg1: memref<16x128xf32, #tpu.memory_space<vmem>>, %arg2: memref<6x16x1xf32, #tpu.memory_space<vmem>>, %arg3: memref<6x16x1xf32, #tpu.memory_space<vmem>>, %arg4: memref<6x4x16xbf16, #tpu.memory_space<vmem>>, %arg5: memref<6x4x1xf32, #tpu.memory_space<vmem>>, %arg6: memref<6x4x1xf32, #tpu.memory_space<vmem>>, %arg7: memref<6x4x36xbf16, #tpu.memory_space<vmem>>, %arg8: memref<6x4x1xf32, #tpu.memory_space<vmem>>, %arg9: memref<6x4x1xf32, #tpu.memory_space<vmem>>, %arg10: memref<6x16x4xbf16, #tpu.memory_space<vmem>>, %arg11: memref<16x1xf32, #tpu.memory_space<vmem>>, %arg12: memref<16x1xf32, #tpu.memory_space<vmem>>, %arg13: memref<16x16xbf16, #tpu.memory_space<vmem>>, %arg14: memref<16x1xf32, #tpu.memory_space<vmem>>, %arg15: memref<16x1xf32, #tpu.memory_space<vmem>>, %arg16: memref<16x16xbf16, #tpu.memory_space<vmem>>, %arg17: memref<9x1x128xf32, #tpu.memory_space<vmem>>, %arg18: memref<9x32x32xbf16, #tpu.memory_space<vmem>>, %arg19: memref<128x32xbf16, #tpu.memory_space<vmem>>, %arg20: memref<32x128xbf16, #tpu.memory_space<vmem>>, %arg21: memref<16x128xf32, #tpu.memory_space<vmem>>) attributes {dimension_semantics = [#tpu.dimension_semantics<arbitrary>], iteration_bounds = array<i64: 1>, scalar_prefetch = 0 : i64, scratch_operands = 0 : i64, tpu.core_type = #tpu.core_type<tc>, window_params = [{pipeline_mode = #tpu.pipeline_mode<synchronous>, transform_indices = @transform_0, window_bounds = array<i64: 16, 128>}, {pipeline_mode = #tpu.pipeline_mode<synchronous>, transform_indices = @transform_1, window_bounds = array<i64: 6, 16, 1>}, {pipeline_mode = #tpu.pipeline_mode<synchronous>, transform_indices = @transform_2, window_bounds = array<i64: 6, 16, 1>}, {pipeline_mode = #tpu.pipeline_mode<synchronous>, transform_indices = @transform_3, window_bounds = array<i64: 6, 4, 16>}, {pipeline_mode = #tpu.pipeline_mode<synchronous>, transform_indices = @transform_4, window_bounds = array<i64: 6, 4, 1>}, {pipeline_mode = #tpu.pipeline_mode<synchronous>, transform_indices = @transform_5, window_bounds = array<i64: 6, 4, 1>}, {pipeline_mode = #tpu.pipeline_mode<synchronous>, transform_indices = @transform_6, window_bounds = array<i64: 6, 4, 36>}, {pipeline_mode = #tpu.pipeline_mode<synchronous>, transform_indices = @transform_7, window_bounds = array<i64: 6, 4, 1>}, {pipeline_mode = #tpu.pipeline_mode<synchronous>, transform_indices = @transform_8, window_bounds = array<i64: 6, 4, 1>}, {pipeline_mode = #tpu.pipeline_mode<synchronous>, transform_indices = @transform_9, window_bounds = array<i64: 6, 16, 4>}, {pipeline_mode = #tpu.pipeline_mode<synchronous>, transform_indices = @transform_10, window_bounds = array<i64: 16, 1>}, {pipeline_mode = #tpu.pipeline_mode<synchronous>, transform_indices = @transform_11, window_bounds = array<i64: 16, 1>}, {pipeline_mode = #tpu.pipeline_mode<synchronous>, transform_indices = @transform_12, window_bounds = array<i64: 16, 16>}, {pipeline_mode = #tpu.pipeline_mode<synchronous>, transform_indices = @transform_13, window_bounds = array<i64: 16, 1>}, {pipeline_mode = #tpu.pipeline_mode<synchronous>, transform_indices = @transform_14, window_bounds = array<i64: 16, 1>}, {pipeline_mode = #tpu.pipeline_mode<synchronous>, transform_indices = @transform_15, window_bounds = array<i64: 16, 16>}, {pipeline_mode = #tpu.pipeline_mode<synchronous>, transform_indices = @transform_16, window_bounds = array<i64: 9, 1, 128>}, {pipeline_mode = #tpu.pipeline_mode<synchronous>, transform_indices = @transform_17, window_bounds = array<i64: 9, 32, 32>}, {pipeline_mode = #tpu.pipeline_mode<synchronous>, transform_indices = @transform_18, window_bounds = array<i64: 128, 32>}, {pipeline_mode = #tpu.pipeline_mode<synchronous>, transform_indices = @transform_19, window_bounds = array<i64: 32, 128>}, {pipeline_mode = #tpu.pipeline_mode<synchronous>, transform_indices = @transform_20, window_bounds = array<i64: 16, 128>}]} {
    %c0 = arith.constant 0 : index
    %c0_0 = arith.constant 0 : index
    %0 = vector.load %arg1[%c0, %c0_0] : memref<16x128xf32, #tpu.memory_space<vmem>>, vector<16x128xf32>
    %cst = arith.constant 1.000000e+00 : f32
    %1 = vector.broadcast %cst : f32 to vector<128x128xf32>
    %cst_1 = arith.constant 1.000000e+00 : f32
    %2 = vector.broadcast %cst_1 : f32 to vector<32x32xf32>
    %c0_2 = arith.constant 0 : index
    %c0_3 = arith.constant 0 : index
    %c0_4 = arith.constant 0 : index
    %3 = vector.load %arg17[%c0_2, %c0_3, %c0_4] : memref<9x1x128xf32, #tpu.memory_space<vmem>>, vector<9x1x128xf32>
    %4 = vector.extract_strided_slice %3 {offsets = [0, 0, 0], sizes = [1, 1, 128], strides = [1, 1, 1]} : vector<9x1x128xf32> to vector<1x1x128xf32>
    %5 = vector.shape_cast %4 : vector<1x1x128xf32> to vector<1x128xf32>
    %6 = vector.shape_cast %5 : vector<1x128xf32> to vector<1x128xf32>
    %7 = vector.broadcast %6 : vector<1x128xf32> to vector<4x128xf32>
    %8 = vector.extract_strided_slice %3 {offsets = [1, 0, 0], sizes = [1, 1, 128], strides = [1, 1, 1]} : vector<9x1x128xf32> to vector<1x1x128xf32>
    %9 = vector.shape_cast %8 : vector<1x1x128xf32> to vector<1x128xf32>
    %10 = vector.shape_cast %9 : vector<1x128xf32> to vector<1x128xf32>
    %11 = vector.broadcast %10 : vector<1x128xf32> to vector<4x128xf32>
    %12 = vector.extract_strided_slice %3 {offsets = [2, 0, 0], sizes = [1, 1, 128], strides = [1, 1, 1]} : vector<9x1x128xf32> to vector<1x1x128xf32>
    %13 = vector.shape_cast %12 : vector<1x1x128xf32> to vector<1x128xf32>
    %14 = vector.shape_cast %13 : vector<1x128xf32> to vector<1x128xf32>
    %15 = vector.broadcast %14 : vector<1x128xf32> to vector<4x128xf32>
    %16 = vector.extract_strided_slice %3 {offsets = [3, 0, 0], sizes = [1, 1, 128], strides = [1, 1, 1]} : vector<9x1x128xf32> to vector<1x1x128xf32>
    %17 = vector.shape_cast %16 : vector<1x1x128xf32> to vector<1x128xf32>
    %18 = vector.shape_cast %17 : vector<1x128xf32> to vector<1x128xf32>
    %19 = vector.broadcast %18 : vector<1x128xf32> to vector<4x128xf32>
    %20 = vector.extract_strided_slice %3 {offsets = [5, 0, 0], sizes = [1, 1, 128], strides = [1, 1, 1]} : vector<9x1x128xf32> to vector<1x1x128xf32>
    %21 = vector.shape_cast %20 : vector<1x1x128xf32> to vector<1x128xf32>
    %22 = vector.shape_cast %21 : vector<1x128xf32> to vector<1x128xf32>
    %23 = vector.broadcast %22 : vector<1x128xf32> to vector<4x128xf32>
    %24 = vector.extract_strided_slice %3 {offsets = [6, 0, 0], sizes = [1, 1, 128], strides = [1, 1, 1]} : vector<9x1x128xf32> to vector<1x1x128xf32>
    %25 = vector.shape_cast %24 : vector<1x1x128xf32> to vector<1x128xf32>
    %26 = vector.shape_cast %25 : vector<1x128xf32> to vector<1x128xf32>
    %27 = vector.broadcast %26 : vector<1x128xf32> to vector<4x128xf32>
    %28 = vector.extract_strided_slice %3 {offsets = [7, 0, 0], sizes = [1, 1, 128], strides = [1, 1, 1]} : vector<9x1x128xf32> to vector<1x1x128xf32>
    %29 = vector.shape_cast %28 : vector<1x1x128xf32> to vector<1x128xf32>
    %30 = vector.shape_cast %29 : vector<1x128xf32> to vector<1x128xf32>
    %31 = vector.broadcast %30 : vector<1x128xf32> to vector<4x128xf32>
    %32 = vector.extract_strided_slice %3 {offsets = [8, 0, 0], sizes = [1, 1, 128], strides = [1, 1, 1]} : vector<9x1x128xf32> to vector<1x1x128xf32>
    %33 = vector.shape_cast %32 : vector<1x1x128xf32> to vector<1x128xf32>
    %34 = vector.shape_cast %33 : vector<1x128xf32> to vector<1x128xf32>
    %35 = vector.broadcast %34 : vector<1x128xf32> to vector<4x128xf32>
    %c0_5 = arith.constant 0 : index
    %c0_6 = arith.constant 0 : index
    %c0_7 = arith.constant 0 : index
    %36 = vector.load %arg18[%c0_5, %c0_6, %c0_7] : memref<9x32x32xbf16, #tpu.memory_space<vmem>>, vector<9x32x32xbf16>
    %c0_8 = arith.constant 0 : index
    %c0_9 = arith.constant 0 : index
    %c0_10 = arith.constant 0 : index
    %37 = vector.load %arg2[%c0_8, %c0_9, %c0_10] : memref<6x16x1xf32, #tpu.memory_space<vmem>>, vector<1x16x1xf32>
    %38 = vector.shape_cast %37 : vector<1x16x1xf32> to vector<16x1xf32>
    %c0_11 = arith.constant 0 : index
    %c0_12 = arith.constant 0 : index
    %c0_13 = arith.constant 0 : index
    %39 = vector.load %arg3[%c0_11, %c0_12, %c0_13] : memref<6x16x1xf32, #tpu.memory_space<vmem>>, vector<1x16x1xf32>
    %40 = vector.shape_cast %39 : vector<1x16x1xf32> to vector<16x1xf32>
    %c0_14 = arith.constant 0 : index
    %c0_15 = arith.constant 0 : index
    %c0_16 = arith.constant 0 : index
    %41 = vector.load %arg4[%c0_14, %c0_15, %c0_16] : memref<6x4x16xbf16, #tpu.memory_space<vmem>>, vector<1x4x16xbf16>
    %42 = vector.shape_cast %41 : vector<1x4x16xbf16> to vector<4x16xbf16>
    %c0_17 = arith.constant 0 : index
    %c0_18 = arith.constant 0 : index
    %c0_19 = arith.constant 0 : index
    %43 = vector.load %arg5[%c0_17, %c0_18, %c0_19] : memref<6x4x1xf32, #tpu.memory_space<vmem>>, vector<1x4x1xf32>
    %44 = vector.shape_cast %43 : vector<1x4x1xf32> to vector<4x1xf32>
    %c0_20 = arith.constant 0 : index
    %c0_21 = arith.constant 0 : index
    %c0_22 = arith.constant 0 : index
    %45 = vector.load %arg6[%c0_20, %c0_21, %c0_22] : memref<6x4x1xf32, #tpu.memory_space<vmem>>, vector<1x4x1xf32>
    %46 = vector.shape_cast %45 : vector<1x4x1xf32> to vector<4x1xf32>
    %c0_23 = arith.constant 0 : index
    %c0_24 = arith.constant 0 : index
    %c0_25 = arith.constant 0 : index
    %47 = vector.load %arg7[%c0_23, %c0_24, %c0_25] : memref<6x4x36xbf16, #tpu.memory_space<vmem>>, vector<1x4x36xbf16>
    %48 = vector.shape_cast %47 : vector<1x4x36xbf16> to vector<4x36xbf16>
    %c0_26 = arith.constant 0 : index
    %c0_27 = arith.constant 0 : index
    %c0_28 = arith.constant 0 : index
    %49 = vector.load %arg8[%c0_26, %c0_27, %c0_28] : memref<6x4x1xf32, #tpu.memory_space<vmem>>, vector<1x4x1xf32>
    %50 = vector.shape_cast %49 : vector<1x4x1xf32> to vector<4x1xf32>
    %c0_29 = arith.constant 0 : index
    %c0_30 = arith.constant 0 : index
    %c0_31 = arith.constant 0 : index
    %51 = vector.load %arg9[%c0_29, %c0_30, %c0_31] : memref<6x4x1xf32, #tpu.memory_space<vmem>>, vector<1x4x1xf32>
    %52 = vector.shape_cast %51 : vector<1x4x1xf32> to vector<4x1xf32>
    %c0_32 = arith.constant 0 : index
    %c0_33 = arith.constant 0 : index
    %c0_34 = arith.constant 0 : index
    %53 = vector.load %arg10[%c0_32, %c0_33, %c0_34] : memref<6x16x4xbf16, #tpu.memory_space<vmem>>, vector<1x16x4xbf16>
    %54 = vector.shape_cast %53 : vector<1x16x4xbf16> to vector<16x4xbf16>
    %cst_35 = arith.constant dense<0.000000e+00> : vector<16x128xf32>
    %55 = tpu.matmul %0, %1, %cst_35 {dimension_numbers = #tpu.dot_dimension_numbers<[1], [0], [0], [1], [0, 0, 1, 1], [], []>} : vector<16x128xf32>, vector<128x128xf32>, vector<16x128xf32> -> vector<16x128xf32>
    %cst_36 = arith.constant 7.812500e-03 : f32
    %56 = vector.broadcast %cst_36 : f32 to vector<16x128xf32>
    %57 = arith.mulf %55, %56 : vector<16x128xf32>
    %58 = arith.mulf %0, %0 : vector<16x128xf32>
    %cst_37 = arith.constant dense<0.000000e+00> : vector<16x128xf32>
    %59 = tpu.matmul %58, %1, %cst_37 {dimension_numbers = #tpu.dot_dimension_numbers<[1], [0], [0], [1], [0, 0, 1, 1], [], []>} : vector<16x128xf32>, vector<128x128xf32>, vector<16x128xf32> -> vector<16x128xf32>
    %cst_38 = arith.constant 7.812500e-03 : f32
    %60 = vector.broadcast %cst_38 : f32 to vector<16x128xf32>
    %61 = arith.mulf %59, %60 : vector<16x128xf32>
    %62 = arith.mulf %57, %57 : vector<16x128xf32>
    %63 = arith.subf %61, %62 : vector<16x128xf32>
    %cst_39 = arith.constant 0.000000e+00 : f32
    %64 = vector.broadcast %cst_39 : f32 to vector<16x128xf32>
    %65 = arith.maximumf %63, %64 : vector<16x128xf32>
    %66 = arith.subf %0, %57 : vector<16x128xf32>
    %cst_40 = arith.constant 9.99999974E-6 : f32
    %67 = vector.broadcast %cst_40 : f32 to vector<16x128xf32>
    %68 = arith.addf %65, %67 : vector<16x128xf32>
    %69 = math.rsqrt %68 : vector<16x128xf32>
    %70 = arith.mulf %66, %69 : vector<16x128xf32>
    %71 = vector.broadcast %38 : vector<16x1xf32> to vector<16x128xf32>
    %72 = arith.mulf %70, %71 : vector<16x128xf32>
    %73 = vector.broadcast %40 : vector<16x1xf32> to vector<16x128xf32>
    %74 = arith.addf %72, %73 : vector<16x128xf32>
    %cst_41 = arith.constant 0.000000e+00 : f32
    %75 = vector.broadcast %cst_41 : f32 to vector<16x128xf32>
    %76 = arith.maximumf %74, %75 : vector<16x128xf32>
    %77 = arith.truncf %76 : vector<16x128xf32> to vector<16x128xbf16>
    %cst_42 = arith.constant dense<0.000000e+00> : vector<4x128xf32>
    %78 = tpu.matmul %42, %77, %cst_42 {dimension_numbers = #tpu.dot_dimension_numbers<[1], [0], [0], [1], [0, 0, 1, 1], [], []>} : vector<4x16xbf16>, vector<16x128xbf16>, vector<4x128xf32> -> vector<4x128xf32>
    %cst_43 = arith.constant dense<0.000000e+00> : vector<4x128xf32>
    %79 = tpu.matmul %78, %1, %cst_43 {dimension_numbers = #tpu.dot_dimension_numbers<[1], [0], [0], [1], [0, 0, 1, 1], [], []>} : vector<4x128xf32>, vector<128x128xf32>, vector<4x128xf32> -> vector<4x128xf32>
    %cst_44 = arith.constant 7.812500e-03 : f32
    %80 = vector.broadcast %cst_44 : f32 to vector<4x128xf32>
    %81 = arith.mulf %79, %80 : vector<4x128xf32>
    %82 = arith.mulf %78, %78 : vector<4x128xf32>
    %cst_45 = arith.constant dense<0.000000e+00> : vector<4x128xf32>
    %83 = tpu.matmul %82, %1, %cst_45 {dimension_numbers = #tpu.dot_dimension_numbers<[1], [0], [0], [1], [0, 0, 1, 1], [], []>} : vector<4x128xf32>, vector<128x128xf32>, vector<4x128xf32> -> vector<4x128xf32>
    %cst_46 = arith.constant 7.812500e-03 : f32
    %84 = vector.broadcast %cst_46 : f32 to vector<4x128xf32>
    %85 = arith.mulf %83, %84 : vector<4x128xf32>
    %86 = arith.mulf %81, %81 : vector<4x128xf32>
    %87 = arith.subf %85, %86 : vector<4x128xf32>
    %cst_47 = arith.constant 0.000000e+00 : f32
    %88 = vector.broadcast %cst_47 : f32 to vector<4x128xf32>
    %89 = arith.maximumf %87, %88 : vector<4x128xf32>
    %90 = arith.subf %78, %81 : vector<4x128xf32>
    %cst_48 = arith.constant 9.99999974E-6 : f32
    %91 = vector.broadcast %cst_48 : f32 to vector<4x128xf32>
    %92 = arith.addf %89, %91 : vector<4x128xf32>
    %93 = math.rsqrt %92 : vector<4x128xf32>
    %94 = arith.mulf %90, %93 : vector<4x128xf32>
    %95 = vector.broadcast %44 : vector<4x1xf32> to vector<4x128xf32>
    %96 = arith.mulf %94, %95 : vector<4x128xf32>
    %97 = vector.broadcast %46 : vector<4x1xf32> to vector<4x128xf32>
    %98 = arith.addf %96, %97 : vector<4x128xf32>
    %cst_49 = arith.constant 0.000000e+00 : f32
    %99 = vector.broadcast %cst_49 : f32 to vector<4x128xf32>
    %100 = arith.maximumf %98, %99 : vector<4x128xf32>
    %c9_i32 = arith.constant 9 : i32
    %101 = tpu.dynamic_rotate %100 by %c9_i32 dim 1 : vector<4x128xf32>, i32 -> vector<4x128xf32>
    %102 = arith.mulf %101, %7 : vector<4x128xf32>
    %c8_i32 = arith.constant 8 : i32
    %103 = tpu.dynamic_rotate %100 by %c8_i32 dim 1 : vector<4x128xf32>, i32 -> vector<4x128xf32>
    %104 = arith.mulf %103, %11 : vector<4x128xf32>
    %c7_i32 = arith.constant 7 : i32
    %105 = tpu.dynamic_rotate %100 by %c7_i32 dim 1 : vector<4x128xf32>, i32 -> vector<4x128xf32>
    %106 = arith.mulf %105, %15 : vector<4x128xf32>
    %c1_i32 = arith.constant 1 : i32
    %107 = tpu.dynamic_rotate %100 by %c1_i32 dim 1 : vector<4x128xf32>, i32 -> vector<4x128xf32>
    %108 = arith.mulf %107, %19 : vector<4x128xf32>
    %c127_i32 = arith.constant 127 : i32
    %109 = tpu.dynamic_rotate %100 by %c127_i32 dim 1 : vector<4x128xf32>, i32 -> vector<4x128xf32>
    %110 = arith.mulf %109, %23 : vector<4x128xf32>
    %c121_i32 = arith.constant 121 : i32
    %111 = tpu.dynamic_rotate %100 by %c121_i32 dim 1 : vector<4x128xf32>, i32 -> vector<4x128xf32>
    %112 = arith.mulf %111, %27 : vector<4x128xf32>
    %c120_i32 = arith.constant 120 : i32
    %113 = tpu.dynamic_rotate %100 by %c120_i32 dim 1 : vector<4x128xf32>, i32 -> vector<4x128xf32>
    %114 = arith.mulf %113, %31 : vector<4x128xf32>
    %c119_i32 = arith.constant 119 : i32
    %115 = tpu.dynamic_rotate %100 by %c119_i32 dim 1 : vector<4x128xf32>, i32 -> vector<4x128xf32>
    %116 = arith.mulf %115, %35 : vector<4x128xf32>
    %117 = tpu.concatenate %102, %104, %106, %108, %100, %110, %112, %114, %116 in 0 : vector<4x128xf32>, vector<4x128xf32>, vector<4x128xf32>, vector<4x128xf32>, vector<4x128xf32>, vector<4x128xf32>, vector<4x128xf32>, vector<4x128xf32>, vector<4x128xf32> -> vector<36x128xf32>
    %118 = arith.truncf %117 : vector<36x128xf32> to vector<36x128xbf16>
    %cst_50 = arith.constant dense<0.000000e+00> : vector<4x128xf32>
    %119 = tpu.matmul %48, %118, %cst_50 {dimension_numbers = #tpu.dot_dimension_numbers<[1], [0], [0], [1], [0, 0, 1, 1], [], []>} : vector<4x36xbf16>, vector<36x128xbf16>, vector<4x128xf32> -> vector<4x128xf32>
    %cst_51 = arith.constant dense<0.000000e+00> : vector<4x128xf32>
    %120 = tpu.matmul %119, %1, %cst_51 {dimension_numbers = #tpu.dot_dimension_numbers<[1], [0], [0], [1], [0, 0, 1, 1], [], []>} : vector<4x128xf32>, vector<128x128xf32>, vector<4x128xf32> -> vector<4x128xf32>
    %cst_52 = arith.constant 7.812500e-03 : f32
    %121 = vector.broadcast %cst_52 : f32 to vector<4x128xf32>
    %122 = arith.mulf %120, %121 : vector<4x128xf32>
    %123 = arith.mulf %119, %119 : vector<4x128xf32>
    %cst_53 = arith.constant dense<0.000000e+00> : vector<4x128xf32>
    %124 = tpu.matmul %123, %1, %cst_53 {dimension_numbers = #tpu.dot_dimension_numbers<[1], [0], [0], [1], [0, 0, 1, 1], [], []>} : vector<4x128xf32>, vector<128x128xf32>, vector<4x128xf32> -> vector<4x128xf32>
    %cst_54 = arith.constant 7.812500e-03 : f32
    %125 = vector.broadcast %cst_54 : f32 to vector<4x128xf32>
    %126 = arith.mulf %124, %125 : vector<4x128xf32>
    %127 = arith.mulf %122, %122 : vector<4x128xf32>
    %128 = arith.subf %126, %127 : vector<4x128xf32>
    %cst_55 = arith.constant 0.000000e+00 : f32
    %129 = vector.broadcast %cst_55 : f32 to vector<4x128xf32>
    %130 = arith.maximumf %128, %129 : vector<4x128xf32>
    %131 = arith.subf %119, %122 : vector<4x128xf32>
    %cst_56 = arith.constant 9.99999974E-6 : f32
    %132 = vector.broadcast %cst_56 : f32 to vector<4x128xf32>
    %133 = arith.addf %130, %132 : vector<4x128xf32>
    %134 = math.rsqrt %133 : vector<4x128xf32>
    %135 = arith.mulf %131, %134 : vector<4x128xf32>
    %136 = vector.broadcast %50 : vector<4x1xf32> to vector<4x128xf32>
    %137 = arith.mulf %135, %136 : vector<4x128xf32>
    %138 = vector.broadcast %52 : vector<4x1xf32> to vector<4x128xf32>
    %139 = arith.addf %137, %138 : vector<4x128xf32>
    %cst_57 = arith.constant 0.000000e+00 : f32
    %140 = vector.broadcast %cst_57 : f32 to vector<4x128xf32>
    %141 = arith.maximumf %139, %140 : vector<4x128xf32>
    %142 = arith.truncf %141 : vector<4x128xf32> to vector<4x128xbf16>
    %cst_58 = arith.constant dense<0.000000e+00> : vector<16x128xf32>
    %143 = tpu.matmul %54, %142, %cst_58 {dimension_numbers = #tpu.dot_dimension_numbers<[1], [0], [0], [1], [0, 0, 1, 1], [], []>} : vector<16x4xbf16>, vector<4x128xbf16>, vector<16x128xf32> -> vector<16x128xf32>
    %144 = arith.addf %143, %0 : vector<16x128xf32>
    %c1 = arith.constant 1 : index
    %c0_59 = arith.constant 0 : index
    %c0_60 = arith.constant 0 : index
    %145 = vector.load %arg2[%c1, %c0_59, %c0_60] : memref<6x16x1xf32, #tpu.memory_space<vmem>>, vector<1x16x1xf32>
    %146 = vector.shape_cast %145 : vector<1x16x1xf32> to vector<16x1xf32>
    %c1_61 = arith.constant 1 : index
    %c0_62 = arith.constant 0 : index
    %c0_63 = arith.constant 0 : index
    %147 = vector.load %arg3[%c1_61, %c0_62, %c0_63] : memref<6x16x1xf32, #tpu.memory_space<vmem>>, vector<1x16x1xf32>
    %148 = vector.shape_cast %147 : vector<1x16x1xf32> to vector<16x1xf32>
    %c1_64 = arith.constant 1 : index
    %c0_65 = arith.constant 0 : index
    %c0_66 = arith.constant 0 : index
    %149 = vector.load %arg4[%c1_64, %c0_65, %c0_66] : memref<6x4x16xbf16, #tpu.memory_space<vmem>>, vector<1x4x16xbf16>
    %150 = vector.shape_cast %149 : vector<1x4x16xbf16> to vector<4x16xbf16>
    %c1_67 = arith.constant 1 : index
    %c0_68 = arith.constant 0 : index
    %c0_69 = arith.constant 0 : index
    %151 = vector.load %arg5[%c1_67, %c0_68, %c0_69] : memref<6x4x1xf32, #tpu.memory_space<vmem>>, vector<1x4x1xf32>
    %152 = vector.shape_cast %151 : vector<1x4x1xf32> to vector<4x1xf32>
    %c1_70 = arith.constant 1 : index
    %c0_71 = arith.constant 0 : index
    %c0_72 = arith.constant 0 : index
    %153 = vector.load %arg6[%c1_70, %c0_71, %c0_72] : memref<6x4x1xf32, #tpu.memory_space<vmem>>, vector<1x4x1xf32>
    %154 = vector.shape_cast %153 : vector<1x4x1xf32> to vector<4x1xf32>
    %c1_73 = arith.constant 1 : index
    %c0_74 = arith.constant 0 : index
    %c0_75 = arith.constant 0 : index
    %155 = vector.load %arg7[%c1_73, %c0_74, %c0_75] : memref<6x4x36xbf16, #tpu.memory_space<vmem>>, vector<1x4x36xbf16>
    %156 = vector.shape_cast %155 : vector<1x4x36xbf16> to vector<4x36xbf16>
    %c1_76 = arith.constant 1 : index
    %c0_77 = arith.constant 0 : index
    %c0_78 = arith.constant 0 : index
    %157 = vector.load %arg8[%c1_76, %c0_77, %c0_78] : memref<6x4x1xf32, #tpu.memory_space<vmem>>, vector<1x4x1xf32>
    %158 = vector.shape_cast %157 : vector<1x4x1xf32> to vector<4x1xf32>
    %c1_79 = arith.constant 1 : index
    %c0_80 = arith.constant 0 : index
    %c0_81 = arith.constant 0 : index
    %159 = vector.load %arg9[%c1_79, %c0_80, %c0_81] : memref<6x4x1xf32, #tpu.memory_space<vmem>>, vector<1x4x1xf32>
    %160 = vector.shape_cast %159 : vector<1x4x1xf32> to vector<4x1xf32>
    %c1_82 = arith.constant 1 : index
    %c0_83 = arith.constant 0 : index
    %c0_84 = arith.constant 0 : index
    %161 = vector.load %arg10[%c1_82, %c0_83, %c0_84] : memref<6x16x4xbf16, #tpu.memory_space<vmem>>, vector<1x16x4xbf16>
    %162 = vector.shape_cast %161 : vector<1x16x4xbf16> to vector<16x4xbf16>
    %cst_85 = arith.constant dense<0.000000e+00> : vector<16x128xf32>
    %163 = tpu.matmul %144, %1, %cst_85 {dimension_numbers = #tpu.dot_dimension_numbers<[1], [0], [0], [1], [0, 0, 1, 1], [], []>} : vector<16x128xf32>, vector<128x128xf32>, vector<16x128xf32> -> vector<16x128xf32>
    %cst_86 = arith.constant 7.812500e-03 : f32
    %164 = vector.broadcast %cst_86 : f32 to vector<16x128xf32>
    %165 = arith.mulf %163, %164 : vector<16x128xf32>
    %166 = arith.mulf %144, %144 : vector<16x128xf32>
    %cst_87 = arith.constant dense<0.000000e+00> : vector<16x128xf32>
    %167 = tpu.matmul %166, %1, %cst_87 {dimension_numbers = #tpu.dot_dimension_numbers<[1], [0], [0], [1], [0, 0, 1, 1], [], []>} : vector<16x128xf32>, vector<128x128xf32>, vector<16x128xf32> -> vector<16x128xf32>
    %cst_88 = arith.constant 7.812500e-03 : f32
    %168 = vector.broadcast %cst_88 : f32 to vector<16x128xf32>
    %169 = arith.mulf %167, %168 : vector<16x128xf32>
    %170 = arith.mulf %165, %165 : vector<16x128xf32>
    %171 = arith.subf %169, %170 : vector<16x128xf32>
    %cst_89 = arith.constant 0.000000e+00 : f32
    %172 = vector.broadcast %cst_89 : f32 to vector<16x128xf32>
    %173 = arith.maximumf %171, %172 : vector<16x128xf32>
    %174 = arith.subf %144, %165 : vector<16x128xf32>
    %cst_90 = arith.constant 9.99999974E-6 : f32
    %175 = vector.broadcast %cst_90 : f32 to vector<16x128xf32>
    %176 = arith.addf %173, %175 : vector<16x128xf32>
    %177 = math.rsqrt %176 : vector<16x128xf32>
    %178 = arith.mulf %174, %177 : vector<16x128xf32>
    %179 = vector.broadcast %146 : vector<16x1xf32> to vector<16x128xf32>
    %180 = arith.mulf %178, %179 : vector<16x128xf32>
    %181 = vector.broadcast %148 : vector<16x1xf32> to vector<16x128xf32>
    %182 = arith.addf %180, %181 : vector<16x128xf32>
    %cst_91 = arith.constant 0.000000e+00 : f32
    %183 = vector.broadcast %cst_91 : f32 to vector<16x128xf32>
    %184 = arith.maximumf %182, %183 : vector<16x128xf32>
    %185 = arith.truncf %184 : vector<16x128xf32> to vector<16x128xbf16>
    %cst_92 = arith.constant dense<0.000000e+00> : vector<4x128xf32>
    %186 = tpu.matmul %150, %185, %cst_92 {dimension_numbers = #tpu.dot_dimension_numbers<[1], [0], [0], [1], [0, 0, 1, 1], [], []>} : vector<4x16xbf16>, vector<16x128xbf16>, vector<4x128xf32> -> vector<4x128xf32>
    %cst_93 = arith.constant dense<0.000000e+00> : vector<4x128xf32>
    %187 = tpu.matmul %186, %1, %cst_93 {dimension_numbers = #tpu.dot_dimension_numbers<[1], [0], [0], [1], [0, 0, 1, 1], [], []>} : vector<4x128xf32>, vector<128x128xf32>, vector<4x128xf32> -> vector<4x128xf32>
    %cst_94 = arith.constant 7.812500e-03 : f32
    %188 = vector.broadcast %cst_94 : f32 to vector<4x128xf32>
    %189 = arith.mulf %187, %188 : vector<4x128xf32>
    %190 = arith.mulf %186, %186 : vector<4x128xf32>
    %cst_95 = arith.constant dense<0.000000e+00> : vector<4x128xf32>
    %191 = tpu.matmul %190, %1, %cst_95 {dimension_numbers = #tpu.dot_dimension_numbers<[1], [0], [0], [1], [0, 0, 1, 1], [], []>} : vector<4x128xf32>, vector<128x128xf32>, vector<4x128xf32> -> vector<4x128xf32>
    %cst_96 = arith.constant 7.812500e-03 : f32
    %192 = vector.broadcast %cst_96 : f32 to vector<4x128xf32>
    %193 = arith.mulf %191, %192 : vector<4x128xf32>
    %194 = arith.mulf %189, %189 : vector<4x128xf32>
    %195 = arith.subf %193, %194 : vector<4x128xf32>
    %cst_97 = arith.constant 0.000000e+00 : f32
    %196 = vector.broadcast %cst_97 : f32 to vector<4x128xf32>
    %197 = arith.maximumf %195, %196 : vector<4x128xf32>
    %198 = arith.subf %186, %189 : vector<4x128xf32>
    %cst_98 = arith.constant 9.99999974E-6 : f32
    %199 = vector.broadcast %cst_98 : f32 to vector<4x128xf32>
    %200 = arith.addf %197, %199 : vector<4x128xf32>
    %201 = math.rsqrt %200 : vector<4x128xf32>
    %202 = arith.mulf %198, %201 : vector<4x128xf32>
    %203 = vector.broadcast %152 : vector<4x1xf32> to vector<4x128xf32>
    %204 = arith.mulf %202, %203 : vector<4x128xf32>
    %205 = vector.broadcast %154 : vector<4x1xf32> to vector<4x128xf32>
    %206 = arith.addf %204, %205 : vector<4x128xf32>
    %cst_99 = arith.constant 0.000000e+00 : f32
    %207 = vector.broadcast %cst_99 : f32 to vector<4x128xf32>
    %208 = arith.maximumf %206, %207 : vector<4x128xf32>
    %c9_i32_100 = arith.constant 9 : i32
    %209 = tpu.dynamic_rotate %208 by %c9_i32_100 dim 1 : vector<4x128xf32>, i32 -> vector<4x128xf32>
    %210 = arith.mulf %209, %7 : vector<4x128xf32>
    %c8_i32_101 = arith.constant 8 : i32
    %211 = tpu.dynamic_rotate %208 by %c8_i32_101 dim 1 : vector<4x128xf32>, i32 -> vector<4x128xf32>
    %212 = arith.mulf %211, %11 : vector<4x128xf32>
    %c7_i32_102 = arith.constant 7 : i32
    %213 = tpu.dynamic_rotate %208 by %c7_i32_102 dim 1 : vector<4x128xf32>, i32 -> vector<4x128xf32>
    %214 = arith.mulf %213, %15 : vector<4x128xf32>
    %c1_i32_103 = arith.constant 1 : i32
    %215 = tpu.dynamic_rotate %208 by %c1_i32_103 dim 1 : vector<4x128xf32>, i32 -> vector<4x128xf32>
    %216 = arith.mulf %215, %19 : vector<4x128xf32>
    %c127_i32_104 = arith.constant 127 : i32
    %217 = tpu.dynamic_rotate %208 by %c127_i32_104 dim 1 : vector<4x128xf32>, i32 -> vector<4x128xf32>
    %218 = arith.mulf %217, %23 : vector<4x128xf32>
    %c121_i32_105 = arith.constant 121 : i32
    %219 = tpu.dynamic_rotate %208 by %c121_i32_105 dim 1 : vector<4x128xf32>, i32 -> vector<4x128xf32>
    %220 = arith.mulf %219, %27 : vector<4x128xf32>
    %c120_i32_106 = arith.constant 120 : i32
    %221 = tpu.dynamic_rotate %208 by %c120_i32_106 dim 1 : vector<4x128xf32>, i32 -> vector<4x128xf32>
    %222 = arith.mulf %221, %31 : vector<4x128xf32>
    %c119_i32_107 = arith.constant 119 : i32
    %223 = tpu.dynamic_rotate %208 by %c119_i32_107 dim 1 : vector<4x128xf32>, i32 -> vector<4x128xf32>
    %224 = arith.mulf %223, %35 : vector<4x128xf32>
    %225 = tpu.concatenate %210, %212, %214, %216, %208, %218, %220, %222, %224 in 0 : vector<4x128xf32>, vector<4x128xf32>, vector<4x128xf32>, vector<4x128xf32>, vector<4x128xf32>, vector<4x128xf32>, vector<4x128xf32>, vector<4x128xf32>, vector<4x128xf32> -> vector<36x128xf32>
    %226 = arith.truncf %225 : vector<36x128xf32> to vector<36x128xbf16>
    %cst_108 = arith.constant dense<0.000000e+00> : vector<4x128xf32>
    %227 = tpu.matmul %156, %226, %cst_108 {dimension_numbers = #tpu.dot_dimension_numbers<[1], [0], [0], [1], [0, 0, 1, 1], [], []>} : vector<4x36xbf16>, vector<36x128xbf16>, vector<4x128xf32> -> vector<4x128xf32>
    %cst_109 = arith.constant dense<0.000000e+00> : vector<4x128xf32>
    %228 = tpu.matmul %227, %1, %cst_109 {dimension_numbers = #tpu.dot_dimension_numbers<[1], [0], [0], [1], [0, 0, 1, 1], [], []>} : vector<4x128xf32>, vector<128x128xf32>, vector<4x128xf32> -> vector<4x128xf32>
    %cst_110 = arith.constant 7.812500e-03 : f32
    %229 = vector.broadcast %cst_110 : f32 to vector<4x128xf32>
    %230 = arith.mulf %228, %229 : vector<4x128xf32>
    %231 = arith.mulf %227, %227 : vector<4x128xf32>
    %cst_111 = arith.constant dense<0.000000e+00> : vector<4x128xf32>
    %232 = tpu.matmul %231, %1, %cst_111 {dimension_numbers = #tpu.dot_dimension_numbers<[1], [0], [0], [1], [0, 0, 1, 1], [], []>} : vector<4x128xf32>, vector<128x128xf32>, vector<4x128xf32> -> vector<4x128xf32>
    %cst_112 = arith.constant 7.812500e-03 : f32
    %233 = vector.broadcast %cst_112 : f32 to vector<4x128xf32>
    %234 = arith.mulf %232, %233 : vector<4x128xf32>
    %235 = arith.mulf %230, %230 : vector<4x128xf32>
    %236 = arith.subf %234, %235 : vector<4x128xf32>
    %cst_113 = arith.constant 0.000000e+00 : f32
    %237 = vector.broadcast %cst_113 : f32 to vector<4x128xf32>
    %238 = arith.maximumf %236, %237 : vector<4x128xf32>
    %239 = arith.subf %227, %230 : vector<4x128xf32>
    %cst_114 = arith.constant 9.99999974E-6 : f32
    %240 = vector.broadcast %cst_114 : f32 to vector<4x128xf32>
    %241 = arith.addf %238, %240 : vector<4x128xf32>
    %242 = math.rsqrt %241 : vector<4x128xf32>
    %243 = arith.mulf %239, %242 : vector<4x128xf32>
    %244 = vector.broadcast %158 : vector<4x1xf32> to vector<4x128xf32>
    %245 = arith.mulf %243, %244 : vector<4x128xf32>
    %246 = vector.broadcast %160 : vector<4x1xf32> to vector<4x128xf32>
    %247 = arith.addf %245, %246 : vector<4x128xf32>
    %cst_115 = arith.constant 0.000000e+00 : f32
    %248 = vector.broadcast %cst_115 : f32 to vector<4x128xf32>
    %249 = arith.maximumf %247, %248 : vector<4x128xf32>
    %250 = arith.truncf %249 : vector<4x128xf32> to vector<4x128xbf16>
    %cst_116 = arith.constant dense<0.000000e+00> : vector<16x128xf32>
    %251 = tpu.matmul %162, %250, %cst_116 {dimension_numbers = #tpu.dot_dimension_numbers<[1], [0], [0], [1], [0, 0, 1, 1], [], []>} : vector<16x4xbf16>, vector<4x128xbf16>, vector<16x128xf32> -> vector<16x128xf32>
    %252 = arith.addf %251, %144 : vector<16x128xf32>
    %c2 = arith.constant 2 : index
    %c0_117 = arith.constant 0 : index
    %c0_118 = arith.constant 0 : index
    %253 = vector.load %arg2[%c2, %c0_117, %c0_118] : memref<6x16x1xf32, #tpu.memory_space<vmem>>, vector<1x16x1xf32>
    %254 = vector.shape_cast %253 : vector<1x16x1xf32> to vector<16x1xf32>
    %c2_119 = arith.constant 2 : index
    %c0_120 = arith.constant 0 : index
    %c0_121 = arith.constant 0 : index
    %255 = vector.load %arg3[%c2_119, %c0_120, %c0_121] : memref<6x16x1xf32, #tpu.memory_space<vmem>>, vector<1x16x1xf32>
    %256 = vector.shape_cast %255 : vector<1x16x1xf32> to vector<16x1xf32>
    %c2_122 = arith.constant 2 : index
    %c0_123 = arith.constant 0 : index
    %c0_124 = arith.constant 0 : index
    %257 = vector.load %arg4[%c2_122, %c0_123, %c0_124] : memref<6x4x16xbf16, #tpu.memory_space<vmem>>, vector<1x4x16xbf16>
    %258 = vector.shape_cast %257 : vector<1x4x16xbf16> to vector<4x16xbf16>
    %c2_125 = arith.constant 2 : index
    %c0_126 = arith.constant 0 : index
    %c0_127 = arith.constant 0 : index
    %259 = vector.load %arg5[%c2_125, %c0_126, %c0_127] : memref<6x4x1xf32, #tpu.memory_space<vmem>>, vector<1x4x1xf32>
    %260 = vector.shape_cast %259 : vector<1x4x1xf32> to vector<4x1xf32>
    %c2_128 = arith.constant 2 : index
    %c0_129 = arith.constant 0 : index
    %c0_130 = arith.constant 0 : index
    %261 = vector.load %arg6[%c2_128, %c0_129, %c0_130] : memref<6x4x1xf32, #tpu.memory_space<vmem>>, vector<1x4x1xf32>
    %262 = vector.shape_cast %261 : vector<1x4x1xf32> to vector<4x1xf32>
    %c2_131 = arith.constant 2 : index
    %c0_132 = arith.constant 0 : index
    %c0_133 = arith.constant 0 : index
    %263 = vector.load %arg7[%c2_131, %c0_132, %c0_133] : memref<6x4x36xbf16, #tpu.memory_space<vmem>>, vector<1x4x36xbf16>
    %264 = vector.shape_cast %263 : vector<1x4x36xbf16> to vector<4x36xbf16>
    %c2_134 = arith.constant 2 : index
    %c0_135 = arith.constant 0 : index
    %c0_136 = arith.constant 0 : index
    %265 = vector.load %arg8[%c2_134, %c0_135, %c0_136] : memref<6x4x1xf32, #tpu.memory_space<vmem>>, vector<1x4x1xf32>
    %266 = vector.shape_cast %265 : vector<1x4x1xf32> to vector<4x1xf32>
    %c2_137 = arith.constant 2 : index
    %c0_138 = arith.constant 0 : index
    %c0_139 = arith.constant 0 : index
    %267 = vector.load %arg9[%c2_137, %c0_138, %c0_139] : memref<6x4x1xf32, #tpu.memory_space<vmem>>, vector<1x4x1xf32>
    %268 = vector.shape_cast %267 : vector<1x4x1xf32> to vector<4x1xf32>
    %c2_140 = arith.constant 2 : index
    %c0_141 = arith.constant 0 : index
    %c0_142 = arith.constant 0 : index
    %269 = vector.load %arg10[%c2_140, %c0_141, %c0_142] : memref<6x16x4xbf16, #tpu.memory_space<vmem>>, vector<1x16x4xbf16>
    %270 = vector.shape_cast %269 : vector<1x16x4xbf16> to vector<16x4xbf16>
    %cst_143 = arith.constant dense<0.000000e+00> : vector<16x128xf32>
    %271 = tpu.matmul %252, %1, %cst_143 {dimension_numbers = #tpu.dot_dimension_numbers<[1], [0], [0], [1], [0, 0, 1, 1], [], []>} : vector<16x128xf32>, vector<128x128xf32>, vector<16x128xf32> -> vector<16x128xf32>
    %cst_144 = arith.constant 7.812500e-03 : f32
    %272 = vector.broadcast %cst_144 : f32 to vector<16x128xf32>
    %273 = arith.mulf %271, %272 : vector<16x128xf32>
    %274 = arith.mulf %252, %252 : vector<16x128xf32>
    %cst_145 = arith.constant dense<0.000000e+00> : vector<16x128xf32>
    %275 = tpu.matmul %274, %1, %cst_145 {dimension_numbers = #tpu.dot_dimension_numbers<[1], [0], [0], [1], [0, 0, 1, 1], [], []>} : vector<16x128xf32>, vector<128x128xf32>, vector<16x128xf32> -> vector<16x128xf32>
    %cst_146 = arith.constant 7.812500e-03 : f32
    %276 = vector.broadcast %cst_146 : f32 to vector<16x128xf32>
    %277 = arith.mulf %275, %276 : vector<16x128xf32>
    %278 = arith.mulf %273, %273 : vector<16x128xf32>
    %279 = arith.subf %277, %278 : vector<16x128xf32>
    %cst_147 = arith.constant 0.000000e+00 : f32
    %280 = vector.broadcast %cst_147 : f32 to vector<16x128xf32>
    %281 = arith.maximumf %279, %280 : vector<16x128xf32>
    %282 = arith.subf %252, %273 : vector<16x128xf32>
    %cst_148 = arith.constant 9.99999974E-6 : f32
    %283 = vector.broadcast %cst_148 : f32 to vector<16x128xf32>
    %284 = arith.addf %281, %283 : vector<16x128xf32>
    %285 = math.rsqrt %284 : vector<16x128xf32>
    %286 = arith.mulf %282, %285 : vector<16x128xf32>
    %287 = vector.broadcast %254 : vector<16x1xf32> to vector<16x128xf32>
    %288 = arith.mulf %286, %287 : vector<16x128xf32>
    %289 = vector.broadcast %256 : vector<16x1xf32> to vector<16x128xf32>
    %290 = arith.addf %288, %289 : vector<16x128xf32>
    %cst_149 = arith.constant 0.000000e+00 : f32
    %291 = vector.broadcast %cst_149 : f32 to vector<16x128xf32>
    %292 = arith.maximumf %290, %291 : vector<16x128xf32>
    %293 = arith.truncf %292 : vector<16x128xf32> to vector<16x128xbf16>
    %cst_150 = arith.constant dense<0.000000e+00> : vector<4x128xf32>
    %294 = tpu.matmul %258, %293, %cst_150 {dimension_numbers = #tpu.dot_dimension_numbers<[1], [0], [0], [1], [0, 0, 1, 1], [], []>} : vector<4x16xbf16>, vector<16x128xbf16>, vector<4x128xf32> -> vector<4x128xf32>
    %cst_151 = arith.constant dense<0.000000e+00> : vector<4x128xf32>
    %295 = tpu.matmul %294, %1, %cst_151 {dimension_numbers = #tpu.dot_dimension_numbers<[1], [0], [0], [1], [0, 0, 1, 1], [], []>} : vector<4x128xf32>, vector<128x128xf32>, vector<4x128xf32> -> vector<4x128xf32>
    %cst_152 = arith.constant 7.812500e-03 : f32
    %296 = vector.broadcast %cst_152 : f32 to vector<4x128xf32>
    %297 = arith.mulf %295, %296 : vector<4x128xf32>
    %298 = arith.mulf %294, %294 : vector<4x128xf32>
    %cst_153 = arith.constant dense<0.000000e+00> : vector<4x128xf32>
    %299 = tpu.matmul %298, %1, %cst_153 {dimension_numbers = #tpu.dot_dimension_numbers<[1], [0], [0], [1], [0, 0, 1, 1], [], []>} : vector<4x128xf32>, vector<128x128xf32>, vector<4x128xf32> -> vector<4x128xf32>
    %cst_154 = arith.constant 7.812500e-03 : f32
    %300 = vector.broadcast %cst_154 : f32 to vector<4x128xf32>
    %301 = arith.mulf %299, %300 : vector<4x128xf32>
    %302 = arith.mulf %297, %297 : vector<4x128xf32>
    %303 = arith.subf %301, %302 : vector<4x128xf32>
    %cst_155 = arith.constant 0.000000e+00 : f32
    %304 = vector.broadcast %cst_155 : f32 to vector<4x128xf32>
    %305 = arith.maximumf %303, %304 : vector<4x128xf32>
    %306 = arith.subf %294, %297 : vector<4x128xf32>
    %cst_156 = arith.constant 9.99999974E-6 : f32
    %307 = vector.broadcast %cst_156 : f32 to vector<4x128xf32>
    %308 = arith.addf %305, %307 : vector<4x128xf32>
    %309 = math.rsqrt %308 : vector<4x128xf32>
    %310 = arith.mulf %306, %309 : vector<4x128xf32>
    %311 = vector.broadcast %260 : vector<4x1xf32> to vector<4x128xf32>
    %312 = arith.mulf %310, %311 : vector<4x128xf32>
    %313 = vector.broadcast %262 : vector<4x1xf32> to vector<4x128xf32>
    %314 = arith.addf %312, %313 : vector<4x128xf32>
    %cst_157 = arith.constant 0.000000e+00 : f32
    %315 = vector.broadcast %cst_157 : f32 to vector<4x128xf32>
    %316 = arith.maximumf %314, %315 : vector<4x128xf32>
    %c9_i32_158 = arith.constant 9 : i32
    %317 = tpu.dynamic_rotate %316 by %c9_i32_158 dim 1 : vector<4x128xf32>, i32 -> vector<4x128xf32>
    %318 = arith.mulf %317, %7 : vector<4x128xf32>
    %c8_i32_159 = arith.constant 8 : i32
    %319 = tpu.dynamic_rotate %316 by %c8_i32_159 dim 1 : vector<4x128xf32>, i32 -> vector<4x128xf32>
    %320 = arith.mulf %319, %11 : vector<4x128xf32>
    %c7_i32_160 = arith.constant 7 : i32
    %321 = tpu.dynamic_rotate %316 by %c7_i32_160 dim 1 : vector<4x128xf32>, i32 -> vector<4x128xf32>
    %322 = arith.mulf %321, %15 : vector<4x128xf32>
    %c1_i32_161 = arith.constant 1 : i32
    %323 = tpu.dynamic_rotate %316 by %c1_i32_161 dim 1 : vector<4x128xf32>, i32 -> vector<4x128xf32>
    %324 = arith.mulf %323, %19 : vector<4x128xf32>
    %c127_i32_162 = arith.constant 127 : i32
    %325 = tpu.dynamic_rotate %316 by %c127_i32_162 dim 1 : vector<4x128xf32>, i32 -> vector<4x128xf32>
    %326 = arith.mulf %325, %23 : vector<4x128xf32>
    %c121_i32_163 = arith.constant 121 : i32
    %327 = tpu.dynamic_rotate %316 by %c121_i32_163 dim 1 : vector<4x128xf32>, i32 -> vector<4x128xf32>
    %328 = arith.mulf %327, %27 : vector<4x128xf32>
    %c120_i32_164 = arith.constant 120 : i32
    %329 = tpu.dynamic_rotate %316 by %c120_i32_164 dim 1 : vector<4x128xf32>, i32 -> vector<4x128xf32>
    %330 = arith.mulf %329, %31 : vector<4x128xf32>
    %c119_i32_165 = arith.constant 119 : i32
    %331 = tpu.dynamic_rotate %316 by %c119_i32_165 dim 1 : vector<4x128xf32>, i32 -> vector<4x128xf32>
    %332 = arith.mulf %331, %35 : vector<4x128xf32>
    %333 = tpu.concatenate %318, %320, %322, %324, %316, %326, %328, %330, %332 in 0 : vector<4x128xf32>, vector<4x128xf32>, vector<4x128xf32>, vector<4x128xf32>, vector<4x128xf32>, vector<4x128xf32>, vector<4x128xf32>, vector<4x128xf32>, vector<4x128xf32> -> vector<36x128xf32>
    %334 = arith.truncf %333 : vector<36x128xf32> to vector<36x128xbf16>
    %cst_166 = arith.constant dense<0.000000e+00> : vector<4x128xf32>
    %335 = tpu.matmul %264, %334, %cst_166 {dimension_numbers = #tpu.dot_dimension_numbers<[1], [0], [0], [1], [0, 0, 1, 1], [], []>} : vector<4x36xbf16>, vector<36x128xbf16>, vector<4x128xf32> -> vector<4x128xf32>
    %cst_167 = arith.constant dense<0.000000e+00> : vector<4x128xf32>
    %336 = tpu.matmul %335, %1, %cst_167 {dimension_numbers = #tpu.dot_dimension_numbers<[1], [0], [0], [1], [0, 0, 1, 1], [], []>} : vector<4x128xf32>, vector<128x128xf32>, vector<4x128xf32> -> vector<4x128xf32>
    %cst_168 = arith.constant 7.812500e-03 : f32
    %337 = vector.broadcast %cst_168 : f32 to vector<4x128xf32>
    %338 = arith.mulf %336, %337 : vector<4x128xf32>
    %339 = arith.mulf %335, %335 : vector<4x128xf32>
    %cst_169 = arith.constant dense<0.000000e+00> : vector<4x128xf32>
    %340 = tpu.matmul %339, %1, %cst_169 {dimension_numbers = #tpu.dot_dimension_numbers<[1], [0], [0], [1], [0, 0, 1, 1], [], []>} : vector<4x128xf32>, vector<128x128xf32>, vector<4x128xf32> -> vector<4x128xf32>
    %cst_170 = arith.constant 7.812500e-03 : f32
    %341 = vector.broadcast %cst_170 : f32 to vector<4x128xf32>
    %342 = arith.mulf %340, %341 : vector<4x128xf32>
    %343 = arith.mulf %338, %338 : vector<4x128xf32>
    %344 = arith.subf %342, %343 : vector<4x128xf32>
    %cst_171 = arith.constant 0.000000e+00 : f32
    %345 = vector.broadcast %cst_171 : f32 to vector<4x128xf32>
    %346 = arith.maximumf %344, %345 : vector<4x128xf32>
    %347 = arith.subf %335, %338 : vector<4x128xf32>
    %cst_172 = arith.constant 9.99999974E-6 : f32
    %348 = vector.broadcast %cst_172 : f32 to vector<4x128xf32>
    %349 = arith.addf %346, %348 : vector<4x128xf32>
    %350 = math.rsqrt %349 : vector<4x128xf32>
    %351 = arith.mulf %347, %350 : vector<4x128xf32>
    %352 = vector.broadcast %266 : vector<4x1xf32> to vector<4x128xf32>
    %353 = arith.mulf %351, %352 : vector<4x128xf32>
    %354 = vector.broadcast %268 : vector<4x1xf32> to vector<4x128xf32>
    %355 = arith.addf %353, %354 : vector<4x128xf32>
    %cst_173 = arith.constant 0.000000e+00 : f32
    %356 = vector.broadcast %cst_173 : f32 to vector<4x128xf32>
    %357 = arith.maximumf %355, %356 : vector<4x128xf32>
    %358 = arith.truncf %357 : vector<4x128xf32> to vector<4x128xbf16>
    %cst_174 = arith.constant dense<0.000000e+00> : vector<16x128xf32>
    %359 = tpu.matmul %270, %358, %cst_174 {dimension_numbers = #tpu.dot_dimension_numbers<[1], [0], [0], [1], [0, 0, 1, 1], [], []>} : vector<16x4xbf16>, vector<4x128xbf16>, vector<16x128xf32> -> vector<16x128xf32>
    %360 = arith.addf %359, %252 : vector<16x128xf32>
    %c0_175 = arith.constant 0 : index
    %c0_176 = arith.constant 0 : index
    %361 = vector.load %arg19[%c0_175, %c0_176] : memref<128x32xbf16, #tpu.memory_space<vmem>>, vector<128x32xbf16>
    %c9_i32_177 = arith.constant 9 : i32
    %362 = tpu.dynamic_rotate %144 by %c9_i32_177 dim 1 : vector<16x128xf32>, i32 -> vector<16x128xf32>
    %363 = vector.extract_strided_slice %3 {offsets = [0, 0, 0], sizes = [1, 1, 128], strides = [1, 1, 1]} : vector<9x1x128xf32> to vector<1x1x128xf32>
    %364 = vector.shape_cast %363 : vector<1x1x128xf32> to vector<1x128xf32>
    %cst_178 = arith.constant 0.000000e+00 : f32
    %365 = vector.broadcast %cst_178 : f32 to vector<1x128xf32>
    %366 = arith.cmpf ogt, %364, %365 : vector<1x128xf32>
    %cst_179 = arith.constant -1.000000e+30 : f32
    %367 = vector.shape_cast %366 : vector<1x128xi1> to vector<1x128xi1>
    %368 = vector.broadcast %367 : vector<1x128xi1> to vector<16x128xi1>
    %369 = vector.broadcast %cst_179 : f32 to vector<16x128xf32>
    %370 = arith.select %368, %362, %369 : vector<16x128xi1>, vector<16x128xf32>
    %371 = arith.maximumf %144, %370 : vector<16x128xf32>
    %c8_i32_180 = arith.constant 8 : i32
    %372 = tpu.dynamic_rotate %144 by %c8_i32_180 dim 1 : vector<16x128xf32>, i32 -> vector<16x128xf32>
    %373 = vector.extract_strided_slice %3 {offsets = [1, 0, 0], sizes = [1, 1, 128], strides = [1, 1, 1]} : vector<9x1x128xf32> to vector<1x1x128xf32>
    %374 = vector.shape_cast %373 : vector<1x1x128xf32> to vector<1x128xf32>
    %cst_181 = arith.constant 0.000000e+00 : f32
    %375 = vector.broadcast %cst_181 : f32 to vector<1x128xf32>
    %376 = arith.cmpf ogt, %374, %375 : vector<1x128xf32>
    %cst_182 = arith.constant -1.000000e+30 : f32
    %377 = vector.shape_cast %376 : vector<1x128xi1> to vector<1x128xi1>
    %378 = vector.broadcast %377 : vector<1x128xi1> to vector<16x128xi1>
    %379 = vector.broadcast %cst_182 : f32 to vector<16x128xf32>
    %380 = arith.select %378, %372, %379 : vector<16x128xi1>, vector<16x128xf32>
    %381 = arith.maximumf %371, %380 : vector<16x128xf32>
    %c7_i32_183 = arith.constant 7 : i32
    %382 = tpu.dynamic_rotate %144 by %c7_i32_183 dim 1 : vector<16x128xf32>, i32 -> vector<16x128xf32>
    %383 = vector.extract_strided_slice %3 {offsets = [2, 0, 0], sizes = [1, 1, 128], strides = [1, 1, 1]} : vector<9x1x128xf32> to vector<1x1x128xf32>
    %384 = vector.shape_cast %383 : vector<1x1x128xf32> to vector<1x128xf32>
    %cst_184 = arith.constant 0.000000e+00 : f32
    %385 = vector.broadcast %cst_184 : f32 to vector<1x128xf32>
    %386 = arith.cmpf ogt, %384, %385 : vector<1x128xf32>
    %cst_185 = arith.constant -1.000000e+30 : f32
    %387 = vector.shape_cast %386 : vector<1x128xi1> to vector<1x128xi1>
    %388 = vector.broadcast %387 : vector<1x128xi1> to vector<16x128xi1>
    %389 = vector.broadcast %cst_185 : f32 to vector<16x128xf32>
    %390 = arith.select %388, %382, %389 : vector<16x128xi1>, vector<16x128xf32>
    %391 = arith.maximumf %381, %390 : vector<16x128xf32>
    %c1_i32_186 = arith.constant 1 : i32
    %392 = tpu.dynamic_rotate %144 by %c1_i32_186 dim 1 : vector<16x128xf32>, i32 -> vector<16x128xf32>
    %393 = vector.extract_strided_slice %3 {offsets = [3, 0, 0], sizes = [1, 1, 128], strides = [1, 1, 1]} : vector<9x1x128xf32> to vector<1x1x128xf32>
    %394 = vector.shape_cast %393 : vector<1x1x128xf32> to vector<1x128xf32>
    %cst_187 = arith.constant 0.000000e+00 : f32
    %395 = vector.broadcast %cst_187 : f32 to vector<1x128xf32>
    %396 = arith.cmpf ogt, %394, %395 : vector<1x128xf32>
    %cst_188 = arith.constant -1.000000e+30 : f32
    %397 = vector.shape_cast %396 : vector<1x128xi1> to vector<1x128xi1>
    %398 = vector.broadcast %397 : vector<1x128xi1> to vector<16x128xi1>
    %399 = vector.broadcast %cst_188 : f32 to vector<16x128xf32>
    %400 = arith.select %398, %392, %399 : vector<16x128xi1>, vector<16x128xf32>
    %401 = arith.maximumf %391, %400 : vector<16x128xf32>
    %c127_i32_189 = arith.constant 127 : i32
    %402 = tpu.dynamic_rotate %144 by %c127_i32_189 dim 1 : vector<16x128xf32>, i32 -> vector<16x128xf32>
    %403 = vector.extract_strided_slice %3 {offsets = [5, 0, 0], sizes = [1, 1, 128], strides = [1, 1, 1]} : vector<9x1x128xf32> to vector<1x1x128xf32>
    %404 = vector.shape_cast %403 : vector<1x1x128xf32> to vector<1x128xf32>
    %cst_190 = arith.constant 0.000000e+00 : f32
    %405 = vector.broadcast %cst_190 : f32 to vector<1x128xf32>
    %406 = arith.cmpf ogt, %404, %405 : vector<1x128xf32>
    %cst_191 = arith.constant -1.000000e+30 : f32
    %407 = vector.shape_cast %406 : vector<1x128xi1> to vector<1x128xi1>
    %408 = vector.broadcast %407 : vector<1x128xi1> to vector<16x128xi1>
    %409 = vector.broadcast %cst_191 : f32 to vector<16x128xf32>
    %410 = arith.select %408, %402, %409 : vector<16x128xi1>, vector<16x128xf32>
    %411 = arith.maximumf %401, %410 : vector<16x128xf32>
    %c121_i32_192 = arith.constant 121 : i32
    %412 = tpu.dynamic_rotate %144 by %c121_i32_192 dim 1 : vector<16x128xf32>, i32 -> vector<16x128xf32>
    %413 = vector.extract_strided_slice %3 {offsets = [6, 0, 0], sizes = [1, 1, 128], strides = [1, 1, 1]} : vector<9x1x128xf32> to vector<1x1x128xf32>
    %414 = vector.shape_cast %413 : vector<1x1x128xf32> to vector<1x128xf32>
    %cst_193 = arith.constant 0.000000e+00 : f32
    %415 = vector.broadcast %cst_193 : f32 to vector<1x128xf32>
    %416 = arith.cmpf ogt, %414, %415 : vector<1x128xf32>
    %cst_194 = arith.constant -1.000000e+30 : f32
    %417 = vector.shape_cast %416 : vector<1x128xi1> to vector<1x128xi1>
    %418 = vector.broadcast %417 : vector<1x128xi1> to vector<16x128xi1>
    %419 = vector.broadcast %cst_194 : f32 to vector<16x128xf32>
    %420 = arith.select %418, %412, %419 : vector<16x128xi1>, vector<16x128xf32>
    %421 = arith.maximumf %411, %420 : vector<16x128xf32>
    %c120_i32_195 = arith.constant 120 : i32
    %422 = tpu.dynamic_rotate %144 by %c120_i32_195 dim 1 : vector<16x128xf32>, i32 -> vector<16x128xf32>
    %423 = vector.extract_strided_slice %3 {offsets = [7, 0, 0], sizes = [1, 1, 128], strides = [1, 1, 1]} : vector<9x1x128xf32> to vector<1x1x128xf32>
    %424 = vector.shape_cast %423 : vector<1x1x128xf32> to vector<1x128xf32>
    %cst_196 = arith.constant 0.000000e+00 : f32
    %425 = vector.broadcast %cst_196 : f32 to vector<1x128xf32>
    %426 = arith.cmpf ogt, %424, %425 : vector<1x128xf32>
    %cst_197 = arith.constant -1.000000e+30 : f32
    %427 = vector.shape_cast %426 : vector<1x128xi1> to vector<1x128xi1>
    %428 = vector.broadcast %427 : vector<1x128xi1> to vector<16x128xi1>
    %429 = vector.broadcast %cst_197 : f32 to vector<16x128xf32>
    %430 = arith.select %428, %422, %429 : vector<16x128xi1>, vector<16x128xf32>
    %431 = arith.maximumf %421, %430 : vector<16x128xf32>
    %c119_i32_198 = arith.constant 119 : i32
    %432 = tpu.dynamic_rotate %144 by %c119_i32_198 dim 1 : vector<16x128xf32>, i32 -> vector<16x128xf32>
    %433 = vector.extract_strided_slice %3 {offsets = [8, 0, 0], sizes = [1, 1, 128], strides = [1, 1, 1]} : vector<9x1x128xf32> to vector<1x1x128xf32>
    %434 = vector.shape_cast %433 : vector<1x1x128xf32> to vector<1x128xf32>
    %cst_199 = arith.constant 0.000000e+00 : f32
    %435 = vector.broadcast %cst_199 : f32 to vector<1x128xf32>
    %436 = arith.cmpf ogt, %434, %435 : vector<1x128xf32>
    %cst_200 = arith.constant -1.000000e+30 : f32
    %437 = vector.shape_cast %436 : vector<1x128xi1> to vector<1x128xi1>
    %438 = vector.broadcast %437 : vector<1x128xi1> to vector<16x128xi1>
    %439 = vector.broadcast %cst_200 : f32 to vector<16x128xf32>
    %440 = arith.select %438, %432, %439 : vector<16x128xi1>, vector<16x128xf32>
    %441 = arith.maximumf %431, %440 : vector<16x128xf32>
    %442 = arith.truncf %441 : vector<16x128xf32> to vector<16x128xbf16>
    %cst_201 = arith.constant dense<0.000000e+00> : vector<16x32xf32>
    %443 = tpu.matmul %442, %361, %cst_201 {dimension_numbers = #tpu.dot_dimension_numbers<[1], [0], [0], [1], [0, 0, 1, 1], [], []>} : vector<16x128xbf16>, vector<128x32xbf16>, vector<16x32xf32> -> vector<16x32xf32>
    %c3 = arith.constant 3 : index
    %c0_202 = arith.constant 0 : index
    %c0_203 = arith.constant 0 : index
    %444 = vector.load %arg2[%c3, %c0_202, %c0_203] : memref<6x16x1xf32, #tpu.memory_space<vmem>>, vector<1x16x1xf32>
    %445 = vector.shape_cast %444 : vector<1x16x1xf32> to vector<16x1xf32>
    %c3_204 = arith.constant 3 : index
    %c0_205 = arith.constant 0 : index
    %c0_206 = arith.constant 0 : index
    %446 = vector.load %arg3[%c3_204, %c0_205, %c0_206] : memref<6x16x1xf32, #tpu.memory_space<vmem>>, vector<1x16x1xf32>
    %447 = vector.shape_cast %446 : vector<1x16x1xf32> to vector<16x1xf32>
    %c3_207 = arith.constant 3 : index
    %c0_208 = arith.constant 0 : index
    %c0_209 = arith.constant 0 : index
    %448 = vector.load %arg4[%c3_207, %c0_208, %c0_209] : memref<6x4x16xbf16, #tpu.memory_space<vmem>>, vector<1x4x16xbf16>
    %449 = vector.shape_cast %448 : vector<1x4x16xbf16> to vector<4x16xbf16>
    %c3_210 = arith.constant 3 : index
    %c0_211 = arith.constant 0 : index
    %c0_212 = arith.constant 0 : index
    %450 = vector.load %arg5[%c3_210, %c0_211, %c0_212] : memref<6x4x1xf32, #tpu.memory_space<vmem>>, vector<1x4x1xf32>
    %451 = vector.shape_cast %450 : vector<1x4x1xf32> to vector<4x1xf32>
    %c3_213 = arith.constant 3 : index
    %c0_214 = arith.constant 0 : index
    %c0_215 = arith.constant 0 : index
    %452 = vector.load %arg6[%c3_213, %c0_214, %c0_215] : memref<6x4x1xf32, #tpu.memory_space<vmem>>, vector<1x4x1xf32>
    %453 = vector.shape_cast %452 : vector<1x4x1xf32> to vector<4x1xf32>
    %c3_216 = arith.constant 3 : index
    %c0_217 = arith.constant 0 : index
    %c0_218 = arith.constant 0 : index
    %454 = vector.load %arg7[%c3_216, %c0_217, %c0_218] : memref<6x4x36xbf16, #tpu.memory_space<vmem>>, vector<1x4x36xbf16>
    %455 = vector.shape_cast %454 : vector<1x4x36xbf16> to vector<4x36xbf16>
    %c3_219 = arith.constant 3 : index
    %c0_220 = arith.constant 0 : index
    %c0_221 = arith.constant 0 : index
    %456 = vector.load %arg8[%c3_219, %c0_220, %c0_221] : memref<6x4x1xf32, #tpu.memory_space<vmem>>, vector<1x4x1xf32>
    %457 = vector.shape_cast %456 : vector<1x4x1xf32> to vector<4x1xf32>
    %c3_222 = arith.constant 3 : index
    %c0_223 = arith.constant 0 : index
    %c0_224 = arith.constant 0 : index
    %458 = vector.load %arg9[%c3_222, %c0_223, %c0_224] : memref<6x4x1xf32, #tpu.memory_space<vmem>>, vector<1x4x1xf32>
    %459 = vector.shape_cast %458 : vector<1x4x1xf32> to vector<4x1xf32>
    %c3_225 = arith.constant 3 : index
    %c0_226 = arith.constant 0 : index
    %c0_227 = arith.constant 0 : index
    %460 = vector.load %arg10[%c3_225, %c0_226, %c0_227] : memref<6x16x4xbf16, #tpu.memory_space<vmem>>, vector<1x16x4xbf16>
    %461 = vector.shape_cast %460 : vector<1x16x4xbf16> to vector<16x4xbf16>
    %cst_228 = arith.constant dense<0.000000e+00> : vector<16x32xf32>
    %462 = tpu.matmul %443, %2, %cst_228 {dimension_numbers = #tpu.dot_dimension_numbers<[1], [0], [0], [1], [0, 0, 1, 1], [], []>} : vector<16x32xf32>, vector<32x32xf32>, vector<16x32xf32> -> vector<16x32xf32>
    %cst_229 = arith.constant 3.125000e-02 : f32
    %463 = vector.broadcast %cst_229 : f32 to vector<16x32xf32>
    %464 = arith.mulf %462, %463 : vector<16x32xf32>
    %465 = arith.mulf %443, %443 : vector<16x32xf32>
    %cst_230 = arith.constant dense<0.000000e+00> : vector<16x32xf32>
    %466 = tpu.matmul %465, %2, %cst_230 {dimension_numbers = #tpu.dot_dimension_numbers<[1], [0], [0], [1], [0, 0, 1, 1], [], []>} : vector<16x32xf32>, vector<32x32xf32>, vector<16x32xf32> -> vector<16x32xf32>
    %cst_231 = arith.constant 3.125000e-02 : f32
    %467 = vector.broadcast %cst_231 : f32 to vector<16x32xf32>
    %468 = arith.mulf %466, %467 : vector<16x32xf32>
    %469 = arith.mulf %464, %464 : vector<16x32xf32>
    %470 = arith.subf %468, %469 : vector<16x32xf32>
    %cst_232 = arith.constant 0.000000e+00 : f32
    %471 = vector.broadcast %cst_232 : f32 to vector<16x32xf32>
    %472 = arith.maximumf %470, %471 : vector<16x32xf32>
    %473 = arith.subf %443, %464 : vector<16x32xf32>
    %cst_233 = arith.constant 9.99999974E-6 : f32
    %474 = vector.broadcast %cst_233 : f32 to vector<16x32xf32>
    %475 = arith.addf %472, %474 : vector<16x32xf32>
    %476 = math.rsqrt %475 : vector<16x32xf32>
    %477 = arith.mulf %473, %476 : vector<16x32xf32>
    %478 = vector.broadcast %445 : vector<16x1xf32> to vector<16x32xf32>
    %479 = arith.mulf %477, %478 : vector<16x32xf32>
    %480 = vector.broadcast %447 : vector<16x1xf32> to vector<16x32xf32>
    %481 = arith.addf %479, %480 : vector<16x32xf32>
    %cst_234 = arith.constant 0.000000e+00 : f32
    %482 = vector.broadcast %cst_234 : f32 to vector<16x32xf32>
    %483 = arith.maximumf %481, %482 : vector<16x32xf32>
    %484 = arith.truncf %483 : vector<16x32xf32> to vector<16x32xbf16>
    %cst_235 = arith.constant dense<0.000000e+00> : vector<4x32xf32>
    %485 = tpu.matmul %449, %484, %cst_235 {dimension_numbers = #tpu.dot_dimension_numbers<[1], [0], [0], [1], [0, 0, 1, 1], [], []>} : vector<4x16xbf16>, vector<16x32xbf16>, vector<4x32xf32> -> vector<4x32xf32>
    %cst_236 = arith.constant dense<0.000000e+00> : vector<4x32xf32>
    %486 = tpu.matmul %485, %2, %cst_236 {dimension_numbers = #tpu.dot_dimension_numbers<[1], [0], [0], [1], [0, 0, 1, 1], [], []>} : vector<4x32xf32>, vector<32x32xf32>, vector<4x32xf32> -> vector<4x32xf32>
    %cst_237 = arith.constant 3.125000e-02 : f32
    %487 = vector.broadcast %cst_237 : f32 to vector<4x32xf32>
    %488 = arith.mulf %486, %487 : vector<4x32xf32>
    %489 = arith.mulf %485, %485 : vector<4x32xf32>
    %cst_238 = arith.constant dense<0.000000e+00> : vector<4x32xf32>
    %490 = tpu.matmul %489, %2, %cst_238 {dimension_numbers = #tpu.dot_dimension_numbers<[1], [0], [0], [1], [0, 0, 1, 1], [], []>} : vector<4x32xf32>, vector<32x32xf32>, vector<4x32xf32> -> vector<4x32xf32>
    %cst_239 = arith.constant 3.125000e-02 : f32
    %491 = vector.broadcast %cst_239 : f32 to vector<4x32xf32>
    %492 = arith.mulf %490, %491 : vector<4x32xf32>
    %493 = arith.mulf %488, %488 : vector<4x32xf32>
    %494 = arith.subf %492, %493 : vector<4x32xf32>
    %cst_240 = arith.constant 0.000000e+00 : f32
    %495 = vector.broadcast %cst_240 : f32 to vector<4x32xf32>
    %496 = arith.maximumf %494, %495 : vector<4x32xf32>
    %497 = arith.subf %485, %488 : vector<4x32xf32>
    %cst_241 = arith.constant 9.99999974E-6 : f32
    %498 = vector.broadcast %cst_241 : f32 to vector<4x32xf32>
    %499 = arith.addf %496, %498 : vector<4x32xf32>
    %500 = math.rsqrt %499 : vector<4x32xf32>
    %501 = arith.mulf %497, %500 : vector<4x32xf32>
    %502 = vector.broadcast %451 : vector<4x1xf32> to vector<4x32xf32>
    %503 = arith.mulf %501, %502 : vector<4x32xf32>
    %504 = vector.broadcast %453 : vector<4x1xf32> to vector<4x32xf32>
    %505 = arith.addf %503, %504 : vector<4x32xf32>
    %cst_242 = arith.constant 0.000000e+00 : f32
    %506 = vector.broadcast %cst_242 : f32 to vector<4x32xf32>
    %507 = arith.maximumf %505, %506 : vector<4x32xf32>
    %508 = arith.truncf %507 : vector<4x32xf32> to vector<4x32xbf16>
    %509 = vector.extract_strided_slice %36 {offsets = [0, 0, 0], sizes = [1, 32, 32], strides = [1, 1, 1]} : vector<9x32x32xbf16> to vector<1x32x32xbf16>
    %510 = vector.shape_cast %509 : vector<1x32x32xbf16> to vector<32x32xbf16>
    %cst_243 = arith.constant dense<0.000000e+00> : vector<4x32xf32>
    %511 = tpu.matmul %508, %510, %cst_243 {dimension_numbers = #tpu.dot_dimension_numbers<[1], [0], [0], [1], [0, 0, 1, 1], [], []>} : vector<4x32xbf16>, vector<32x32xbf16>, vector<4x32xf32> -> vector<4x32xf32>
    %512 = vector.extract_strided_slice %36 {offsets = [1, 0, 0], sizes = [1, 32, 32], strides = [1, 1, 1]} : vector<9x32x32xbf16> to vector<1x32x32xbf16>
    %513 = vector.shape_cast %512 : vector<1x32x32xbf16> to vector<32x32xbf16>
    %cst_244 = arith.constant dense<0.000000e+00> : vector<4x32xf32>
    %514 = tpu.matmul %508, %513, %cst_244 {dimension_numbers = #tpu.dot_dimension_numbers<[1], [0], [0], [1], [0, 0, 1, 1], [], []>} : vector<4x32xbf16>, vector<32x32xbf16>, vector<4x32xf32> -> vector<4x32xf32>
    %515 = vector.extract_strided_slice %36 {offsets = [2, 0, 0], sizes = [1, 32, 32], strides = [1, 1, 1]} : vector<9x32x32xbf16> to vector<1x32x32xbf16>
    %516 = vector.shape_cast %515 : vector<1x32x32xbf16> to vector<32x32xbf16>
    %cst_245 = arith.constant dense<0.000000e+00> : vector<4x32xf32>
    %517 = tpu.matmul %508, %516, %cst_245 {dimension_numbers = #tpu.dot_dimension_numbers<[1], [0], [0], [1], [0, 0, 1, 1], [], []>} : vector<4x32xbf16>, vector<32x32xbf16>, vector<4x32xf32> -> vector<4x32xf32>
    %518 = vector.extract_strided_slice %36 {offsets = [3, 0, 0], sizes = [1, 32, 32], strides = [1, 1, 1]} : vector<9x32x32xbf16> to vector<1x32x32xbf16>
    %519 = vector.shape_cast %518 : vector<1x32x32xbf16> to vector<32x32xbf16>
    %cst_246 = arith.constant dense<0.000000e+00> : vector<4x32xf32>
    %520 = tpu.matmul %508, %519, %cst_246 {dimension_numbers = #tpu.dot_dimension_numbers<[1], [0], [0], [1], [0, 0, 1, 1], [], []>} : vector<4x32xbf16>, vector<32x32xbf16>, vector<4x32xf32> -> vector<4x32xf32>
    %521 = vector.extract_strided_slice %36 {offsets = [4, 0, 0], sizes = [1, 32, 32], strides = [1, 1, 1]} : vector<9x32x32xbf16> to vector<1x32x32xbf16>
    %522 = vector.shape_cast %521 : vector<1x32x32xbf16> to vector<32x32xbf16>
    %cst_247 = arith.constant dense<0.000000e+00> : vector<4x32xf32>
    %523 = tpu.matmul %508, %522, %cst_247 {dimension_numbers = #tpu.dot_dimension_numbers<[1], [0], [0], [1], [0, 0, 1, 1], [], []>} : vector<4x32xbf16>, vector<32x32xbf16>, vector<4x32xf32> -> vector<4x32xf32>
    %524 = vector.extract_strided_slice %36 {offsets = [5, 0, 0], sizes = [1, 32, 32], strides = [1, 1, 1]} : vector<9x32x32xbf16> to vector<1x32x32xbf16>
    %525 = vector.shape_cast %524 : vector<1x32x32xbf16> to vector<32x32xbf16>
    %cst_248 = arith.constant dense<0.000000e+00> : vector<4x32xf32>
    %526 = tpu.matmul %508, %525, %cst_248 {dimension_numbers = #tpu.dot_dimension_numbers<[1], [0], [0], [1], [0, 0, 1, 1], [], []>} : vector<4x32xbf16>, vector<32x32xbf16>, vector<4x32xf32> -> vector<4x32xf32>
    %527 = vector.extract_strided_slice %36 {offsets = [6, 0, 0], sizes = [1, 32, 32], strides = [1, 1, 1]} : vector<9x32x32xbf16> to vector<1x32x32xbf16>
    %528 = vector.shape_cast %527 : vector<1x32x32xbf16> to vector<32x32xbf16>
    %cst_249 = arith.constant dense<0.000000e+00> : vector<4x32xf32>
    %529 = tpu.matmul %508, %528, %cst_249 {dimension_numbers = #tpu.dot_dimension_numbers<[1], [0], [0], [1], [0, 0, 1, 1], [], []>} : vector<4x32xbf16>, vector<32x32xbf16>, vector<4x32xf32> -> vector<4x32xf32>
    %530 = vector.extract_strided_slice %36 {offsets = [7, 0, 0], sizes = [1, 32, 32], strides = [1, 1, 1]} : vector<9x32x32xbf16> to vector<1x32x32xbf16>
    %531 = vector.shape_cast %530 : vector<1x32x32xbf16> to vector<32x32xbf16>
    %cst_250 = arith.constant dense<0.000000e+00> : vector<4x32xf32>
    %532 = tpu.matmul %508, %531, %cst_250 {dimension_numbers = #tpu.dot_dimension_numbers<[1], [0], [0], [1], [0, 0, 1, 1], [], []>} : vector<4x32xbf16>, vector<32x32xbf16>, vector<4x32xf32> -> vector<4x32xf32>
    %533 = vector.extract_strided_slice %36 {offsets = [8, 0, 0], sizes = [1, 32, 32], strides = [1, 1, 1]} : vector<9x32x32xbf16> to vector<1x32x32xbf16>
    %534 = vector.shape_cast %533 : vector<1x32x32xbf16> to vector<32x32xbf16>
    %cst_251 = arith.constant dense<0.000000e+00> : vector<4x32xf32>
    %535 = tpu.matmul %508, %534, %cst_251 {dimension_numbers = #tpu.dot_dimension_numbers<[1], [0], [0], [1], [0, 0, 1, 1], [], []>} : vector<4x32xbf16>, vector<32x32xbf16>, vector<4x32xf32> -> vector<4x32xf32>
    %536 = tpu.concatenate %511, %514, %517, %520, %523, %526, %529, %532, %535 in 0 : vector<4x32xf32>, vector<4x32xf32>, vector<4x32xf32>, vector<4x32xf32>, vector<4x32xf32>, vector<4x32xf32>, vector<4x32xf32>, vector<4x32xf32>, vector<4x32xf32> -> vector<36x32xf32>
    %537 = arith.truncf %536 : vector<36x32xf32> to vector<36x32xbf16>
    %cst_252 = arith.constant dense<0.000000e+00> : vector<4x32xf32>
    %538 = tpu.matmul %455, %537, %cst_252 {dimension_numbers = #tpu.dot_dimension_numbers<[1], [0], [0], [1], [0, 0, 1, 1], [], []>} : vector<4x36xbf16>, vector<36x32xbf16>, vector<4x32xf32> -> vector<4x32xf32>
    %cst_253 = arith.constant dense<0.000000e+00> : vector<4x32xf32>
    %539 = tpu.matmul %538, %2, %cst_253 {dimension_numbers = #tpu.dot_dimension_numbers<[1], [0], [0], [1], [0, 0, 1, 1], [], []>} : vector<4x32xf32>, vector<32x32xf32>, vector<4x32xf32> -> vector<4x32xf32>
    %cst_254 = arith.constant 3.125000e-02 : f32
    %540 = vector.broadcast %cst_254 : f32 to vector<4x32xf32>
    %541 = arith.mulf %539, %540 : vector<4x32xf32>
    %542 = arith.mulf %538, %538 : vector<4x32xf32>
    %cst_255 = arith.constant dense<0.000000e+00> : vector<4x32xf32>
    %543 = tpu.matmul %542, %2, %cst_255 {dimension_numbers = #tpu.dot_dimension_numbers<[1], [0], [0], [1], [0, 0, 1, 1], [], []>} : vector<4x32xf32>, vector<32x32xf32>, vector<4x32xf32> -> vector<4x32xf32>
    %cst_256 = arith.constant 3.125000e-02 : f32
    %544 = vector.broadcast %cst_256 : f32 to vector<4x32xf32>
    %545 = arith.mulf %543, %544 : vector<4x32xf32>
    %546 = arith.mulf %541, %541 : vector<4x32xf32>
    %547 = arith.subf %545, %546 : vector<4x32xf32>
    %cst_257 = arith.constant 0.000000e+00 : f32
    %548 = vector.broadcast %cst_257 : f32 to vector<4x32xf32>
    %549 = arith.maximumf %547, %548 : vector<4x32xf32>
    %550 = arith.subf %538, %541 : vector<4x32xf32>
    %cst_258 = arith.constant 9.99999974E-6 : f32
    %551 = vector.broadcast %cst_258 : f32 to vector<4x32xf32>
    %552 = arith.addf %549, %551 : vector<4x32xf32>
    %553 = math.rsqrt %552 : vector<4x32xf32>
    %554 = arith.mulf %550, %553 : vector<4x32xf32>
    %555 = vector.broadcast %457 : vector<4x1xf32> to vector<4x32xf32>
    %556 = arith.mulf %554, %555 : vector<4x32xf32>
    %557 = vector.broadcast %459 : vector<4x1xf32> to vector<4x32xf32>
    %558 = arith.addf %556, %557 : vector<4x32xf32>
    %cst_259 = arith.constant 0.000000e+00 : f32
    %559 = vector.broadcast %cst_259 : f32 to vector<4x32xf32>
    %560 = arith.maximumf %558, %559 : vector<4x32xf32>
    %561 = arith.truncf %560 : vector<4x32xf32> to vector<4x32xbf16>
    %cst_260 = arith.constant dense<0.000000e+00> : vector<16x32xf32>
    %562 = tpu.matmul %461, %561, %cst_260 {dimension_numbers = #tpu.dot_dimension_numbers<[1], [0], [0], [1], [0, 0, 1, 1], [], []>} : vector<16x4xbf16>, vector<4x32xbf16>, vector<16x32xf32> -> vector<16x32xf32>
    %563 = arith.addf %562, %443 : vector<16x32xf32>
    %c4 = arith.constant 4 : index
    %c0_261 = arith.constant 0 : index
    %c0_262 = arith.constant 0 : index
    %564 = vector.load %arg2[%c4, %c0_261, %c0_262] : memref<6x16x1xf32, #tpu.memory_space<vmem>>, vector<1x16x1xf32>
    %565 = vector.shape_cast %564 : vector<1x16x1xf32> to vector<16x1xf32>
    %c4_263 = arith.constant 4 : index
    %c0_264 = arith.constant 0 : index
    %c0_265 = arith.constant 0 : index
    %566 = vector.load %arg3[%c4_263, %c0_264, %c0_265] : memref<6x16x1xf32, #tpu.memory_space<vmem>>, vector<1x16x1xf32>
    %567 = vector.shape_cast %566 : vector<1x16x1xf32> to vector<16x1xf32>
    %c4_266 = arith.constant 4 : index
    %c0_267 = arith.constant 0 : index
    %c0_268 = arith.constant 0 : index
    %568 = vector.load %arg4[%c4_266, %c0_267, %c0_268] : memref<6x4x16xbf16, #tpu.memory_space<vmem>>, vector<1x4x16xbf16>
    %569 = vector.shape_cast %568 : vector<1x4x16xbf16> to vector<4x16xbf16>
    %c4_269 = arith.constant 4 : index
    %c0_270 = arith.constant 0 : index
    %c0_271 = arith.constant 0 : index
    %570 = vector.load %arg5[%c4_269, %c0_270, %c0_271] : memref<6x4x1xf32, #tpu.memory_space<vmem>>, vector<1x4x1xf32>
    %571 = vector.shape_cast %570 : vector<1x4x1xf32> to vector<4x1xf32>
    %c4_272 = arith.constant 4 : index
    %c0_273 = arith.constant 0 : index
    %c0_274 = arith.constant 0 : index
    %572 = vector.load %arg6[%c4_272, %c0_273, %c0_274] : memref<6x4x1xf32, #tpu.memory_space<vmem>>, vector<1x4x1xf32>
    %573 = vector.shape_cast %572 : vector<1x4x1xf32> to vector<4x1xf32>
    %c4_275 = arith.constant 4 : index
    %c0_276 = arith.constant 0 : index
    %c0_277 = arith.constant 0 : index
    %574 = vector.load %arg7[%c4_275, %c0_276, %c0_277] : memref<6x4x36xbf16, #tpu.memory_space<vmem>>, vector<1x4x36xbf16>
    %575 = vector.shape_cast %574 : vector<1x4x36xbf16> to vector<4x36xbf16>
    %c4_278 = arith.constant 4 : index
    %c0_279 = arith.constant 0 : index
    %c0_280 = arith.constant 0 : index
    %576 = vector.load %arg8[%c4_278, %c0_279, %c0_280] : memref<6x4x1xf32, #tpu.memory_space<vmem>>, vector<1x4x1xf32>
    %577 = vector.shape_cast %576 : vector<1x4x1xf32> to vector<4x1xf32>
    %c4_281 = arith.constant 4 : index
    %c0_282 = arith.constant 0 : index
    %c0_283 = arith.constant 0 : index
    %578 = vector.load %arg9[%c4_281, %c0_282, %c0_283] : memref<6x4x1xf32, #tpu.memory_space<vmem>>, vector<1x4x1xf32>
    %579 = vector.shape_cast %578 : vector<1x4x1xf32> to vector<4x1xf32>
    %c4_284 = arith.constant 4 : index
    %c0_285 = arith.constant 0 : index
    %c0_286 = arith.constant 0 : index
    %580 = vector.load %arg10[%c4_284, %c0_285, %c0_286] : memref<6x16x4xbf16, #tpu.memory_space<vmem>>, vector<1x16x4xbf16>
    %581 = vector.shape_cast %580 : vector<1x16x4xbf16> to vector<16x4xbf16>
    %cst_287 = arith.constant dense<0.000000e+00> : vector<16x32xf32>
    %582 = tpu.matmul %563, %2, %cst_287 {dimension_numbers = #tpu.dot_dimension_numbers<[1], [0], [0], [1], [0, 0, 1, 1], [], []>} : vector<16x32xf32>, vector<32x32xf32>, vector<16x32xf32> -> vector<16x32xf32>
    %cst_288 = arith.constant 3.125000e-02 : f32
    %583 = vector.broadcast %cst_288 : f32 to vector<16x32xf32>
    %584 = arith.mulf %582, %583 : vector<16x32xf32>
    %585 = arith.mulf %563, %563 : vector<16x32xf32>
    %cst_289 = arith.constant dense<0.000000e+00> : vector<16x32xf32>
    %586 = tpu.matmul %585, %2, %cst_289 {dimension_numbers = #tpu.dot_dimension_numbers<[1], [0], [0], [1], [0, 0, 1, 1], [], []>} : vector<16x32xf32>, vector<32x32xf32>, vector<16x32xf32> -> vector<16x32xf32>
    %cst_290 = arith.constant 3.125000e-02 : f32
    %587 = vector.broadcast %cst_290 : f32 to vector<16x32xf32>
    %588 = arith.mulf %586, %587 : vector<16x32xf32>
    %589 = arith.mulf %584, %584 : vector<16x32xf32>
    %590 = arith.subf %588, %589 : vector<16x32xf32>
    %cst_291 = arith.constant 0.000000e+00 : f32
    %591 = vector.broadcast %cst_291 : f32 to vector<16x32xf32>
    %592 = arith.maximumf %590, %591 : vector<16x32xf32>
    %593 = arith.subf %563, %584 : vector<16x32xf32>
    %cst_292 = arith.constant 9.99999974E-6 : f32
    %594 = vector.broadcast %cst_292 : f32 to vector<16x32xf32>
    %595 = arith.addf %592, %594 : vector<16x32xf32>
    %596 = math.rsqrt %595 : vector<16x32xf32>
    %597 = arith.mulf %593, %596 : vector<16x32xf32>
    %598 = vector.broadcast %565 : vector<16x1xf32> to vector<16x32xf32>
    %599 = arith.mulf %597, %598 : vector<16x32xf32>
    %600 = vector.broadcast %567 : vector<16x1xf32> to vector<16x32xf32>
    %601 = arith.addf %599, %600 : vector<16x32xf32>
    %cst_293 = arith.constant 0.000000e+00 : f32
    %602 = vector.broadcast %cst_293 : f32 to vector<16x32xf32>
    %603 = arith.maximumf %601, %602 : vector<16x32xf32>
    %604 = arith.truncf %603 : vector<16x32xf32> to vector<16x32xbf16>
    %cst_294 = arith.constant dense<0.000000e+00> : vector<4x32xf32>
    %605 = tpu.matmul %569, %604, %cst_294 {dimension_numbers = #tpu.dot_dimension_numbers<[1], [0], [0], [1], [0, 0, 1, 1], [], []>} : vector<4x16xbf16>, vector<16x32xbf16>, vector<4x32xf32> -> vector<4x32xf32>
    %cst_295 = arith.constant dense<0.000000e+00> : vector<4x32xf32>
    %606 = tpu.matmul %605, %2, %cst_295 {dimension_numbers = #tpu.dot_dimension_numbers<[1], [0], [0], [1], [0, 0, 1, 1], [], []>} : vector<4x32xf32>, vector<32x32xf32>, vector<4x32xf32> -> vector<4x32xf32>
    %cst_296 = arith.constant 3.125000e-02 : f32
    %607 = vector.broadcast %cst_296 : f32 to vector<4x32xf32>
    %608 = arith.mulf %606, %607 : vector<4x32xf32>
    %609 = arith.mulf %605, %605 : vector<4x32xf32>
    %cst_297 = arith.constant dense<0.000000e+00> : vector<4x32xf32>
    %610 = tpu.matmul %609, %2, %cst_297 {dimension_numbers = #tpu.dot_dimension_numbers<[1], [0], [0], [1], [0, 0, 1, 1], [], []>} : vector<4x32xf32>, vector<32x32xf32>, vector<4x32xf32> -> vector<4x32xf32>
    %cst_298 = arith.constant 3.125000e-02 : f32
    %611 = vector.broadcast %cst_298 : f32 to vector<4x32xf32>
    %612 = arith.mulf %610, %611 : vector<4x32xf32>
    %613 = arith.mulf %608, %608 : vector<4x32xf32>
    %614 = arith.subf %612, %613 : vector<4x32xf32>
    %cst_299 = arith.constant 0.000000e+00 : f32
    %615 = vector.broadcast %cst_299 : f32 to vector<4x32xf32>
    %616 = arith.maximumf %614, %615 : vector<4x32xf32>
    %617 = arith.subf %605, %608 : vector<4x32xf32>
    %cst_300 = arith.constant 9.99999974E-6 : f32
    %618 = vector.broadcast %cst_300 : f32 to vector<4x32xf32>
    %619 = arith.addf %616, %618 : vector<4x32xf32>
    %620 = math.rsqrt %619 : vector<4x32xf32>
    %621 = arith.mulf %617, %620 : vector<4x32xf32>
    %622 = vector.broadcast %571 : vector<4x1xf32> to vector<4x32xf32>
    %623 = arith.mulf %621, %622 : vector<4x32xf32>
    %624 = vector.broadcast %573 : vector<4x1xf32> to vector<4x32xf32>
    %625 = arith.addf %623, %624 : vector<4x32xf32>
    %cst_301 = arith.constant 0.000000e+00 : f32
    %626 = vector.broadcast %cst_301 : f32 to vector<4x32xf32>
    %627 = arith.maximumf %625, %626 : vector<4x32xf32>
    %628 = arith.truncf %627 : vector<4x32xf32> to vector<4x32xbf16>
    %629 = vector.extract_strided_slice %36 {offsets = [0, 0, 0], sizes = [1, 32, 32], strides = [1, 1, 1]} : vector<9x32x32xbf16> to vector<1x32x32xbf16>
    %630 = vector.shape_cast %629 : vector<1x32x32xbf16> to vector<32x32xbf16>
    %cst_302 = arith.constant dense<0.000000e+00> : vector<4x32xf32>
    %631 = tpu.matmul %628, %630, %cst_302 {dimension_numbers = #tpu.dot_dimension_numbers<[1], [0], [0], [1], [0, 0, 1, 1], [], []>} : vector<4x32xbf16>, vector<32x32xbf16>, vector<4x32xf32> -> vector<4x32xf32>
    %632 = vector.extract_strided_slice %36 {offsets = [1, 0, 0], sizes = [1, 32, 32], strides = [1, 1, 1]} : vector<9x32x32xbf16> to vector<1x32x32xbf16>
    %633 = vector.shape_cast %632 : vector<1x32x32xbf16> to vector<32x32xbf16>
    %cst_303 = arith.constant dense<0.000000e+00> : vector<4x32xf32>
    %634 = tpu.matmul %628, %633, %cst_303 {dimension_numbers = #tpu.dot_dimension_numbers<[1], [0], [0], [1], [0, 0, 1, 1], [], []>} : vector<4x32xbf16>, vector<32x32xbf16>, vector<4x32xf32> -> vector<4x32xf32>
    %635 = vector.extract_strided_slice %36 {offsets = [2, 0, 0], sizes = [1, 32, 32], strides = [1, 1, 1]} : vector<9x32x32xbf16> to vector<1x32x32xbf16>
    %636 = vector.shape_cast %635 : vector<1x32x32xbf16> to vector<32x32xbf16>
    %cst_304 = arith.constant dense<0.000000e+00> : vector<4x32xf32>
    %637 = tpu.matmul %628, %636, %cst_304 {dimension_numbers = #tpu.dot_dimension_numbers<[1], [0], [0], [1], [0, 0, 1, 1], [], []>} : vector<4x32xbf16>, vector<32x32xbf16>, vector<4x32xf32> -> vector<4x32xf32>
    %638 = vector.extract_strided_slice %36 {offsets = [3, 0, 0], sizes = [1, 32, 32], strides = [1, 1, 1]} : vector<9x32x32xbf16> to vector<1x32x32xbf16>
    %639 = vector.shape_cast %638 : vector<1x32x32xbf16> to vector<32x32xbf16>
    %cst_305 = arith.constant dense<0.000000e+00> : vector<4x32xf32>
    %640 = tpu.matmul %628, %639, %cst_305 {dimension_numbers = #tpu.dot_dimension_numbers<[1], [0], [0], [1], [0, 0, 1, 1], [], []>} : vector<4x32xbf16>, vector<32x32xbf16>, vector<4x32xf32> -> vector<4x32xf32>
    %641 = vector.extract_strided_slice %36 {offsets = [4, 0, 0], sizes = [1, 32, 32], strides = [1, 1, 1]} : vector<9x32x32xbf16> to vector<1x32x32xbf16>
    %642 = vector.shape_cast %641 : vector<1x32x32xbf16> to vector<32x32xbf16>
    %cst_306 = arith.constant dense<0.000000e+00> : vector<4x32xf32>
    %643 = tpu.matmul %628, %642, %cst_306 {dimension_numbers = #tpu.dot_dimension_numbers<[1], [0], [0], [1], [0, 0, 1, 1], [], []>} : vector<4x32xbf16>, vector<32x32xbf16>, vector<4x32xf32> -> vector<4x32xf32>
    %644 = vector.extract_strided_slice %36 {offsets = [5, 0, 0], sizes = [1, 32, 32], strides = [1, 1, 1]} : vector<9x32x32xbf16> to vector<1x32x32xbf16>
    %645 = vector.shape_cast %644 : vector<1x32x32xbf16> to vector<32x32xbf16>
    %cst_307 = arith.constant dense<0.000000e+00> : vector<4x32xf32>
    %646 = tpu.matmul %628, %645, %cst_307 {dimension_numbers = #tpu.dot_dimension_numbers<[1], [0], [0], [1], [0, 0, 1, 1], [], []>} : vector<4x32xbf16>, vector<32x32xbf16>, vector<4x32xf32> -> vector<4x32xf32>
    %647 = vector.extract_strided_slice %36 {offsets = [6, 0, 0], sizes = [1, 32, 32], strides = [1, 1, 1]} : vector<9x32x32xbf16> to vector<1x32x32xbf16>
    %648 = vector.shape_cast %647 : vector<1x32x32xbf16> to vector<32x32xbf16>
    %cst_308 = arith.constant dense<0.000000e+00> : vector<4x32xf32>
    %649 = tpu.matmul %628, %648, %cst_308 {dimension_numbers = #tpu.dot_dimension_numbers<[1], [0], [0], [1], [0, 0, 1, 1], [], []>} : vector<4x32xbf16>, vector<32x32xbf16>, vector<4x32xf32> -> vector<4x32xf32>
    %650 = vector.extract_strided_slice %36 {offsets = [7, 0, 0], sizes = [1, 32, 32], strides = [1, 1, 1]} : vector<9x32x32xbf16> to vector<1x32x32xbf16>
    %651 = vector.shape_cast %650 : vector<1x32x32xbf16> to vector<32x32xbf16>
    %cst_309 = arith.constant dense<0.000000e+00> : vector<4x32xf32>
    %652 = tpu.matmul %628, %651, %cst_309 {dimension_numbers = #tpu.dot_dimension_numbers<[1], [0], [0], [1], [0, 0, 1, 1], [], []>} : vector<4x32xbf16>, vector<32x32xbf16>, vector<4x32xf32> -> vector<4x32xf32>
    %653 = vector.extract_strided_slice %36 {offsets = [8, 0, 0], sizes = [1, 32, 32], strides = [1, 1, 1]} : vector<9x32x32xbf16> to vector<1x32x32xbf16>
    %654 = vector.shape_cast %653 : vector<1x32x32xbf16> to vector<32x32xbf16>
    %cst_310 = arith.constant dense<0.000000e+00> : vector<4x32xf32>
    %655 = tpu.matmul %628, %654, %cst_310 {dimension_numbers = #tpu.dot_dimension_numbers<[1], [0], [0], [1], [0, 0, 1, 1], [], []>} : vector<4x32xbf16>, vector<32x32xbf16>, vector<4x32xf32> -> vector<4x32xf32>
    %656 = tpu.concatenate %631, %634, %637, %640, %643, %646, %649, %652, %655 in 0 : vector<4x32xf32>, vector<4x32xf32>, vector<4x32xf32>, vector<4x32xf32>, vector<4x32xf32>, vector<4x32xf32>, vector<4x32xf32>, vector<4x32xf32>, vector<4x32xf32> -> vector<36x32xf32>
    %657 = arith.truncf %656 : vector<36x32xf32> to vector<36x32xbf16>
    %cst_311 = arith.constant dense<0.000000e+00> : vector<4x32xf32>
    %658 = tpu.matmul %575, %657, %cst_311 {dimension_numbers = #tpu.dot_dimension_numbers<[1], [0], [0], [1], [0, 0, 1, 1], [], []>} : vector<4x36xbf16>, vector<36x32xbf16>, vector<4x32xf32> -> vector<4x32xf32>
    %cst_312 = arith.constant dense<0.000000e+00> : vector<4x32xf32>
    %659 = tpu.matmul %658, %2, %cst_312 {dimension_numbers = #tpu.dot_dimension_numbers<[1], [0], [0], [1], [0, 0, 1, 1], [], []>} : vector<4x32xf32>, vector<32x32xf32>, vector<4x32xf32> -> vector<4x32xf32>
    %cst_313 = arith.constant 3.125000e-02 : f32
    %660 = vector.broadcast %cst_313 : f32 to vector<4x32xf32>
    %661 = arith.mulf %659, %660 : vector<4x32xf32>
    %662 = arith.mulf %658, %658 : vector<4x32xf32>
    %cst_314 = arith.constant dense<0.000000e+00> : vector<4x32xf32>
    %663 = tpu.matmul %662, %2, %cst_314 {dimension_numbers = #tpu.dot_dimension_numbers<[1], [0], [0], [1], [0, 0, 1, 1], [], []>} : vector<4x32xf32>, vector<32x32xf32>, vector<4x32xf32> -> vector<4x32xf32>
    %cst_315 = arith.constant 3.125000e-02 : f32
    %664 = vector.broadcast %cst_315 : f32 to vector<4x32xf32>
    %665 = arith.mulf %663, %664 : vector<4x32xf32>
    %666 = arith.mulf %661, %661 : vector<4x32xf32>
    %667 = arith.subf %665, %666 : vector<4x32xf32>
    %cst_316 = arith.constant 0.000000e+00 : f32
    %668 = vector.broadcast %cst_316 : f32 to vector<4x32xf32>
    %669 = arith.maximumf %667, %668 : vector<4x32xf32>
    %670 = arith.subf %658, %661 : vector<4x32xf32>
    %cst_317 = arith.constant 9.99999974E-6 : f32
    %671 = vector.broadcast %cst_317 : f32 to vector<4x32xf32>
    %672 = arith.addf %669, %671 : vector<4x32xf32>
    %673 = math.rsqrt %672 : vector<4x32xf32>
    %674 = arith.mulf %670, %673 : vector<4x32xf32>
    %675 = vector.broadcast %577 : vector<4x1xf32> to vector<4x32xf32>
    %676 = arith.mulf %674, %675 : vector<4x32xf32>
    %677 = vector.broadcast %579 : vector<4x1xf32> to vector<4x32xf32>
    %678 = arith.addf %676, %677 : vector<4x32xf32>
    %cst_318 = arith.constant 0.000000e+00 : f32
    %679 = vector.broadcast %cst_318 : f32 to vector<4x32xf32>
    %680 = arith.maximumf %678, %679 : vector<4x32xf32>
    %681 = arith.truncf %680 : vector<4x32xf32> to vector<4x32xbf16>
    %cst_319 = arith.constant dense<0.000000e+00> : vector<16x32xf32>
    %682 = tpu.matmul %581, %681, %cst_319 {dimension_numbers = #tpu.dot_dimension_numbers<[1], [0], [0], [1], [0, 0, 1, 1], [], []>} : vector<16x4xbf16>, vector<4x32xbf16>, vector<16x32xf32> -> vector<16x32xf32>
    %683 = arith.addf %682, %563 : vector<16x32xf32>
    %684 = arith.truncf %683 : vector<16x32xf32> to vector<16x32xbf16>
    %c0_320 = arith.constant 0 : index
    %c0_321 = arith.constant 0 : index
    %685 = vector.load %arg20[%c0_320, %c0_321] : memref<32x128xbf16, #tpu.memory_space<vmem>>, vector<32x128xbf16>
    %cst_322 = arith.constant dense<0.000000e+00> : vector<16x128xf32>
    %686 = tpu.matmul %684, %685, %cst_322 {dimension_numbers = #tpu.dot_dimension_numbers<[1], [0], [0], [1], [0, 0, 1, 1], [], []>} : vector<16x32xbf16>, vector<32x128xbf16>, vector<16x128xf32> -> vector<16x128xf32>
    %687 = arith.addf %686, %360 : vector<16x128xf32>
    %c0_323 = arith.constant 0 : index
    %c0_324 = arith.constant 0 : index
    %688 = vector.load %arg11[%c0_323, %c0_324] : memref<16x1xf32, #tpu.memory_space<vmem>>, vector<16x1xf32>
    %c0_325 = arith.constant 0 : index
    %c0_326 = arith.constant 0 : index
    %689 = vector.load %arg12[%c0_325, %c0_326] : memref<16x1xf32, #tpu.memory_space<vmem>>, vector<16x1xf32>
    %cst_327 = arith.constant dense<0.000000e+00> : vector<16x128xf32>
    %690 = tpu.matmul %687, %1, %cst_327 {dimension_numbers = #tpu.dot_dimension_numbers<[1], [0], [0], [1], [0, 0, 1, 1], [], []>} : vector<16x128xf32>, vector<128x128xf32>, vector<16x128xf32> -> vector<16x128xf32>
    %cst_328 = arith.constant 7.812500e-03 : f32
    %691 = vector.broadcast %cst_328 : f32 to vector<16x128xf32>
    %692 = arith.mulf %690, %691 : vector<16x128xf32>
    %693 = arith.mulf %687, %687 : vector<16x128xf32>
    %cst_329 = arith.constant dense<0.000000e+00> : vector<16x128xf32>
    %694 = tpu.matmul %693, %1, %cst_329 {dimension_numbers = #tpu.dot_dimension_numbers<[1], [0], [0], [1], [0, 0, 1, 1], [], []>} : vector<16x128xf32>, vector<128x128xf32>, vector<16x128xf32> -> vector<16x128xf32>
    %cst_330 = arith.constant 7.812500e-03 : f32
    %695 = vector.broadcast %cst_330 : f32 to vector<16x128xf32>
    %696 = arith.mulf %694, %695 : vector<16x128xf32>
    %697 = arith.mulf %692, %692 : vector<16x128xf32>
    %698 = arith.subf %696, %697 : vector<16x128xf32>
    %cst_331 = arith.constant 0.000000e+00 : f32
    %699 = vector.broadcast %cst_331 : f32 to vector<16x128xf32>
    %700 = arith.maximumf %698, %699 : vector<16x128xf32>
    %701 = arith.subf %687, %692 : vector<16x128xf32>
    %cst_332 = arith.constant 9.99999974E-6 : f32
    %702 = vector.broadcast %cst_332 : f32 to vector<16x128xf32>
    %703 = arith.addf %700, %702 : vector<16x128xf32>
    %704 = math.rsqrt %703 : vector<16x128xf32>
    %705 = arith.mulf %701, %704 : vector<16x128xf32>
    %706 = vector.broadcast %688 : vector<16x1xf32> to vector<16x128xf32>
    %707 = arith.mulf %705, %706 : vector<16x128xf32>
    %708 = vector.broadcast %689 : vector<16x1xf32> to vector<16x128xf32>
    %709 = arith.addf %707, %708 : vector<16x128xf32>
    %cst_333 = arith.constant 0.000000e+00 : f32
    %710 = vector.broadcast %cst_333 : f32 to vector<16x128xf32>
    %711 = arith.maximumf %709, %710 : vector<16x128xf32>
    %c0_334 = arith.constant 0 : index
    %c0_335 = arith.constant 0 : index
    %712 = vector.load %arg13[%c0_334, %c0_335] : memref<16x16xbf16, #tpu.memory_space<vmem>>, vector<16x16xbf16>
    %713 = arith.truncf %711 : vector<16x128xf32> to vector<16x128xbf16>
    %cst_336 = arith.constant dense<0.000000e+00> : vector<16x128xf32>
    %714 = tpu.matmul %712, %713, %cst_336 {dimension_numbers = #tpu.dot_dimension_numbers<[1], [0], [0], [1], [0, 0, 1, 1], [], []>} : vector<16x16xbf16>, vector<16x128xbf16>, vector<16x128xf32> -> vector<16x128xf32>
    %c0_337 = arith.constant 0 : index
    %c0_338 = arith.constant 0 : index
    %715 = vector.load %arg14[%c0_337, %c0_338] : memref<16x1xf32, #tpu.memory_space<vmem>>, vector<16x1xf32>
    %c0_339 = arith.constant 0 : index
    %c0_340 = arith.constant 0 : index
    %716 = vector.load %arg15[%c0_339, %c0_340] : memref<16x1xf32, #tpu.memory_space<vmem>>, vector<16x1xf32>
    %cst_341 = arith.constant dense<0.000000e+00> : vector<16x128xf32>
    %717 = tpu.matmul %714, %1, %cst_341 {dimension_numbers = #tpu.dot_dimension_numbers<[1], [0], [0], [1], [0, 0, 1, 1], [], []>} : vector<16x128xf32>, vector<128x128xf32>, vector<16x128xf32> -> vector<16x128xf32>
    %cst_342 = arith.constant 7.812500e-03 : f32
    %718 = vector.broadcast %cst_342 : f32 to vector<16x128xf32>
    %719 = arith.mulf %717, %718 : vector<16x128xf32>
    %720 = arith.mulf %714, %714 : vector<16x128xf32>
    %cst_343 = arith.constant dense<0.000000e+00> : vector<16x128xf32>
    %721 = tpu.matmul %720, %1, %cst_343 {dimension_numbers = #tpu.dot_dimension_numbers<[1], [0], [0], [1], [0, 0, 1, 1], [], []>} : vector<16x128xf32>, vector<128x128xf32>, vector<16x128xf32> -> vector<16x128xf32>
    %cst_344 = arith.constant 7.812500e-03 : f32
    %722 = vector.broadcast %cst_344 : f32 to vector<16x128xf32>
    %723 = arith.mulf %721, %722 : vector<16x128xf32>
    %724 = arith.mulf %719, %719 : vector<16x128xf32>
    %725 = arith.subf %723, %724 : vector<16x128xf32>
    %cst_345 = arith.constant 0.000000e+00 : f32
    %726 = vector.broadcast %cst_345 : f32 to vector<16x128xf32>
    %727 = arith.maximumf %725, %726 : vector<16x128xf32>
    %728 = arith.subf %714, %719 : vector<16x128xf32>
    %cst_346 = arith.constant 9.99999974E-6 : f32
    %729 = vector.broadcast %cst_346 : f32 to vector<16x128xf32>
    %730 = arith.addf %727, %729 : vector<16x128xf32>
    %731 = math.rsqrt %730 : vector<16x128xf32>
    %732 = arith.mulf %728, %731 : vector<16x128xf32>
    %733 = vector.broadcast %715 : vector<16x1xf32> to vector<16x128xf32>
    %734 = arith.mulf %732, %733 : vector<16x128xf32>
    %735 = vector.broadcast %716 : vector<16x1xf32> to vector<16x128xf32>
    %736 = arith.addf %734, %735 : vector<16x128xf32>
    %cst_347 = arith.constant 0.000000e+00 : f32
    %737 = vector.broadcast %cst_347 : f32 to vector<16x128xf32>
    %738 = arith.maximumf %736, %737 : vector<16x128xf32>
    %c0_348 = arith.constant 0 : index
    %c0_349 = arith.constant 0 : index
    %739 = vector.load %arg16[%c0_348, %c0_349] : memref<16x16xbf16, #tpu.memory_space<vmem>>, vector<16x16xbf16>
    %740 = arith.truncf %738 : vector<16x128xf32> to vector<16x128xbf16>
    %cst_350 = arith.constant dense<0.000000e+00> : vector<16x128xf32>
    %741 = tpu.matmul %739, %740, %cst_350 {dimension_numbers = #tpu.dot_dimension_numbers<[1], [0], [0], [1], [0, 0, 1, 1], [], []>} : vector<16x16xbf16>, vector<16x128xbf16>, vector<16x128xf32> -> vector<16x128xf32>
    %cst_351 = arith.constant 5.000000e-01 : f32
    %742 = vector.broadcast %cst_351 : f32 to vector<16x128xf32>
    %743 = arith.mulf %742, %741 : vector<16x128xf32>
    %744 = math.tanh %743 : vector<16x128xf32>
    %cst_352 = arith.constant 1.000000e+00 : f32
    %745 = vector.broadcast %cst_352 : f32 to vector<16x128xf32>
    %746 = arith.addf %744, %745 : vector<16x128xf32>
    %cst_353 = arith.constant 5.000000e-01 : f32
    %747 = vector.broadcast %cst_353 : f32 to vector<16x128xf32>
    %748 = arith.mulf %747, %746 : vector<16x128xf32>
    %cst_354 = arith.constant 1.000000e+00 : f32
    %749 = vector.broadcast %cst_354 : f32 to vector<16x128xf32>
    %750 = arith.addf %749, %748 : vector<16x128xf32>
    %751 = arith.mulf %750, %360 : vector<16x128xf32>
    %c5 = arith.constant 5 : index
    %c0_355 = arith.constant 0 : index
    %c0_356 = arith.constant 0 : index
    %752 = vector.load %arg2[%c5, %c0_355, %c0_356] : memref<6x16x1xf32, #tpu.memory_space<vmem>>, vector<1x16x1xf32>
    %753 = vector.shape_cast %752 : vector<1x16x1xf32> to vector<16x1xf32>
    %c5_357 = arith.constant 5 : index
    %c0_358 = arith.constant 0 : index
    %c0_359 = arith.constant 0 : index
    %754 = vector.load %arg3[%c5_357, %c0_358, %c0_359] : memref<6x16x1xf32, #tpu.memory_space<vmem>>, vector<1x16x1xf32>
    %755 = vector.shape_cast %754 : vector<1x16x1xf32> to vector<16x1xf32>
    %c5_360 = arith.constant 5 : index
    %c0_361 = arith.constant 0 : index
    %c0_362 = arith.constant 0 : index
    %756 = vector.load %arg4[%c5_360, %c0_361, %c0_362] : memref<6x4x16xbf16, #tpu.memory_space<vmem>>, vector<1x4x16xbf16>
    %757 = vector.shape_cast %756 : vector<1x4x16xbf16> to vector<4x16xbf16>
    %c5_363 = arith.constant 5 : index
    %c0_364 = arith.constant 0 : index
    %c0_365 = arith.constant 0 : index
    %758 = vector.load %arg5[%c5_363, %c0_364, %c0_365] : memref<6x4x1xf32, #tpu.memory_space<vmem>>, vector<1x4x1xf32>
    %759 = vector.shape_cast %758 : vector<1x4x1xf32> to vector<4x1xf32>
    %c5_366 = arith.constant 5 : index
    %c0_367 = arith.constant 0 : index
    %c0_368 = arith.constant 0 : index
    %760 = vector.load %arg6[%c5_366, %c0_367, %c0_368] : memref<6x4x1xf32, #tpu.memory_space<vmem>>, vector<1x4x1xf32>
    %761 = vector.shape_cast %760 : vector<1x4x1xf32> to vector<4x1xf32>
    %c5_369 = arith.constant 5 : index
    %c0_370 = arith.constant 0 : index
    %c0_371 = arith.constant 0 : index
    %762 = vector.load %arg7[%c5_369, %c0_370, %c0_371] : memref<6x4x36xbf16, #tpu.memory_space<vmem>>, vector<1x4x36xbf16>
    %763 = vector.shape_cast %762 : vector<1x4x36xbf16> to vector<4x36xbf16>
    %c5_372 = arith.constant 5 : index
    %c0_373 = arith.constant 0 : index
    %c0_374 = arith.constant 0 : index
    %764 = vector.load %arg8[%c5_372, %c0_373, %c0_374] : memref<6x4x1xf32, #tpu.memory_space<vmem>>, vector<1x4x1xf32>
    %765 = vector.shape_cast %764 : vector<1x4x1xf32> to vector<4x1xf32>
    %c5_375 = arith.constant 5 : index
    %c0_376 = arith.constant 0 : index
    %c0_377 = arith.constant 0 : index
    %766 = vector.load %arg9[%c5_375, %c0_376, %c0_377] : memref<6x4x1xf32, #tpu.memory_space<vmem>>, vector<1x4x1xf32>
    %767 = vector.shape_cast %766 : vector<1x4x1xf32> to vector<4x1xf32>
    %c5_378 = arith.constant 5 : index
    %c0_379 = arith.constant 0 : index
    %c0_380 = arith.constant 0 : index
    %768 = vector.load %arg10[%c5_378, %c0_379, %c0_380] : memref<6x16x4xbf16, #tpu.memory_space<vmem>>, vector<1x16x4xbf16>
    %769 = vector.shape_cast %768 : vector<1x16x4xbf16> to vector<16x4xbf16>
    %cst_381 = arith.constant dense<0.000000e+00> : vector<16x128xf32>
    %770 = tpu.matmul %751, %1, %cst_381 {dimension_numbers = #tpu.dot_dimension_numbers<[1], [0], [0], [1], [0, 0, 1, 1], [], []>} : vector<16x128xf32>, vector<128x128xf32>, vector<16x128xf32> -> vector<16x128xf32>
    %cst_382 = arith.constant 7.812500e-03 : f32
    %771 = vector.broadcast %cst_382 : f32 to vector<16x128xf32>
    %772 = arith.mulf %770, %771 : vector<16x128xf32>
    %773 = arith.mulf %751, %751 : vector<16x128xf32>
    %cst_383 = arith.constant dense<0.000000e+00> : vector<16x128xf32>
    %774 = tpu.matmul %773, %1, %cst_383 {dimension_numbers = #tpu.dot_dimension_numbers<[1], [0], [0], [1], [0, 0, 1, 1], [], []>} : vector<16x128xf32>, vector<128x128xf32>, vector<16x128xf32> -> vector<16x128xf32>
    %cst_384 = arith.constant 7.812500e-03 : f32
    %775 = vector.broadcast %cst_384 : f32 to vector<16x128xf32>
    %776 = arith.mulf %774, %775 : vector<16x128xf32>
    %777 = arith.mulf %772, %772 : vector<16x128xf32>
    %778 = arith.subf %776, %777 : vector<16x128xf32>
    %cst_385 = arith.constant 0.000000e+00 : f32
    %779 = vector.broadcast %cst_385 : f32 to vector<16x128xf32>
    %780 = arith.maximumf %778, %779 : vector<16x128xf32>
    %781 = arith.subf %751, %772 : vector<16x128xf32>
    %cst_386 = arith.constant 9.99999974E-6 : f32
    %782 = vector.broadcast %cst_386 : f32 to vector<16x128xf32>
    %783 = arith.addf %780, %782 : vector<16x128xf32>
    %784 = math.rsqrt %783 : vector<16x128xf32>
    %785 = arith.mulf %781, %784 : vector<16x128xf32>
    %786 = vector.broadcast %753 : vector<16x1xf32> to vector<16x128xf32>
    %787 = arith.mulf %785, %786 : vector<16x128xf32>
    %788 = vector.broadcast %755 : vector<16x1xf32> to vector<16x128xf32>
    %789 = arith.addf %787, %788 : vector<16x128xf32>
    %cst_387 = arith.constant 0.000000e+00 : f32
    %790 = vector.broadcast %cst_387 : f32 to vector<16x128xf32>
    %791 = arith.maximumf %789, %790 : vector<16x128xf32>
    %792 = arith.truncf %791 : vector<16x128xf32> to vector<16x128xbf16>
    %cst_388 = arith.constant dense<0.000000e+00> : vector<4x128xf32>
    %793 = tpu.matmul %757, %792, %cst_388 {dimension_numbers = #tpu.dot_dimension_numbers<[1], [0], [0], [1], [0, 0, 1, 1], [], []>} : vector<4x16xbf16>, vector<16x128xbf16>, vector<4x128xf32> -> vector<4x128xf32>
    %cst_389 = arith.constant dense<0.000000e+00> : vector<4x128xf32>
    %794 = tpu.matmul %793, %1, %cst_389 {dimension_numbers = #tpu.dot_dimension_numbers<[1], [0], [0], [1], [0, 0, 1, 1], [], []>} : vector<4x128xf32>, vector<128x128xf32>, vector<4x128xf32> -> vector<4x128xf32>
    %cst_390 = arith.constant 7.812500e-03 : f32
    %795 = vector.broadcast %cst_390 : f32 to vector<4x128xf32>
    %796 = arith.mulf %794, %795 : vector<4x128xf32>
    %797 = arith.mulf %793, %793 : vector<4x128xf32>
    %cst_391 = arith.constant dense<0.000000e+00> : vector<4x128xf32>
    %798 = tpu.matmul %797, %1, %cst_391 {dimension_numbers = #tpu.dot_dimension_numbers<[1], [0], [0], [1], [0, 0, 1, 1], [], []>} : vector<4x128xf32>, vector<128x128xf32>, vector<4x128xf32> -> vector<4x128xf32>
    %cst_392 = arith.constant 7.812500e-03 : f32
    %799 = vector.broadcast %cst_392 : f32 to vector<4x128xf32>
    %800 = arith.mulf %798, %799 : vector<4x128xf32>
    %801 = arith.mulf %796, %796 : vector<4x128xf32>
    %802 = arith.subf %800, %801 : vector<4x128xf32>
    %cst_393 = arith.constant 0.000000e+00 : f32
    %803 = vector.broadcast %cst_393 : f32 to vector<4x128xf32>
    %804 = arith.maximumf %802, %803 : vector<4x128xf32>
    %805 = arith.subf %793, %796 : vector<4x128xf32>
    %cst_394 = arith.constant 9.99999974E-6 : f32
    %806 = vector.broadcast %cst_394 : f32 to vector<4x128xf32>
    %807 = arith.addf %804, %806 : vector<4x128xf32>
    %808 = math.rsqrt %807 : vector<4x128xf32>
    %809 = arith.mulf %805, %808 : vector<4x128xf32>
    %810 = vector.broadcast %759 : vector<4x1xf32> to vector<4x128xf32>
    %811 = arith.mulf %809, %810 : vector<4x128xf32>
    %812 = vector.broadcast %761 : vector<4x1xf32> to vector<4x128xf32>
    %813 = arith.addf %811, %812 : vector<4x128xf32>
    %cst_395 = arith.constant 0.000000e+00 : f32
    %814 = vector.broadcast %cst_395 : f32 to vector<4x128xf32>
    %815 = arith.maximumf %813, %814 : vector<4x128xf32>
    %c9_i32_396 = arith.constant 9 : i32
    %816 = tpu.dynamic_rotate %815 by %c9_i32_396 dim 1 : vector<4x128xf32>, i32 -> vector<4x128xf32>
    %817 = arith.mulf %816, %7 : vector<4x128xf32>
    %c8_i32_397 = arith.constant 8 : i32
    %818 = tpu.dynamic_rotate %815 by %c8_i32_397 dim 1 : vector<4x128xf32>, i32 -> vector<4x128xf32>
    %819 = arith.mulf %818, %11 : vector<4x128xf32>
    %c7_i32_398 = arith.constant 7 : i32
    %820 = tpu.dynamic_rotate %815 by %c7_i32_398 dim 1 : vector<4x128xf32>, i32 -> vector<4x128xf32>
    %821 = arith.mulf %820, %15 : vector<4x128xf32>
    %c1_i32_399 = arith.constant 1 : i32
    %822 = tpu.dynamic_rotate %815 by %c1_i32_399 dim 1 : vector<4x128xf32>, i32 -> vector<4x128xf32>
    %823 = arith.mulf %822, %19 : vector<4x128xf32>
    %c127_i32_400 = arith.constant 127 : i32
    %824 = tpu.dynamic_rotate %815 by %c127_i32_400 dim 1 : vector<4x128xf32>, i32 -> vector<4x128xf32>
    %825 = arith.mulf %824, %23 : vector<4x128xf32>
    %c121_i32_401 = arith.constant 121 : i32
    %826 = tpu.dynamic_rotate %815 by %c121_i32_401 dim 1 : vector<4x128xf32>, i32 -> vector<4x128xf32>
    %827 = arith.mulf %826, %27 : vector<4x128xf32>
    %c120_i32_402 = arith.constant 120 : i32
    %828 = tpu.dynamic_rotate %815 by %c120_i32_402 dim 1 : vector<4x128xf32>, i32 -> vector<4x128xf32>
    %829 = arith.mulf %828, %31 : vector<4x128xf32>
    %c119_i32_403 = arith.constant 119 : i32
    %830 = tpu.dynamic_rotate %815 by %c119_i32_403 dim 1 : vector<4x128xf32>, i32 -> vector<4x128xf32>
    %831 = arith.mulf %830, %35 : vector<4x128xf32>
    %832 = tpu.concatenate %817, %819, %821, %823, %815, %825, %827, %829, %831 in 0 : vector<4x128xf32>, vector<4x128xf32>, vector<4x128xf32>, vector<4x128xf32>, vector<4x128xf32>, vector<4x128xf32>, vector<4x128xf32>, vector<4x128xf32>, vector<4x128xf32> -> vector<36x128xf32>
    %833 = arith.truncf %832 : vector<36x128xf32> to vector<36x128xbf16>
    %cst_404 = arith.constant dense<0.000000e+00> : vector<4x128xf32>
    %834 = tpu.matmul %763, %833, %cst_404 {dimension_numbers = #tpu.dot_dimension_numbers<[1], [0], [0], [1], [0, 0, 1, 1], [], []>} : vector<4x36xbf16>, vector<36x128xbf16>, vector<4x128xf32> -> vector<4x128xf32>
    %cst_405 = arith.constant dense<0.000000e+00> : vector<4x128xf32>
    %835 = tpu.matmul %834, %1, %cst_405 {dimension_numbers = #tpu.dot_dimension_numbers<[1], [0], [0], [1], [0, 0, 1, 1], [], []>} : vector<4x128xf32>, vector<128x128xf32>, vector<4x128xf32> -> vector<4x128xf32>
    %cst_406 = arith.constant 7.812500e-03 : f32
    %836 = vector.broadcast %cst_406 : f32 to vector<4x128xf32>
    %837 = arith.mulf %835, %836 : vector<4x128xf32>
    %838 = arith.mulf %834, %834 : vector<4x128xf32>
    %cst_407 = arith.constant dense<0.000000e+00> : vector<4x128xf32>
    %839 = tpu.matmul %838, %1, %cst_407 {dimension_numbers = #tpu.dot_dimension_numbers<[1], [0], [0], [1], [0, 0, 1, 1], [], []>} : vector<4x128xf32>, vector<128x128xf32>, vector<4x128xf32> -> vector<4x128xf32>
    %cst_408 = arith.constant 7.812500e-03 : f32
    %840 = vector.broadcast %cst_408 : f32 to vector<4x128xf32>
    %841 = arith.mulf %839, %840 : vector<4x128xf32>
    %842 = arith.mulf %837, %837 : vector<4x128xf32>
    %843 = arith.subf %841, %842 : vector<4x128xf32>
    %cst_409 = arith.constant 0.000000e+00 : f32
    %844 = vector.broadcast %cst_409 : f32 to vector<4x128xf32>
    %845 = arith.maximumf %843, %844 : vector<4x128xf32>
    %846 = arith.subf %834, %837 : vector<4x128xf32>
    %cst_410 = arith.constant 9.99999974E-6 : f32
    %847 = vector.broadcast %cst_410 : f32 to vector<4x128xf32>
    %848 = arith.addf %845, %847 : vector<4x128xf32>
    %849 = math.rsqrt %848 : vector<4x128xf32>
    %850 = arith.mulf %846, %849 : vector<4x128xf32>
    %851 = vector.broadcast %765 : vector<4x1xf32> to vector<4x128xf32>
    %852 = arith.mulf %850, %851 : vector<4x128xf32>
    %853 = vector.broadcast %767 : vector<4x1xf32> to vector<4x128xf32>
    %854 = arith.addf %852, %853 : vector<4x128xf32>
    %cst_411 = arith.constant 0.000000e+00 : f32
    %855 = vector.broadcast %cst_411 : f32 to vector<4x128xf32>
    %856 = arith.maximumf %854, %855 : vector<4x128xf32>
    %857 = arith.truncf %856 : vector<4x128xf32> to vector<4x128xbf16>
    %cst_412 = arith.constant dense<0.000000e+00> : vector<16x128xf32>
    %858 = tpu.matmul %769, %857, %cst_412 {dimension_numbers = #tpu.dot_dimension_numbers<[1], [0], [0], [1], [0, 0, 1, 1], [], []>} : vector<16x4xbf16>, vector<4x128xbf16>, vector<16x128xf32> -> vector<16x128xf32>
    %859 = arith.addf %858, %751 : vector<16x128xf32>
    %c0_413 = arith.constant 0 : index
    %c0_414 = arith.constant 0 : index
    %860 = vector.load %arg21[%c0_413, %c0_414] : memref<16x128xf32, #tpu.memory_space<vmem>>, vector<16x128xf32>
    tpu.vector_store %arg21[%c0_413, %c0_414], %859 {strides = array<i32>} : memref<16x128xf32, #tpu.memory_space<vmem>>, vector<16x128xf32>,
    return
  }
  func.func @transform_0(%arg0: i32) -> (i32, i32) {
    %c0_i32 = arith.constant 0 : i32
    %c0_i32_0 = arith.constant 0 : i32
    %c0_i32_1 = arith.constant 0 : i32
    return %c0_i32, %c0_i32_0 : i32, i32
  }
  func.func @transform_1(%arg0: i32) -> (i32, i32, i32) {
    %c0_i32 = arith.constant 0 : i32
    %c0_i32_0 = arith.constant 0 : i32
    %c0_i32_1 = arith.constant 0 : i32
    %c0_i32_2 = arith.constant 0 : i32
    return %c0_i32, %c0_i32_0, %c0_i32_1 : i32, i32, i32
  }
  func.func @transform_2(%arg0: i32) -> (i32, i32, i32) {
    %c0_i32 = arith.constant 0 : i32
    %c0_i32_0 = arith.constant 0 : i32
    %c0_i32_1 = arith.constant 0 : i32
    %c0_i32_2 = arith.constant 0 : i32
    return %c0_i32, %c0_i32_0, %c0_i32_1 : i32, i32, i32
  }
  func.func @transform_3(%arg0: i32) -> (i32, i32, i32) {
    %c0_i32 = arith.constant 0 : i32
    %c0_i32_0 = arith.constant 0 : i32
    %c0_i32_1 = arith.constant 0 : i32
    %c0_i32_2 = arith.constant 0 : i32
    return %c0_i32, %c0_i32_0, %c0_i32_1 : i32, i32, i32
  }
  func.func @transform_4(%arg0: i32) -> (i32, i32, i32) {
    %c0_i32 = arith.constant 0 : i32
    %c0_i32_0 = arith.constant 0 : i32
    %c0_i32_1 = arith.constant 0 : i32
    %c0_i32_2 = arith.constant 0 : i32
    return %c0_i32, %c0_i32_0, %c0_i32_1 : i32, i32, i32
  }
  func.func @transform_5(%arg0: i32) -> (i32, i32, i32) {
    %c0_i32 = arith.constant 0 : i32
    %c0_i32_0 = arith.constant 0 : i32
    %c0_i32_1 = arith.constant 0 : i32
    %c0_i32_2 = arith.constant 0 : i32
    return %c0_i32, %c0_i32_0, %c0_i32_1 : i32, i32, i32
  }
  func.func @transform_6(%arg0: i32) -> (i32, i32, i32) {
    %c0_i32 = arith.constant 0 : i32
    %c0_i32_0 = arith.constant 0 : i32
    %c0_i32_1 = arith.constant 0 : i32
    %c0_i32_2 = arith.constant 0 : i32
    return %c0_i32, %c0_i32_0, %c0_i32_1 : i32, i32, i32
  }
  func.func @transform_7(%arg0: i32) -> (i32, i32, i32) {
    %c0_i32 = arith.constant 0 : i32
    %c0_i32_0 = arith.constant 0 : i32
    %c0_i32_1 = arith.constant 0 : i32
    %c0_i32_2 = arith.constant 0 : i32
    return %c0_i32, %c0_i32_0, %c0_i32_1 : i32, i32, i32
  }
  func.func @transform_8(%arg0: i32) -> (i32, i32, i32) {
    %c0_i32 = arith.constant 0 : i32
    %c0_i32_0 = arith.constant 0 : i32
    %c0_i32_1 = arith.constant 0 : i32
    %c0_i32_2 = arith.constant 0 : i32
    return %c0_i32, %c0_i32_0, %c0_i32_1 : i32, i32, i32
  }
  func.func @transform_9(%arg0: i32) -> (i32, i32, i32) {
    %c0_i32 = arith.constant 0 : i32
    %c0_i32_0 = arith.constant 0 : i32
    %c0_i32_1 = arith.constant 0 : i32
    %c0_i32_2 = arith.constant 0 : i32
    return %c0_i32, %c0_i32_0, %c0_i32_1 : i32, i32, i32
  }
  func.func @transform_10(%arg0: i32) -> (i32, i32) {
    %c0_i32 = arith.constant 0 : i32
    %c0_i32_0 = arith.constant 0 : i32
    %c0_i32_1 = arith.constant 0 : i32
    return %c0_i32, %c0_i32_0 : i32, i32
  }
  func.func @transform_11(%arg0: i32) -> (i32, i32) {
    %c0_i32 = arith.constant 0 : i32
    %c0_i32_0 = arith.constant 0 : i32
    %c0_i32_1 = arith.constant 0 : i32
    return %c0_i32, %c0_i32_0 : i32, i32
  }
  func.func @transform_12(%arg0: i32) -> (i32, i32) {
    %c0_i32 = arith.constant 0 : i32
    %c0_i32_0 = arith.constant 0 : i32
    %c0_i32_1 = arith.constant 0 : i32
    return %c0_i32, %c0_i32_0 : i32, i32
  }
  func.func @transform_13(%arg0: i32) -> (i32, i32) {
    %c0_i32 = arith.constant 0 : i32
    %c0_i32_0 = arith.constant 0 : i32
    %c0_i32_1 = arith.constant 0 : i32
    return %c0_i32, %c0_i32_0 : i32, i32
  }
  func.func @transform_14(%arg0: i32) -> (i32, i32) {
    %c0_i32 = arith.constant 0 : i32
    %c0_i32_0 = arith.constant 0 : i32
    %c0_i32_1 = arith.constant 0 : i32
    return %c0_i32, %c0_i32_0 : i32, i32
  }
  func.func @transform_15(%arg0: i32) -> (i32, i32) {
    %c0_i32 = arith.constant 0 : i32
    %c0_i32_0 = arith.constant 0 : i32
    %c0_i32_1 = arith.constant 0 : i32
    return %c0_i32, %c0_i32_0 : i32, i32
  }
  func.func @transform_16(%arg0: i32) -> (i32, i32, i32) {
    %c0_i32 = arith.constant 0 : i32
    %c0_i32_0 = arith.constant 0 : i32
    %c0_i32_1 = arith.constant 0 : i32
    %c0_i32_2 = arith.constant 0 : i32
    return %c0_i32, %c0_i32_0, %c0_i32_1 : i32, i32, i32
  }
  func.func @transform_17(%arg0: i32) -> (i32, i32, i32) {
    %c0_i32 = arith.constant 0 : i32
    %c0_i32_0 = arith.constant 0 : i32
    %c0_i32_1 = arith.constant 0 : i32
    %c0_i32_2 = arith.constant 0 : i32
    return %c0_i32, %c0_i32_0, %c0_i32_1 : i32, i32, i32
  }
  func.func @transform_18(%arg0: i32) -> (i32, i32) {
    %c0_i32 = arith.constant 0 : i32
    %c0_i32_0 = arith.constant 0 : i32
    %c0_i32_1 = arith.constant 0 : i32
    return %c0_i32, %c0_i32_0 : i32, i32
  }
  func.func @transform_19(%arg0: i32) -> (i32, i32) {
    %c0_i32 = arith.constant 0 : i32
    %c0_i32_0 = arith.constant 0 : i32
    %c0_i32_1 = arith.constant 0 : i32
    return %c0_i32, %c0_i32_0 : i32, i32
  }
  func.func @transform_20(%arg0: i32) -> (i32, i32) {
    %c0_i32 = arith.constant 0 : i32
    %c0_i32_0 = arith.constant 0 : i32
    %c0_i32_1 = arith.constant 0 : i32
    return %c0_i32, %c0_i32_0 : i32, i32
  }
}

</mosaic_0001>

<bundles_post_ra>
// kernel: tpu_custom_call.1
= control target key start
LH: loop header
LB: loop body
LE: loop exit
PB: predicated region body
PF: predicated region fallthrough
CT: control target
= control target key end

     0   :  { %s10728_s0 = inlined_call_operand.vmem [shape: f32[16,128], index: 0, kind: input, shape index: {}]   ;;  %s10729_s1 = inlined_call_operand.vmem [shape: f32[6,16,1], index: 1, kind: input, shape index: {}]   ;;  %s10730_s2 = inlined_call_operand.vmem [shape: f32[6,16,1], index: 2, kind: input, shape index: {}]   ;;  %s10731_s3 = inlined_call_operand.vmem [shape: bf16[6,4,16], index: 3, kind: input, shape index: {}]   ;;  %s10732_s4 = inlined_call_operand.vmem [shape: f32[6,4,1], index: 4, kind: input, shape index: {}]   ;;  %s10733_s5 = inlined_call_operand.vmem [shape: f32[6,4,1], index: 5, kind: input, shape index: {}]   ;;  %s10734_s6 = inlined_call_operand.vmem [shape: bf16[6,4,36], index: 6, kind: input, shape index: {}]   ;;  %s10735_s7 = inlined_call_operand.vmem [shape: f32[6,4,1], index: 7, kind: input, shape index: {}]   ;;  %s10736_s8 = inlined_call_operand.vmem [shape: f32[6,4,1], index: 8, kind: input, shape index: {}]   ;;  %s10737_s9 = inlined_call_operand.vmem [shape: bf16[6,16,4], index: 9, kind: input, shape index: {}]   ;;  %s10738_s10 = inlined_call_operand.vmem [shape: f32[16,1], index: 10, kind: input, shape index: {}]   ;;  %s10739_s11 = inlined_call_operand.vmem [shape: f32[16,1], index: 11, kind: input, shape index: {}]   ;;  %s10740_s12 = inlined_call_operand.vmem [shape: bf16[16,16], index: 12, kind: input, shape index: {}]   ;;  %s10741_s13 = inlined_call_operand.vmem [shape: f32[16,1], index: 13, kind: input, shape index: {}]   ;;  %s10742_s14 = inlined_call_operand.vmem [shape: f32[16,1], index: 14, kind: input, shape index: {}]   ;;  %s10743_s15 = inlined_call_operand.vmem [shape: bf16[16,16], index: 15, kind: input, shape index: {}]   ;;  %s10744_s16 = inlined_call_operand.vmem [shape: f32[9,1,128], index: 16, kind: input, shape index: {}]   ;;  %s10745_s17 = inlined_call_operand.vmem [shape: bf16[9,32,32], index: 17, kind: input, shape index: {}]   ;;  %s10746_s18 = inlined_call_operand.vmem [shape: bf16[128,32], index: 18, kind: input, shape index: {}]   ;;  %s10747_s19 = inlined_call_operand.vmem [shape: bf16[32,128], index: 19, kind: input, shape index: {}]   ;;  %s10748_s20 = inlined_call_operand.hbm [shape: f32[16,128], index: 20, kind: output, shape index: {}]  }
   0x1   :  { %10774 = sst [smem:[#allocation5_spill]] %s10728_s0 }
   0x2   :  { %10775 = sst [smem:[#allocation6_spill]] %s10729_s1 }
   0x3   :  { %10776 = sst [smem:[#allocation7_spill]] %s10730_s2 }
   0x4   :  { %10777 = sst [smem:[#allocation8_spill]] %s10731_s3 }
   0x5   :  { %10778 = sst [smem:[#allocation9_spill]] %s10732_s4 }
   0x6   :  { %10779 = sst [smem:[#allocation10_spill]] %s10740_s12 }
   0x7   :  { %10780 = sst [smem:[#allocation11_spill]] %s10743_s15 }
   0x8   :  { %10781 = sst [smem:[#allocation12_spill]] %s10745_s17 }
   0x9   :  { %10782 = sst [smem:[#allocation13_spill]] %s10746_s18 }
   0xa   :  { %10783 = sst [smem:[#allocation14_spill]] %s10747_s19 }
   0xb   :  { %10784 = sst [smem:[#allocation15_spill]] %s10748_s20 }
   0xc   :  { %v8628_v0 = vmov 1.0   ;;  %s10785_s23 = sld [smem:[#allocation5_spill]] }
   0xd   :  { %7010 = vmatprep.subr.mxu0 %v8628_v0  ;;  %7045 = vmatprep.subr.mxu1 %v8628_v0 }
   0xe   :  { %7011 = vmatpush3.msra.mxu0 %v8628_v0  ;;  %7046 = vmatpush3.msra.mxu1 %v8628_v0 }
   0xf   :  { %7012 = vmatprep.subr.mxu0 %v8628_v0  ;;  %7047 = vmatprep.subr.mxu1 %v8628_v0 }
  0x10   :  { %7013 = vmatpush3.msra.mxu0 %v8628_v0  ;;  %7048 = vmatpush3.msra.mxu1 %v8628_v0 }
  0x11   :  { %7014 = vmatprep.subr.mxu0 %v8628_v0  ;;  %7049 = vmatprep.subr.mxu1 %v8628_v0 }
  0x12   :  { %7015 = vmatpush3.msra.mxu0 %v8628_v0  ;;  %7050 = vmatpush3.msra.mxu1 %v8628_v0  ;;  %v8798_v1 = vld [vmem:[%s10785_s23] sm:$0xff] }
  0x13   :  { %7016 = vmatprep.subr.mxu0 %v8628_v0  ;;  %7051 = vmatprep.subr.mxu1 %v8628_v0 }
  0x14   :  { %7017 = vmatpush3.msra.mxu0 %v8628_v0  ;;  %7052 = vmatpush3.msra.mxu1 %v8628_v0 }
  0x15   :  { %7018 = vmatprep.subr.mxu0 %v8628_v0  ;;  %7053 = vmatprep.subr.mxu1 %v8628_v0 }
  0x16   :  { %7019 = vmatpush3.msra.mxu0 %v8628_v0  ;;  %7054 = vmatpush3.msra.mxu1 %v8628_v0 }
  0x17   :  { %7020 = vmatprep.subr.mxu0 %v8628_v0  ;;  %7055 = vmatprep.subr.mxu1 %v8628_v0 }
  0x18   :  { %7021 = vmatpush3.msra.mxu0 %v8628_v0  ;;  %7056 = vmatpush3.msra.mxu1 %v8628_v0 }
  0x19   :  { %7022 = vmatprep.subr.mxu0 %v8628_v0  ;;  %7057 = vmatprep.subr.mxu1 %v8628_v0 }
  0x1a   :  { %7023 = vmatpush3.msra.mxu0 %v8628_v0  ;;  %7058 = vmatpush3.msra.mxu1 %v8628_v0 }
  0x1b   :  { %7024 = vmatprep.subr.mxu0 %v8628_v0  ;;  %7059 = vmatprep.subr.mxu1 %v8628_v0 }
  0x1c   :  { %7025 = vmatpush3.msra.mxu0 %v8628_v0  ;;  %7060 = vmatpush3.msra.mxu1 %v8628_v0 }
  0x1d   :  { %7026 = vmatprep.subr.mxu0 %v8628_v0  ;;  %7061 = vmatprep.subr.mxu1 %v8628_v0 }
  0x1e   :  { %7027 = vmatpush3.msra.mxu0 %v8628_v0  ;;  %7062 = vmatpush3.msra.mxu1 %v8628_v0 }
  0x1f   :  { %7028 = vmatprep.subr.mxu0 %v8628_v0  ;;  %7063 = vmatprep.subr.mxu1 %v8628_v0 }
  0x20   :  { %7029 = vmatpush3.msra.mxu0 %v8628_v0  ;;  %7064 = vmatpush3.msra.mxu1 %v8628_v0 }
  0x21   :  { %7030 = vmatprep.subr.mxu0 %v8628_v0  ;;  %7065 = vmatprep.subr.mxu1 %v8628_v0 }
  0x22   :  { %7031 = vmatpush3.msra.mxu0 %v8628_v0  ;;  %7066 = vmatpush3.msra.mxu1 %v8628_v0 }
  0x23   :  { %7032 = vmatprep.subr.mxu0 %v8628_v0  ;;  %7067 = vmatprep.subr.mxu1 %v8628_v0 }
  0x24   :  { %7033 = vmatpush3.msra.mxu0 %v8628_v0  ;;  %7068 = vmatpush3.msra.mxu1 %v8628_v0 }
  0x25   :  { %7034 = vmatprep.subr.mxu0 %v8628_v0  ;;  %7069 = vmatprep.subr.mxu1 %v8628_v0 }
  0x26   :  { %7035 = vmatpush3.msra.mxu0 %v8628_v0  ;;  %7070 = vmatpush3.msra.mxu1 %v8628_v0 }
  0x27   :  { %25 = vsyncpa [#allocation3], 0  ;;  %7036 = vmatprep.subr.mxu0 %v8628_v0  ;;  %7071 = vmatprep.subr.mxu1 %v8628_v0  ;;  %v8809_v2 = vld [vmem:[%s10785_s23 + $0x8] sm:$0xff]  ;;  %v250_v3 = vmul.f32 %v8798_v1, %v8798_v1  ;;  %s10786_s26 = sld [smem:[#allocation6_spill]]  ;;  %v8629_v7 = vmov 0   ;;  %v8630_v12 = vmov 0.0  }
  0x28   :  { %7037 = vmatpush3.msra.mxu0 %v8628_v0  ;;  %7072 = vmatpush3.msra.mxu1 %v8628_v0  ;;  %v251_v4 = vmul.f32 %v8809_v2, %v8809_v2  ;;  %s10787_s4 = sld [smem:[#allocation7_spill]]  ;;  %v167_v11 = vld [vmem:[%s10733_s5] sm:$0xf]  ;;  %vm8631_vm0 = vmmov 0   ;;  %vm370_vm1 = vcmask 130048   ;;  %s10768_s28 = smov 127  }
  0x29   :  { %7038 = vmatprep.subr.mxu0 %v8628_v0  ;;  %7073 = vmatprep.subr.mxu1 %v8628_v0  ;;  %s10788_s23 = sld [smem:[#allocation9_spill]]  ;;  %s10766_s29 = smov 119   ;;  %vm625_vm2 = vcmask 1041408   ;;  %vm613_vm3 = vcmask 1043456   ;;  %vm621_vm4 = vcmask 293888   ;;  %vm838_vm5 = vcmask 31744  }
  0x2a   :  { %7039 = vmatpush3.msra.mxu0 %v8628_v0  ;;  %7074 = vmatpush3.msra.mxu1 %v8628_v0  ;;  %s10789_s27 = sld [smem:[#allocation8_spill]]  ;;  %s10760_s30 = smov 121  }
  0x2b   :  { %7040 = vmatprep.subr.mxu0 %v8628_v0  ;;  %7075 = vmatprep.subr.mxu1 %v8628_v0  ;;  %s10754_s0 = smov 120   ;;  %s10756_s21 = smov 1  }
  0x2c   :  { %7041 = vmatpush3.msra.mxu0 %v8628_v0  ;;  %7042 = vmatprep.mubr.f32.mxu0 %v8798_v1  ;;  %s10758_s1 = smov 8   ;;  %s10762_s22 = smov 7  }
  0x2d   :  { %7076 = vmatpush3.msra.mxu1 %v8628_v0  ;;  %7077 = vmatprep.mubr.f32.mxu1 %v250_v3  ;;  %v161_v5 = vld [vmem:[%s10786_s26] sm:$0xff]  ;;  %v162_v8 = vld [vmem:[%s10786_s26 + $0x8] sm:$0xff]  ;;  %s10764_s24 = smov 9   ;;  %s10792_s2 = smov 120  }
  0x2e   :  { %v163_v6 = vld [vmem:[%s10787_s4] sm:$0xff]  ;;  %7043 = vmatmul.mubr.f32.vlgmr.msra.gmra.mxu0 %v8809_v2  ;;  %7078 = vmatmul.mubr.f32.vlgmr.msra.gmra.mxu1 %v251_v4  ;;  %v164_v9 = vld [vmem:[%s10787_s4 + $0x8] sm:$0xff]  ;;  %s10793_s25 = smov 1   ;;  %s10795_s3 = smov 7  }
  0x2f   :  { %8452 = vset.pattern.permute.xlu0 %v8629_v7  ;;  %8453 = vset.pattern.permute.xlu1 %v8629_v7  ;;  %v166_v10 = vld [vmem:[%s10788_s23] sm:$0xf]  ;;  %s10800_s19 = sld [smem:[#allocation14_spill]] }
  0x30   :  { %345 = vperm.xlu0 %8452, %v161_v5   ;;  %357 = vperm.xlu1 %8453, %v163_v6   ;;  %v165_v46 = vld [vmem:[%s10789_s27] sm:$0x3] }
  0x31   :  { %7080 = vmatprep.subr.bf16.mxu0 %v8630_v12  ;;  %7086 = vmatprep.subr.mxu1 %v8630_v12 }
  0x32   :  { %7087 = vmatpush3.msra.mxu1 %v8628_v0  ;;  %7082 = vmatprep.mubr.msk.bf16.mxu0 %vm8631_vm0, %v8630_v12 }
  0x33   :  { %7088 = vmatprep.subr.mxu1 %v8630_v12  ;;  %7118 = vmatprep.mubr.msk.f32.mxu1 %vm8631_vm0, %v8630_v12 }
  0x34   :  { %350 = vperm.xlu0 %8452, %v162_v8   ;;  %362 = vperm.xlu1 %8453, %v164_v9  }
  0x35   :  { %7089 = vmatpush3.msra.mxu1 %v8628_v0 }
  0x36   :  { %7090 = vmatprep.subr.mxu1 %v8630_v12 }
  0x37   :  { %7091 = vmatpush3.msra.mxu1 %v8628_v0 }
  0x38   :  { %566 = vperm.xlu0 %8452, %v166_v10   ;;  %572 = vperm.xlu1 %8453, %v167_v11   ;;  %v170_v10 = vld [vmem:[%s10736_s8] sm:$0xf] }
  0x39   :  { %7092 = vmatprep.subr.mxu1 %v8630_v12  ;;  %v169_v11 = vld [vmem:[%s10735_s7] sm:$0xf] }
  0x3a   :  { %7093 = vmatpush3.msra.mxu1 %v8628_v0 }
  0x3b   :  { %7094 = vmatprep.subr.mxu1 %v8630_v12 }
  0x3c   :  { %7095 = vmatpush3.msra.mxu1 %v8628_v0 }
  0x3d   :  { %7096 = vmatprep.subr.mxu1 %v8630_v12 }
  0x3e   :  { %7097 = vmatpush3.msra.mxu1 %v8628_v0 }
  0x3f   :  { %7098 = vmatprep.subr.mxu1 %v8630_v12 }
  0x40   :  { %7099 = vmatpush3.msra.mxu1 %v8628_v0 }
  0x41   :  { %7100 = vmatprep.subr.mxu1 %v8630_v12 }
  0x42   :  { %7101 = vmatpush3.msra.mxu1 %v8628_v0 }
  0x43   :  { %7102 = vmatprep.subr.mxu1 %v8630_v12 }
  0x44   :  { %7103 = vmatpush3.msra.mxu1 %v8628_v0 }
  0x45   :  { %7104 = vmatprep.subr.mxu1 %v8630_v12 }
  0x46   :  { %7105 = vmatpush3.msra.mxu1 %v8628_v0 }
  0x47   :  { %7106 = vmatprep.subr.mxu1 %v8630_v12 }
  0x48   :  { %7107 = vmatpush3.msra.mxu1 %v8628_v0 }
  0x49   :  { %7108 = vmatprep.subr.mxu1 %v8630_v12 }
  0x4a   :  { %7109 = vmatpush3.msra.mxu1 %v8628_v0 }
  0x4b   :  { %7110 = vmatprep.subr.mxu1 %v8630_v12 }
  0x4c   :  { %7111 = vmatpush3.msra.mxu1 %v8628_v0 }
  0x4d   :  { %7112 = vmatprep.subr.mxu1 %v8630_v12 }
  0x4e   :  { %7113 = vmatpush3.msra.mxu1 %v8628_v0 }
  0x4f   :  { %7114 = vmatprep.subr.mxu1 %v8630_v12 }
  0x50   :  { %7115 = vmatpush3.msra.mxu1 %v8628_v0 }
  0x51   :  { %7116 = vmatprep.subr.mxu1 %v8630_v12 }
  0x52   :  { %7117 = vmatpush3.msra.mxu1 %v8628_v0 }
  0x53   :  { %7156 = vmatprep.subr.bf16.mxu1 %v8630_v12 }
  0xab   :  { %v346_v29 = vpop.permute.xlu0 %345  ;;  %v358_v30 = vpop.permute.xlu1 %357 }
  0xaf   :  { %v351_v36 = vpop.permute.xlu0 %350  ;;  %v363_v39 = vpop.permute.xlu1 %362 }
  0xb3   :  { %v567_v4 = vpop.permute.xlu0 %566  ;;  %v573_v6 = vpop.permute.xlu1 %572 }
  0xee   :  { %v7044_v13 = vpop.f32.mrf.mxu0  ;;  %v7079_v14 = vpop.f32.mrf.mxu1 }
  0xef   :  { %v249_v15 = vmul.f32 0.0078125, %v7044_v13  ;;  %v328_v16 = vmul.f32 0.0078125, %v7079_v14  ;;  %v6194_v13 = vld [vmem:[%s10786_s26 + $0x18] sm:$0xff]  ;;  %v6193_v14 = vld [vmem:[%s10786_s26 + $0x10] sm:$0xff] }
  0xf0   :  { %v239_v17 = vpop.f32.mrf.mxu0  ;;  %v318_v18 = vpop.f32.mrf.mxu1 }
  0xf1   :  { %v330_v19 = vmul.f32 %v249_v15, %v249_v15  ;;  %v248_v20 = vmul.f32 0.0078125, %v239_v17  ;;  %v327_v23 = vmul.f32 0.0078125, %v318_v18  ;;  %v336_v31 = vsub.f32 %v8809_v2, %v249_v15  ;;  %v6196_v15 = vld [vmem:[%s10787_s4 + $0x18] sm:$0xff]  ;;  %v6199_v17 = vld [vmem:[%s10733_s5 + $0x4] sm:$0xf] }
  0xf2   :  { %v6198_v18 = vld [vmem:[%s10788_s23 + $0x4] sm:$0xf] }
  0xf3   :  { %v332_v21 = vsub.f32 %v328_v16, %v330_v19  ;;  %v329_v22 = vmul.f32 %v248_v20, %v248_v20  ;;  %v335_v33 = vsub.f32 %v8798_v1, %v248_v20  ;;  %v6195_v16 = vld [vmem:[%s10787_s4 + $0x10] sm:$0xff]  ;;  %v78_v19 = vlaneseq }
  0xf5   :  { %v334_v24 = vmax.f32 %v332_v21, 0.0  ;;  %v331_v25 = vsub.f32 %v327_v23, %v329_v22  ;;  %v79_v20 = vshrl.u32 %v78_v19, 7  ;;  %v9009_v22 = vld [vmem:[%s10744_s16 + $0x5] ss:$0 sm:$0xff]  ;;  %v9014_v23 = vld [vmem:[%s10744_s16 + $0x8] ss:$0 sm:$0xff] }
  0xf7   :  { %v338_v26 = vadd.f32 1e-05, %v334_v24  ;;  %v333_v27 = vmax.f32 %v331_v25, 0.0  ;;  %v9004_v21 = vsub.s32 0, %v79_v20  ;;  %v9019_v24 = vld [vmem:[%s10744_s16 + $0x7] ss:$0 sm:$0xff] }
  0xf9   :  { %8530 = vrsqrt.f32 %v338_v26  ;;  %v337_v28 = vadd.f32 1e-05, %v333_v27  ;;  %v9024_v27 = vld [vmem:[%s10744_s16 + $0x6] ss:$0 sm:$0xff] }
  0xfb   :  { %8532 = vrsqrt.f32 %v337_v28 }
 0x106   :  { %v8531_v32 = vpop.eup %8530 }
 0x107   :  { %v342_v34 = vmul.f32 %v8531_v32, %v336_v31  ;;  %v9036_v31 = vld [vmem:[%s10744_s16 + $0x1] ss:$0 sm:$0xff] }
 0x108   :  { %v8533_v35 = vpop.eup %8532 }
 0x109   :  { %v341_v37 = vmul.f32 %v8533_v35, %v335_v33  ;;  %v354_v38 = vmul.f32 %v351_v36, %v342_v34 }
 0x10b   :  { %v353_v40 = vmul.f32 %v346_v29, %v341_v37  ;;  %v366_v41 = vadd.f32 %v363_v39, %v354_v38  ;;  %v9043_v38 = vld [vmem:[%s10744_s16 + $0x2] ss:$0 sm:$0xff]  ;;  %v9048_v39 = vld [vmem:[%s10744_s16] ss:$0 sm:$0xff] }
 0x10d   :  { %v365_v42 = vadd.f32 %v358_v30, %v353_v40  ;;  %v368_v44 = vmax.f32 %v366_v41, 0.0  ;;  %v9031_v30 = vld [vmem:[%s10744_s16 + $0x3] ss:$0 sm:$0xff] }
 0x10f   :  { %v367_v43 = vmax.f32 %v365_v42, 0.0 }
 0x111   :  { %v369_v45 = vpack.c.bf16 %v368_v44, %v367_v43 }
 0x113   :  { %7081 = vmatpush3.bf16.msra.mxu0 %v369_v45 }
 0x114   :  { %7121 = vmatprep.subr.mxu0 %v8630_v12 }
 0x116   :  { %7083 = vmatmul.mubr.msk.bf16.vlgmr.msra.gmra.mxu0 %vm370_vm1, %v165_v46 }
 0x117   :  { %7122 = vmatpush3.msra.mxu0 %v8628_v0  ;;  %7153 = vmatprep.mubr.msk.f32.mxu0 %vm8631_vm0, %v8630_v12 }
 0x118   :  { %7123 = vmatprep.subr.mxu0 %v8630_v12 }
 0x119   :  { %7124 = vmatpush3.msra.mxu0 %v8628_v0 }
 0x11a   :  { %7125 = vmatprep.subr.mxu0 %v8630_v12 }
 0x11b   :  { %7126 = vmatpush3.msra.mxu0 %v8628_v0 }
 0x11c   :  { %7127 = vmatprep.subr.mxu0 %v8630_v12 }
 0x11d   :  { %7128 = vmatpush3.msra.mxu0 %v8628_v0 }
 0x11e   :  { %7129 = vmatprep.subr.mxu0 %v8630_v12 }
 0x11f   :  { %7130 = vmatpush3.msra.mxu0 %v8628_v0 }
 0x120   :  { %7131 = vmatprep.subr.mxu0 %v8630_v12 }
 0x121   :  { %7132 = vmatpush3.msra.mxu0 %v8628_v0 }
 0x122   :  { %7133 = vmatprep.subr.mxu0 %v8630_v12 }
 0x123   :  { %7134 = vmatpush3.msra.mxu0 %v8628_v0 }
 0x124   :  { %7135 = vmatprep.subr.mxu0 %v8630_v12 }
 0x125   :  { %7136 = vmatpush3.msra.mxu0 %v8628_v0 }
 0x126   :  { %7137 = vmatprep.subr.mxu0 %v8630_v12 }
 0x127   :  { %7138 = vmatpush3.msra.mxu0 %v8628_v0 }
 0x128   :  { %7139 = vmatprep.subr.mxu0 %v8630_v12 }
 0x129   :  { %7140 = vmatpush3.msra.mxu0 %v8628_v0 }
 0x12a   :  { %7141 = vmatprep.subr.mxu0 %v8630_v12 }
 0x12b   :  { %7142 = vmatpush3.msra.mxu0 %v8628_v0 }
 0x12c   :  { %7143 = vmatprep.subr.mxu0 %v8630_v12 }
 0x12d   :  { %7144 = vmatpush3.msra.mxu0 %v8628_v0 }
 0x12e   :  { %7145 = vmatprep.subr.mxu0 %v8630_v12 }
 0x12f   :  { %7146 = vmatpush3.msra.mxu0 %v8628_v0 }
 0x130   :  { %7147 = vmatprep.subr.mxu0 %v8630_v12 }
 0x131   :  { %7148 = vmatpush3.msra.mxu0 %v8628_v0 }
 0x132   :  { %7149 = vmatprep.subr.mxu0 %v8630_v12 }
 0x133   :  { %7150 = vmatpush3.msra.mxu0 %v8628_v0 }
 0x134   :  { %7151 = vmatprep.subr.mxu0 %v8630_v12 }
 0x135   :  { %7152 = vmatpush3.msra.mxu0 %v8628_v0 }
 0x136   :  { %7166 = vmatprep.subr.mxu0 %v8630_v12 }
 0x1d6   :  { %v408_v47 = vpop.f32.mrf.mxu0 }
 0x1d7   :  { %v485_v48 = vmul.f32 %v408_v47, %v408_v47  ;;  %7119 = vmatmul.mubr.f32.vlgmr.msra.gmra.mxu1 %v408_v47 }
 0x1d8   :  { %v7084_v49 = vpop.f32.mrf.mxu0  ;;  %7162 = vmatprep.mubr.msk.bf16.mxu1 %vm8631_vm0, %v8630_v12 }
 0x1d9   :  { %7154 = vmatmul.mubr.f32.vlgmr.msra.gmra.mxu0 %v485_v48 }
 0x1da   :  { %v411_v50 = vpop.f32.mrf.mxu0  ;;  %7167 = vmatpush3.msra.mxu0 %v8628_v0  ;;  %7198 = vmatprep.mubr.msk.f32.mxu0 %vm8631_vm0, %v8630_v12 }
 0x1db   :  { %7168 = vmatprep.subr.mxu0 %v8630_v12 }
 0x1dc   :  { %v7085_v51 = vpop.f32.mrf.mxu0  ;;  %7169 = vmatpush3.msra.mxu0 %v8628_v0 }
 0x1dd   :  { %7170 = vmatprep.subr.mxu0 %v8630_v12 }
 0x1de   :  { %7171 = vmatpush3.msra.mxu0 %v8628_v0 }
 0x1df   :  { %7172 = vmatprep.subr.mxu0 %v8630_v12 }
 0x1e0   :  { %7173 = vmatpush3.msra.mxu0 %v8628_v0 }
 0x1e1   :  { %7174 = vmatprep.subr.mxu0 %v8630_v12 }
 0x1e2   :  { %7175 = vmatpush3.msra.mxu0 %v8628_v0 }
 0x1e3   :  { %7176 = vmatprep.subr.mxu0 %v8630_v12 }
 0x1e4   :  { %7177 = vmatpush3.msra.mxu0 %v8628_v0 }
 0x1e5   :  { %7178 = vmatprep.subr.mxu0 %v8630_v12 }
 0x1e6   :  { %7179 = vmatpush3.msra.mxu0 %v8628_v0 }
 0x1e7   :  { %7180 = vmatprep.subr.mxu0 %v8630_v12 }
 0x1e8   :  { %7181 = vmatpush3.msra.mxu0 %v8628_v0 }
 0x1e9   :  { %7182 = vmatprep.subr.mxu0 %v8630_v12 }
 0x1ea   :  { %7183 = vmatpush3.msra.mxu0 %v8628_v0 }
 0x1eb   :  { %7184 = vmatprep.subr.mxu0 %v8630_v12 }
 0x1ec   :  { %7185 = vmatpush3.msra.mxu0 %v8628_v0 }
 0x1ed   :  { %7186 = vmatprep.subr.mxu0 %v8630_v12 }
 0x1ee   :  { %7187 = vmatpush3.msra.mxu0 %v8628_v0 }
 0x1ef   :  { %7188 = vmatprep.subr.mxu0 %v8630_v12 }
 0x1f0   :  { %7189 = vmatpush3.msra.mxu0 %v8628_v0 }
 0x1f1   :  { %7190 = vmatprep.subr.mxu0 %v8630_v12 }
 0x1f2   :  { %7191 = vmatpush3.msra.mxu0 %v8628_v0 }
 0x1f3   :  { %7192 = vmatprep.subr.mxu0 %v8630_v12 }
 0x1f4   :  { %7193 = vmatpush3.msra.mxu0 %v8628_v0 }
 0x1f5   :  { %7194 = vmatprep.subr.mxu0 %v8630_v12 }
 0x1f6   :  { %7195 = vmatpush3.msra.mxu0 %v8628_v0 }
 0x1f7   :  { %7196 = vmatprep.subr.mxu0 %v8630_v12 }
 0x1f8   :  { %7197 = vmatpush3.msra.mxu0 %v8628_v0 }
 0x1f9   :  { %7236 = vmatprep.subr.bf16.mxu0 %v8630_v12 }
 0x297   :  { %v480_v52 = vpop.f32.mrf.mxu1 }
 0x298   :  { %v484_v53 = vmul.f32 0.0078125, %v480_v52 }
 0x299   :  { %v7120_v54 = vpop.f32.mrf.mxu1  ;;  %v552_v55 = vpop.f32.mrf.mxu0 }
 0x29a   :  { %v557_v56 = vmul.f32 %v484_v53, %v484_v53  ;;  %v556_v57 = vmul.f32 0.0078125, %v552_v55  ;;  %v560_v62 = vsub.f32 %v408_v47, %v484_v53 }
 0x29b   :  { %v7155_v58 = vpop.f32.mrf.mxu0 }
 0x29c   :  { %v558_v59 = vsub.f32 %v556_v57, %v557_v56  ;;  %v168_v58 = vld [vmem:[%s10734_s6] sm:$0x3] }
 0x29e   :  { %v559_v60 = vmax.f32 %v558_v59, 0.0 }
 0x2a0   :  { %v561_v61 = vadd.f32 1e-05, %v559_v60 }
 0x2a2   :  { %8534 = vrsqrt.f32 %v561_v61 }
 0x2af   :  { %v8535_v63 = vpop.eup %8534 }
 0x2b0   :  { %v563_v3 = vmul.f32 %v8535_v63, %v560_v62 }
 0x2b2   :  { %v569_v5 = vmul.f32 %v567_v4, %v563_v3 }
 0x2b4   :  { %v575_v8 = vadd.f32 %v573_v6, %v569_v5 }
 0x2b6   :  { %v8962_v9 = vmax.f32 %v575_v8, 0.0 }
 0x2b8   :  { %589 = vrot.lane.b32.xlu1 %v8962_v9, %s10768_s28  ;;  %598 = vrot.lane.b32.xlu0 %v8962_v9, %s10766_s29 }
 0x2bc   :  { %592 = vrot.lane.b32.xlu1 %v8962_v9, %s10760_s30  ;;  %595 = vrot.lane.b32.xlu0 %v8962_v9, %s10754_s0  ;;  %s10794_s0 = smov 8   ;;  %s10799_s30 = sld [smem:[#allocation12_spill]] }
 0x2c0   :  { %586 = vrot.lane.b32.xlu1 %v8962_v9, %s10756_s21  ;;  %580 = vrot.lane.b32.xlu0 %v8962_v9, %s10758_s1  ;;  %s10796_s21 = smov 9  }
 0x2c4   :  { %583 = vrot.lane.b32.xlu1 %v8962_v9, %s10762_s22  ;;  %577 = vrot.lane.b32.xlu0 %v8962_v9, %s10764_s24  ;;  %s10790_s22 = smov 119   ;;  %s10791_s24 = smov 121  }
 0x2c8   :  { %827 = vperm.xlu1 %8453, %v170_v10   ;;  %821 = vperm.xlu0 %8452, %v169_v11  }
 0x2cc   :  { %1084 = vperm.xlu1 %8453, %v6194_v13   ;;  %1079 = vperm.xlu0 %8452, %v6193_v14  }
 0x2d0   :  { %1096 = vperm.xlu1 %8453, %v6196_v15   ;;  %1091 = vperm.xlu0 %8452, %v6195_v16  }
 0x2d4   :  { %1305 = vperm.xlu1 %8453, %v6199_v17   ;;  %1299 = vperm.xlu0 %8452, %v6198_v18  }
 0x32a   :  { %v590_v25 = vpop.permute.xlu1 %589  ;;  %v599_v26 = vpop.permute.xlu0 %598 }
 0x32b   :  { %v591_v28 = vmul.f32 %v9009_v22, %v590_v25  ;;  %v600_v29 = vmul.f32 %v9014_v23, %v599_v26 }
 0x32d   :  { %v620_v32 = vpack.c.bf16 %v600_v29, %v600_v29  ;;  %v608_v35 = vrot.slane %v591_v28, 4 }
 0x32e   :  { %v593_v33 = vpop.permute.xlu1 %592  ;;  %v596_v34 = vpop.permute.xlu0 %595 }
 0x32f   :  { %v627_v36 = vsel %vm625_vm2, %v620_v32, 0  ;;  %v597_v37 = vmul.f32 %v9019_v24, %v596_v34  ;;  %v594_v40 = vmul.f32 %v9024_v27, %v593_v33  ;;  %v616_v44 = vsel %vm613_vm3, %v8962_v9, %v608_v35  ;;  %v8494_v32 = vld [vmem:[%s10737_s9] sm:$0xff]  }
 0x330   :  { %7157 = vmatpush3.bf16.msra.mxu1 %v627_v36 }
 0x331   :  { %v611_v41 = vrot.slane %v597_v37, 4  ;;  %7158 = vmatprep.subr.bf16.mxu1 %v8630_v12 }
 0x332   :  { %v587_v42 = vpop.permute.xlu1 %586  ;;  %v581_v43 = vpop.permute.xlu0 %580 }
 0x333   :  { %v617_v45 = vsel %vm613_vm3, %v594_v40, %v611_v41  ;;  %v588_v46 = vmul.f32 %v9031_v30, %v587_v42  ;;  %v582_v47 = vmul.f32 %v9036_v31, %v581_v43 }
 0x334   :  { %v619_v48 = vpack.c.bf16 %v617_v45, %v616_v44 }
 0x335   :  { %v605_v51 = vrot.slane %v588_v46, 4  ;;  %v602_v52 = vrot.slane %v582_v47, 4 }
 0x336   :  { %v584_v49 = vpop.permute.xlu1 %583  ;;  %7159 = vmatpush3.bf16.msra.mxu1 %v619_v48  ;;  %v578_v50 = vpop.permute.xlu0 %577 }
 0x337   :  { %v585_v53 = vmul.f32 %v9043_v38, %v584_v49  ;;  %v579_v54 = vmul.f32 %v9048_v39, %v578_v50  ;;  %7160 = vmatprep.subr.bf16.mxu1 %v8630_v12 }
 0x339   :  { %v615_v55 = vsel %vm613_vm3, %v585_v53, %v605_v51  ;;  %v614_v56 = vsel %vm613_vm3, %v579_v54, %v602_v52 }
 0x33a   :  { %v618_v57 = vpack.c.bf16 %v615_v55, %v614_v56 }
 0x33c   :  { %7161 = vmatpush3.bf16.msra.mxu1 %v618_v57 }
 0x33d   :  { %7201 = vmatprep.subr.mxu1 %v8630_v12 }
 0x33f   :  { %7163 = vmatmul.mubr.msk.bf16.vlgmr.msra.gmra.mxu1 %vm621_vm4, %v168_v58 }
 0x340   :  { %7202 = vmatpush3.msra.mxu1 %v8628_v0  ;;  %7233 = vmatprep.mubr.msk.f32.mxu1 %vm8631_vm0, %v8630_v12 }
 0x341   :  { %7203 = vmatprep.subr.mxu1 %v8630_v12 }
 0x342   :  { %7204 = vmatpush3.msra.mxu1 %v8628_v0 }
 0x343   :  { %7205 = vmatprep.subr.mxu1 %v8630_v12  ;;  %v822_v18 = vpop.permute.xlu0 %821  ;;  %v828_v20 = vpop.permute.xlu1 %827 }
 0x344   :  { %7206 = vmatpush3.msra.mxu1 %v8628_v0 }
 0x345   :  { %7207 = vmatprep.subr.mxu1 %v8630_v12 }
 0x346   :  { %7208 = vmatpush3.msra.mxu1 %v8628_v0 }
 0x347   :  { %7209 = vmatprep.subr.mxu1 %v8630_v12  ;;  %v1085_v57 = vpop.permute.xlu1 %1084 }
 0x348   :  { %7210 = vmatpush3.msra.mxu1 %v8628_v0 }
 0x349   :  { %7211 = vmatprep.subr.mxu1 %v8630_v12 }
 0x34a   :  { %7212 = vmatpush3.msra.mxu1 %v8628_v0 }
 0x34b   :  { %7213 = vmatprep.subr.mxu1 %v8630_v12 }
 0x34c   :  { %7214 = vmatpush3.msra.mxu1 %v8628_v0 }
 0x34d   :  { %7215 = vmatprep.subr.mxu1 %v8630_v12 }
 0x34e   :  { %7216 = vmatpush3.msra.mxu1 %v8628_v0 }
 0x34f   :  { %7217 = vmatprep.subr.mxu1 %v8630_v12 }
 0x350   :  { %7218 = vmatpush3.msra.mxu1 %v8628_v0 }
 0x351   :  { %7219 = vmatprep.subr.mxu1 %v8630_v12 }
 0x352   :  { %7220 = vmatpush3.msra.mxu1 %v8628_v0 }
 0x353   :  { %7221 = vmatprep.subr.mxu1 %v8630_v12 }
 0x354   :  { %7222 = vmatpush3.msra.mxu1 %v8628_v0 }
 0x355   :  { %7223 = vmatprep.subr.mxu1 %v8630_v12 }
 0x356   :  { %7224 = vmatpush3.msra.mxu1 %v8628_v0 }
 0x357   :  { %7225 = vmatprep.subr.mxu1 %v8630_v12 }
 0x358   :  { %7226 = vmatpush3.msra.mxu1 %v8628_v0 }
 0x359   :  { %7227 = vmatprep.subr.mxu1 %v8630_v12 }
 0x35a   :  { %7228 = vmatpush3.msra.mxu1 %v8628_v0 }
 0x35b   :  { %7229 = vmatprep.subr.mxu1 %v8630_v12 }
 0x35c   :  { %7230 = vmatpush3.msra.mxu1 %v8628_v0 }
 0x35d   :  { %7231 = vmatprep.subr.mxu1 %v8630_v12 }
 0x35e   :  { %7232 = vmatpush3.msra.mxu1 %v8628_v0 }
 0x35f   :  { %7277 = vmatprep.subr.mxu1 %v8628_v0 }
 0x3ff   :  { %v663_v59 = vpop.f32.mrf.mxu1 }
 0x400   :  { %v740_v60 = vmul.f32 %v663_v59, %v663_v59  ;;  %7199 = vmatmul.mubr.f32.vlgmr.msra.gmra.mxu0 %v663_v59 }
 0x401   :  { %v7164_v61 = vpop.f32.mrf.mxu1  ;;  %7238 = vmatprep.mubr.msk.bf16.mxu0 %vm8631_vm0, %v8630_v12 }
 0x402   :  { %7234 = vmatmul.mubr.f32.vlgmr.msra.gmra.mxu1 %v740_v60  ;;  %v1080_v60 = vpop.permute.xlu0 %1079 }
 0x403   :  { %v666_v62 = vpop.f32.mrf.mxu1  ;;  %7278 = vmatpush3.msra.mxu1 %v8628_v0 }
 0x404   :  { %7279 = vmatprep.subr.mxu1 %v8628_v0 }
 0x405   :  { %v7165_v63 = vpop.f32.mrf.mxu1  ;;  %7280 = vmatpush3.msra.mxu1 %v8628_v0 }
 0x406   :  { %7281 = vmatprep.subr.mxu1 %v8628_v0 }
 0x407   :  { %7282 = vmatpush3.msra.mxu1 %v8628_v0 }
 0x408   :  { %7283 = vmatprep.subr.mxu1 %v8628_v0 }
 0x409   :  { %7284 = vmatpush3.msra.mxu1 %v8628_v0 }
 0x40a   :  { %7285 = vmatprep.subr.mxu1 %v8628_v0 }
 0x40b   :  { %7286 = vmatpush3.msra.mxu1 %v8628_v0 }
 0x40c   :  { %7287 = vmatprep.subr.mxu1 %v8628_v0 }
 0x40d   :  { %7288 = vmatpush3.msra.mxu1 %v8628_v0 }
 0x40e   :  { %7289 = vmatprep.subr.mxu1 %v8628_v0 }
 0x40f   :  { %7290 = vmatpush3.msra.mxu1 %v8628_v0 }
 0x410   :  { %7291 = vmatprep.subr.mxu1 %v8628_v0 }
 0x411   :  { %7292 = vmatpush3.msra.mxu1 %v8628_v0 }
 0x412   :  { %7293 = vmatprep.subr.mxu1 %v8628_v0 }
 0x413   :  { %7294 = vmatpush3.msra.mxu1 %v8628_v0 }
 0x414   :  { %7295 = vmatprep.subr.mxu1 %v8628_v0 }
 0x415   :  { %7296 = vmatpush3.msra.mxu1 %v8628_v0 }
 0x416   :  { %7297 = vmatprep.subr.mxu1 %v8628_v0 }
 0x417   :  { %7298 = vmatpush3.msra.mxu1 %v8628_v0 }
 0x418   :  { %7299 = vmatprep.subr.mxu1 %v8628_v0 }
 0x419   :  { %7300 = vmatpush3.msra.mxu1 %v8628_v0 }
 0x41a   :  { %7301 = vmatprep.subr.mxu1 %v8628_v0 }
 0x41b   :  { %7302 = vmatpush3.msra.mxu1 %v8628_v0 }
 0x41c   :  { %7303 = vmatprep.subr.mxu1 %v8628_v0 }
 0x41d   :  { %7304 = vmatpush3.msra.mxu1 %v8628_v0 }
 0x41e   :  { %7305 = vmatprep.subr.mxu1 %v8628_v0 }
 0x41f   :  { %7306 = vmatpush3.msra.mxu1 %v8628_v0 }
 0x420   :  { %7307 = vmatprep.subr.mxu1 %v8628_v0 }
 0x421   :  { %7308 = vmatpush3.msra.mxu1 %v8628_v0 }
 0x422   :  { %7353 = vmatprep.subr.mxu1 %v8630_v12 }
 0x4c0   :  { %v735_v3 = vpop.f32.mrf.mxu0 }
 0x4c1   :  { %v739_v4 = vmul.f32 0.0078125, %v735_v3 }
 0x4c2   :  { %v7200_v5 = vpop.f32.mrf.mxu0  ;;  %v807_v6 = vpop.f32.mrf.mxu1 }
 0x4c3   :  { %v812_v8 = vmul.f32 %v739_v4, %v739_v4  ;;  %v811_v9 = vmul.f32 0.0078125, %v807_v6  ;;  %v815_v15 = vsub.f32 %v663_v59, %v739_v4  ;;  %v1097_v5 = vpop.permute.xlu1 %1096 }
 0x4c4   :  { %v7235_v10 = vpop.f32.mrf.mxu1 }
 0x4c5   :  { %v813_v11 = vsub.f32 %v811_v9, %v812_v8  ;;  %v1092_v9 = vpop.permute.xlu0 %1091 }
 0x4c7   :  { %v814_v13 = vmax.f32 %v813_v11, 0.0 }
 0x4c9   :  { %v816_v14 = vadd.f32 1e-05, %v814_v13 }
 0x4cb   :  { %8536 = vrsqrt.f32 %v816_v14 }
 0x4d8   :  { %v8537_v16 = vpop.eup %8536 }
 0x4d9   :  { %v818_v17 = vmul.f32 %v8537_v16, %v815_v15  ;;  %v6197_v15 = vld [vmem:[%s10789_s27 + $0x2] sm:$0x3] }
 0x4db   :  { %v824_v19 = vmul.f32 %v822_v18, %v818_v17 }
 0x4dd   :  { %v830_v25 = vadd.f32 %v828_v20, %v824_v19 }
 0x4df   :  { %v831_v26 = vmax.f32 %v830_v25, 0.0 }
 0x4e1   :  { %v832_v28 = vpack.c.bf16 %v831_v26, %v831_v26 }
 0x4e3   :  { %v843_v29 = vsel %vm625_vm2, %v832_v28, 0 }
 0x4e4   :  { %7237 = vmatpush3.bf16.msra.mxu0 %v843_v29 }
 0x4e5   :  { %7242 = vmatprep.subr.mxu0 %v8628_v0 }
 0x4e7   :  { %7239 = vmatmul.mubr.msk.bf16.vlgmr.msra.gmra.mxu0 %vm838_vm5, %v8494_v32 }
 0x4e8   :  { %7243 = vmatpush3.msra.mxu0 %v8628_v0 }
 0x4e9   :  { %7244 = vmatprep.subr.mxu0 %v8628_v0 }
 0x4ea   :  { %7245 = vmatpush3.msra.mxu0 %v8628_v0 }
 0x4eb   :  { %7246 = vmatprep.subr.mxu0 %v8628_v0 }
 0x4ec   :  { %7247 = vmatpush3.msra.mxu0 %v8628_v0 }
 0x4ed   :  { %7248 = vmatprep.subr.mxu0 %v8628_v0 }
 0x4ee   :  { %7249 = vmatpush3.msra.mxu0 %v8628_v0 }
 0x4ef   :  { %7250 = vmatprep.subr.mxu0 %v8628_v0 }
 0x4f0   :  { %7251 = vmatpush3.msra.mxu0 %v8628_v0 }
 0x4f1   :  { %7252 = vmatprep.subr.mxu0 %v8628_v0 }
 0x4f2   :  { %7253 = vmatpush3.msra.mxu0 %v8628_v0 }
 0x4f3   :  { %7254 = vmatprep.subr.mxu0 %v8628_v0 }
 0x4f4   :  { %7255 = vmatpush3.msra.mxu0 %v8628_v0 }
 0x4f5   :  { %7256 = vmatprep.subr.mxu0 %v8628_v0 }
 0x4f6   :  { %7257 = vmatpush3.msra.mxu0 %v8628_v0 }
 0x4f7   :  { %7258 = vmatprep.subr.mxu0 %v8628_v0 }
 0x4f8   :  { %7259 = vmatpush3.msra.mxu0 %v8628_v0 }
 0x4f9   :  { %7260 = vmatprep.subr.mxu0 %v8628_v0 }
 0x4fa   :  { %7261 = vmatpush3.msra.mxu0 %v8628_v0 }
 0x4fb   :  { %7262 = vmatprep.subr.mxu0 %v8628_v0 }
 0x4fc   :  { %7263 = vmatpush3.msra.mxu0 %v8628_v0 }
 0x4fd   :  { %7264 = vmatprep.subr.mxu0 %v8628_v0 }
 0x4fe   :  { %7265 = vmatpush3.msra.mxu0 %v8628_v0 }
 0x4ff   :  { %7266 = vmatprep.subr.mxu0 %v8628_v0 }
 0x500   :  { %7267 = vmatpush3.msra.mxu0 %v8628_v0 }
 0x501   :  { %7268 = vmatprep.subr.mxu0 %v8628_v0 }
 0x502   :  { %7269 = vmatpush3.msra.mxu0 %v8628_v0 }
 0x503   :  { %7270 = vmatprep.subr.mxu0 %v8628_v0 }
 0x504   :  { %7271 = vmatpush3.msra.mxu0 %v8628_v0 }
 0x505   :  { %7272 = vmatprep.subr.mxu0 %v8628_v0 }
 0x506   :  { %7273 = vmatpush3.msra.mxu0 %v8628_v0 }
 0x507   :  { %7312 = vmatprep.subr.bf16.mxu0 %v8630_v12 }
 0x5a7   :  { %v879_v33 = vpop.f32.mrf.mxu0 }
 0x5a8   :  { %v9174_v34 = vadd.f32 %v879_v33, %v8798_v1 }
 0x5a9   :  { %v7240_v35 = vpop.f32.mrf.mxu0 }
 0x5aa   :  { %7274 = vmatprep.mubr.f32.mxu0 %v9174_v34  ;;  %v984_v36 = vmul.f32 %v9174_v34, %v9174_v34 }
 0x5ab   :  { %v882_v37 = vpop.f32.mrf.mxu0 }
 0x5ac   :  { %v9180_v40 = vadd.f32 %v882_v37, %v8809_v2  ;;  %7309 = vmatprep.mubr.f32.mxu1 %v984_v36 }
 0x5ad   :  { %v7241_v41 = vpop.f32.mrf.mxu0 }
 0x5ae   :  { %7275 = vmatmul.mubr.f32.vlgmr.msra.gmra.mxu0 %v9180_v40  ;;  %v985_v42 = vmul.f32 %v9180_v40, %v9180_v40 }
 0x5af   :  { %7314 = vmatprep.mubr.msk.bf16.mxu0 %vm8631_vm0, %v8630_v12 }
 0x5b0   :  { %7310 = vmatmul.mubr.f32.vlgmr.msra.gmra.mxu1 %v985_v42 }
 0x5b1   :  { %7354 = vmatpush3.msra.mxu1 %v8628_v0  ;;  %7385 = vmatprep.mubr.msk.f32.mxu1 %vm8631_vm0, %v8630_v12 }
 0x5b2   :  { %7355 = vmatprep.subr.mxu1 %v8630_v12 }
 0x5b3   :  { %7356 = vmatpush3.msra.mxu1 %v8628_v0 }
 0x5b4   :  { %7357 = vmatprep.subr.mxu1 %v8630_v12 }
 0x5b5   :  { %7358 = vmatpush3.msra.mxu1 %v8628_v0 }
 0x5b6   :  { %7359 = vmatprep.subr.mxu1 %v8630_v12 }
 0x5b7   :  { %7360 = vmatpush3.msra.mxu1 %v8628_v0 }
 0x5b8   :  { %7361 = vmatprep.subr.mxu1 %v8630_v12 }
 0x5b9   :  { %7362 = vmatpush3.msra.mxu1 %v8628_v0 }
 0x5ba   :  { %7363 = vmatprep.subr.mxu1 %v8630_v12 }
 0x5bb   :  { %7364 = vmatpush3.msra.mxu1 %v8628_v0 }
 0x5bc   :  { %7365 = vmatprep.subr.mxu1 %v8630_v12 }
 0x5bd   :  { %7366 = vmatpush3.msra.mxu1 %v8628_v0 }
 0x5be   :  { %7367 = vmatprep.subr.mxu1 %v8630_v12 }
 0x5bf   :  { %7368 = vmatpush3.msra.mxu1 %v8628_v0 }
 0x5c0   :  { %7369 = vmatprep.subr.mxu1 %v8630_v12 }
 0x5c1   :  { %7370 = vmatpush3.msra.mxu1 %v8628_v0 }
 0x5c2   :  { %7371 = vmatprep.subr.mxu1 %v8630_v12 }
 0x5c3   :  { %7372 = vmatpush3.msra.mxu1 %v8628_v0 }
 0x5c4   :  { %7373 = vmatprep.subr.mxu1 %v8630_v12 }
 0x5c5   :  { %7374 = vmatpush3.msra.mxu1 %v8628_v0 }
 0x5c6   :  { %7375 = vmatprep.subr.mxu1 %v8630_v12 }
 0x5c7   :  { %7376 = vmatpush3.msra.mxu1 %v8628_v0 }
 0x5c8   :  { %7377 = vmatprep.subr.mxu1 %v8630_v12 }
 0x5c9   :  { %7378 = vmatpush3.msra.mxu1 %v8628_v0 }
 0x5ca   :  { %7379 = vmatprep.subr.mxu1 %v8630_v12 }
 0x5cb   :  { %7380 = vmatpush3.msra.mxu1 %v8628_v0 }
 0x5cc   :  { %7381 = vmatprep.subr.mxu1 %v8630_v12 }
 0x5cd   :  { %7382 = vmatpush3.msra.mxu1 %v8628_v0 }
 0x5ce   :  { %7383 = vmatprep.subr.mxu1 %v8630_v12 }
 0x5cf   :  { %7384 = vmatpush3.msra.mxu1 %v8628_v0 }
 0x5d0   :  { %7398 = vmatprep.subr.mxu1 %v8630_v12 }
 0x66e   :  { %v7276_v1 = vpop.f32.mrf.mxu0 }
 0x66f   :  { %v983_v2 = vmul.f32 0.0078125, %v7276_v1 }
 0x670   :  { %v973_v43 = vpop.f32.mrf.mxu0  ;;  %v7311_v44 = vpop.f32.mrf.mxu1 }
 0x671   :  { %v1064_v45 = vmul.f32 %v983_v2, %v983_v2  ;;  %v982_v46 = vmul.f32 0.0078125, %v973_v43  ;;  %v1062_v47 = vmul.f32 0.0078125, %v7311_v44  ;;  %v1070_v58 = vsub.f32 %v9180_v40, %v983_v2  ;;  %v1300_v43 = vpop.permute.xlu0 %1299 }
 0x672   :  { %v1052_v48 = vpop.f32.mrf.mxu1 }
 0x673   :  { %v1063_v49 = vmul.f32 %v982_v46, %v982_v46  ;;  %v1066_v50 = vsub.f32 %v1062_v47, %v1064_v45  ;;  %v1061_v51 = vmul.f32 0.0078125, %v1052_v48  ;;  %v1069_v61 = vsub.f32 %v9174_v34, %v982_v46  ;;  %v1306_v45 = vpop.permute.xlu1 %1305  ;;  %v6202_v48 = vld [vmem:[%s10736_s8 + $0x4] sm:$0xf] }
 0x675   :  { %v1068_v52 = vmax.f32 %v1066_v50, 0.0  ;;  %v1065_v53 = vsub.f32 %v1061_v51, %v1063_v49  ;;  %v6201_v49 = vld [vmem:[%s10735_s7 + $0x4] sm:$0xf]  ;;  %v6210_v50 = vld [vmem:[%s10786_s26 + $0x28] sm:$0xff] }
 0x676   :  { %v6209_v51 = vld [vmem:[%s10786_s26 + $0x20] sm:$0xff] }
 0x677   :  { %v1072_v54 = vadd.f32 1e-05, %v1068_v52  ;;  %v1067_v55 = vmax.f32 %v1065_v53, 0.0  ;;  %v6212_v52 = vld [vmem:[%s10787_s4 + $0x28] sm:$0xff]  ;;  %v6211_v53 = vld [vmem:[%s10787_s4 + $0x20] sm:$0xff] }
 0x679   :  { %8538 = vrsqrt.f32 %v1072_v54  ;;  %v1071_v56 = vadd.f32 1e-05, %v1067_v55  ;;  %v6215_v54 = vld [vmem:[%s10733_s5 + $0x8] sm:$0xf] }
 0x67a   :  { %v6214_v55 = vld [vmem:[%s10788_s23 + $0x8] sm:$0xf] }
 0x67b   :  { %8540 = vrsqrt.f32 %v1071_v56 }
 0x686   :  { %v8539_v59 = vpop.eup %8538 }
 0x687   :  { %v1076_v62 = vmul.f32 %v8539_v59, %v1070_v58 }
 0x688   :  { %v8541_v63 = vpop.eup %8540 }
 0x689   :  { %v1075_v3 = vmul.f32 %v8541_v63, %v1069_v61  ;;  %v1088_v4 = vmul.f32 %v1085_v57, %v1076_v62 }
 0x68b   :  { %v1087_v6 = vmul.f32 %v1080_v60, %v1075_v3  ;;  %v1100_v8 = vadd.f32 %v1097_v5, %v1088_v4 }
 0x68d   :  { %v1099_v10 = vadd.f32 %v1092_v9, %v1087_v6  ;;  %v1102_v13 = vmax.f32 %v1100_v8, 0.0 }
 0x68f   :  { %v1101_v11 = vmax.f32 %v1099_v10, 0.0 }
 0x691   :  { %v1103_v14 = vpack.c.bf16 %v1102_v13, %v1101_v11 }
 0x693   :  { %7313 = vmatpush3.bf16.msra.mxu0 %v1103_v14 }
 0x694   :  { %7318 = vmatprep.subr.mxu0 %v8630_v12 }
 0x696   :  { %7315 = vmatmul.mubr.msk.bf16.vlgmr.msra.gmra.mxu0 %vm370_vm1, %v6197_v15 }
 0x697   :  { %7319 = vmatpush3.msra.mxu0 %v8628_v0  ;;  %7350 = vmatprep.mubr.msk.f32.mxu0 %vm8631_vm0, %v8630_v12 }
 0x698   :  { %7320 = vmatprep.subr.mxu0 %v8630_v12 }
 0x699   :  { %7321 = vmatpush3.msra.mxu0 %v8628_v0 }
 0x69a   :  { %7322 = vmatprep.subr.mxu0 %v8630_v12 }
 0x69b   :  { %7323 = vmatpush3.msra.mxu0 %v8628_v0 }
 0x69c   :  { %7324 = vmatprep.subr.mxu0 %v8630_v12 }
 0x69d   :  { %7325 = vmatpush3.msra.mxu0 %v8628_v0 }
 0x69e   :  { %7326 = vmatprep.subr.mxu0 %v8630_v12 }
 0x69f   :  { %7327 = vmatpush3.msra.mxu0 %v8628_v0 }
 0x6a0   :  { %7328 = vmatprep.subr.mxu0 %v8630_v12 }
 0x6a1   :  { %7329 = vmatpush3.msra.mxu0 %v8628_v0 }
 0x6a2   :  { %7330 = vmatprep.subr.mxu0 %v8630_v12 }
 0x6a3   :  { %7331 = vmatpush3.msra.mxu0 %v8628_v0 }
 0x6a4   :  { %7332 = vmatprep.subr.mxu0 %v8630_v12 }
 0x6a5   :  { %7333 = vmatpush3.msra.mxu0 %v8628_v0 }
 0x6a6   :  { %7334 = vmatprep.subr.mxu0 %v8630_v12 }
 0x6a7   :  { %7335 = vmatpush3.msra.mxu0 %v8628_v0 }
 0x6a8   :  { %7336 = vmatprep.subr.mxu0 %v8630_v12 }
 0x6a9   :  { %7337 = vmatpush3.msra.mxu0 %v8628_v0 }
 0x6aa   :  { %7338 = vmatprep.subr.mxu0 %v8630_v12 }
 0x6ab   :  { %7339 = vmatpush3.msra.mxu0 %v8628_v0 }
 0x6ac   :  { %7340 = vmatprep.subr.mxu0 %v8630_v12 }
 0x6ad   :  { %7341 = vmatpush3.msra.mxu0 %v8628_v0 }
 0x6ae   :  { %7342 = vmatprep.subr.mxu0 %v8630_v12 }
 0x6af   :  { %7343 = vmatpush3.msra.mxu0 %v8628_v0 }
 0x6b0   :  { %7344 = vmatprep.subr.mxu0 %v8630_v12 }
 0x6b1   :  { %7345 = vmatpush3.msra.mxu0 %v8628_v0 }
 0x6b2   :  { %7346 = vmatprep.subr.mxu0 %v8630_v12 }
 0x6b3   :  { %7347 = vmatpush3.msra.mxu0 %v8628_v0 }
 0x6b4   :  { %7348 = vmatprep.subr.mxu0 %v8630_v12 }
 0x6b5   :  { %7349 = vmatpush3.msra.mxu0 %v8628_v0 }
 0x6b6   :  { %7388 = vmatprep.subr.bf16.mxu0 %v8630_v12 }
 0x756   :  { %v1141_v16 = vpop.f32.mrf.mxu0 }
 0x757   :  { %v1218_v17 = vmul.f32 %v1141_v16, %v1141_v16  ;;  %7351 = vmatmul.mubr.f32.vlgmr.msra.gmra.mxu0 %v1141_v16 }
 0x758   :  { %v7316_v18 = vpop.f32.mrf.mxu0  ;;  %7394 = vmatprep.mubr.msk.bf16.mxu0 %vm8631_vm0, %v8630_v12 }
 0x759   :  { %7386 = vmatmul.mubr.f32.vlgmr.msra.gmra.mxu1 %v1218_v17 }
 0x75a   :  { %v1144_v19 = vpop.f32.mrf.mxu0  ;;  %7399 = vmatpush3.msra.mxu1 %v8628_v0  ;;  %7430 = vmatprep.mubr.msk.f32.mxu1 %vm8631_vm0, %v8630_v12 }
 0x75b   :  { %7400 = vmatprep.subr.mxu1 %v8630_v12 }
 0x75c   :  { %v7317_v20 = vpop.f32.mrf.mxu0  ;;  %7401 = vmatpush3.msra.mxu1 %v8628_v0 }
 0x75d   :  { %7402 = vmatprep.subr.mxu1 %v8630_v12 }
 0x75e   :  { %7403 = vmatpush3.msra.mxu1 %v8628_v0 }
 0x75f   :  { %7404 = vmatprep.subr.mxu1 %v8630_v12 }
 0x760   :  { %7405 = vmatpush3.msra.mxu1 %v8628_v0 }
 0x761   :  { %7406 = vmatprep.subr.mxu1 %v8630_v12 }
 0x762   :  { %7407 = vmatpush3.msra.mxu1 %v8628_v0 }
 0x763   :  { %7408 = vmatprep.subr.mxu1 %v8630_v12 }
 0x764   :  { %7409 = vmatpush3.msra.mxu1 %v8628_v0 }
 0x765   :  { %7410 = vmatprep.subr.mxu1 %v8630_v12 }
 0x766   :  { %7411 = vmatpush3.msra.mxu1 %v8628_v0 }
 0x767   :  { %7412 = vmatprep.subr.mxu1 %v8630_v12 }
 0x768   :  { %7413 = vmatpush3.msra.mxu1 %v8628_v0 }
 0x769   :  { %7414 = vmatprep.subr.mxu1 %v8630_v12 }
 0x76a   :  { %7415 = vmatpush3.msra.mxu1 %v8628_v0 }
 0x76b   :  { %7416 = vmatprep.subr.mxu1 %v8630_v12 }
 0x76c   :  { %7417 = vmatpush3.msra.mxu1 %v8628_v0 }
 0x76d   :  { %7418 = vmatprep.subr.mxu1 %v8630_v12 }
 0x76e   :  { %7419 = vmatpush3.msra.mxu1 %v8628_v0 }
 0x76f   :  { %7420 = vmatprep.subr.mxu1 %v8630_v12 }
 0x770   :  { %7421 = vmatpush3.msra.mxu1 %v8628_v0 }
 0x771   :  { %7422 = vmatprep.subr.mxu1 %v8630_v12 }
 0x772   :  { %7423 = vmatpush3.msra.mxu1 %v8628_v0 }
 0x773   :  { %7424 = vmatprep.subr.mxu1 %v8630_v12 }
 0x774   :  { %7425 = vmatpush3.msra.mxu1 %v8628_v0 }
 0x775   :  { %7426 = vmatprep.subr.mxu1 %v8630_v12 }
 0x776   :  { %7427 = vmatpush3.msra.mxu1 %v8628_v0 }
 0x777   :  { %7428 = vmatprep.subr.mxu1 %v8630_v12 }
 0x778   :  { %7429 = vmatpush3.msra.mxu1 %v8628_v0 }
 0x779   :  { %7468 = vmatprep.subr.bf16.mxu1 %v8630_v12 }
 0x817   :  { %v1213_v25 = vpop.f32.mrf.mxu0 }
 0x818   :  { %v1217_v26 = vmul.f32 0.0078125, %v1213_v25 }
 0x819   :  { %v7352_v28 = vpop.f32.mrf.mxu0  ;;  %v1285_v29 = vpop.f32.mrf.mxu1 }
 0x81a   :  { %v1290_v32 = vmul.f32 %v1217_v26, %v1217_v26  ;;  %v1289_v33 = vmul.f32 0.0078125, %v1285_v29  ;;  %v1293_v42 = vsub.f32 %v1141_v16, %v1217_v26 }
 0x81b   :  { %v7387_v35 = vpop.f32.mrf.mxu1 }
 0x81c   :  { %v1291_v36 = vsub.f32 %v1289_v33, %v1290_v32  ;;  %v6200_v32 = vld [vmem:[%s10734_s6 + $0x2] sm:$0x3] }
 0x81e   :  { %v1292_v37 = vmax.f32 %v1291_v36, 0.0 }
 0x820   :  { %v1294_v41 = vadd.f32 1e-05, %v1292_v37 }
 0x822   :  { %8542 = vrsqrt.f32 %v1294_v41 }
 0x82f   :  { %v8543_v1 = vpop.eup %8542 }
 0x830   :  { %v1296_v2 = vmul.f32 %v8543_v1, %v1293_v42 }
 0x832   :  { %v1302_v44 = vmul.f32 %v1300_v43, %v1296_v2 }
 0x834   :  { %v1308_v46 = vadd.f32 %v1306_v45, %v1302_v44 }
 0x836   :  { %v1309_v47 = vmax.f32 %v1308_v46, 0.0 }
 0x838   :  { %1322 = vrot.lane.b32.xlu1 %v1309_v47, %s10768_s28  ;;  %1331 = vrot.lane.b32.xlu0 %v1309_v47, %s10790_s22  ;;  %s10797_s28 = smov 127  }
 0x83c   :  { %1325 = vrot.lane.b32.xlu1 %v1309_v47, %s10791_s24  ;;  %1328 = vrot.lane.b32.xlu0 %v1309_v47, %s10792_s2 }
 0x840   :  { %1319 = vrot.lane.b32.xlu1 %v1309_v47, %s10793_s25  ;;  %1313 = vrot.lane.b32.xlu0 %v1309_v47, %s10794_s0 }
 0x844   :  { %1316 = vrot.lane.b32.xlu1 %v1309_v47, %s10795_s3  ;;  %1310 = vrot.lane.b32.xlu0 %v1309_v47, %s10796_s21 }
 0x848   :  { %1557 = vperm.xlu1 %8453, %v6202_v48   ;;  %1551 = vperm.xlu0 %8452, %v6201_v49  }
 0x84c   :  { %1813 = vperm.xlu1 %8453, %v6210_v50   ;;  %1808 = vperm.xlu0 %8452, %v6209_v51  }
 0x850   :  { %1825 = vperm.xlu1 %8453, %v6212_v52   ;;  %1820 = vperm.xlu0 %8452, %v6211_v53  }
 0x854   :  { %2034 = vperm.xlu1 %8453, %v6215_v54   ;;  %2028 = vperm.xlu0 %8452, %v6214_v55  }
 0x8aa   :  { %v1323_v56 = vpop.permute.xlu1 %1322  ;;  %v1332_v57 = vpop.permute.xlu0 %1331 }
 0x8ab   :  { %v1324_v58 = vmul.f32 %v9009_v22, %v1323_v56  ;;  %v1333_v59 = vmul.f32 %v9014_v23, %v1332_v57 }
 0x8ad   :  { %v1352_v60 = vpack.c.bf16 %v1333_v59, %v1333_v59  ;;  %v1341_v63 = vrot.slane %v1324_v58, 4 }
 0x8ae   :  { %v1326_v61 = vpop.permute.xlu1 %1325  ;;  %v1329_v62 = vpop.permute.xlu0 %1328 }
 0x8af   :  { %v1357_v3 = vsel %vm625_vm2, %v1352_v60, 0  ;;  %v1330_v4 = vmul.f32 %v9019_v24, %v1329_v62  ;;  %v1327_v5 = vmul.f32 %v9024_v27, %v1326_v61  ;;  %v1348_v10 = vsel %vm613_vm3, %v1309_v47, %v1341_v63  ;;  %v8495_v60 = vld [vmem:[%s10737_s9 + $0x8] sm:$0xff]  }
 0x8b0   :  { %7389 = vmatpush3.bf16.msra.mxu0 %v1357_v3 }
 0x8b1   :  { %v1344_v6 = vrot.slane %v1330_v4, 4  ;;  %7390 = vmatprep.subr.bf16.mxu0 %v8630_v12 }
 0x8b2   :  { %v1320_v8 = vpop.permute.xlu1 %1319  ;;  %v1314_v9 = vpop.permute.xlu0 %1313 }
 0x8b3   :  { %v1349_v11 = vsel %vm613_vm3, %v1327_v5, %v1344_v6  ;;  %v1321_v13 = vmul.f32 %v9031_v30, %v1320_v8  ;;  %v1315_v14 = vmul.f32 %v9036_v31, %v1314_v9 }
 0x8b4   :  { %v1351_v15 = vpack.c.bf16 %v1349_v11, %v1348_v10 }
 0x8b5   :  { %v1338_v18 = vrot.slane %v1321_v13, 4  ;;  %v1335_v19 = vrot.slane %v1315_v14, 4 }
 0x8b6   :  { %v1317_v16 = vpop.permute.xlu1 %1316  ;;  %7391 = vmatpush3.bf16.msra.mxu0 %v1351_v15  ;;  %v1311_v17 = vpop.permute.xlu0 %1310 }
 0x8b7   :  { %v1318_v20 = vmul.f32 %v9043_v38, %v1317_v16  ;;  %v1312_v25 = vmul.f32 %v9048_v39, %v1311_v17  ;;  %7392 = vmatprep.subr.bf16.mxu0 %v8630_v12 }
 0x8b9   :  { %v1347_v26 = vsel %vm613_vm3, %v1318_v20, %v1338_v18  ;;  %v1346_v28 = vsel %vm613_vm3, %v1312_v25, %v1335_v19 }
 0x8ba   :  { %v1350_v29 = vpack.c.bf16 %v1347_v26, %v1346_v28 }
 0x8bc   :  { %7393 = vmatpush3.bf16.msra.mxu0 %v1350_v29 }
 0x8bd   :  { %7433 = vmatprep.subr.mxu0 %v8630_v12 }
 0x8bf   :  { %7395 = vmatmul.mubr.msk.bf16.vlgmr.msra.gmra.mxu0 %vm621_vm4, %v6200_v32 }
 0x8c0   :  { %7434 = vmatpush3.msra.mxu0 %v8628_v0  ;;  %7465 = vmatprep.mubr.msk.f32.mxu0 %vm8631_vm0, %v8630_v12 }
 0x8c1   :  { %7435 = vmatprep.subr.mxu0 %v8630_v12 }
 0x8c2   :  { %7436 = vmatpush3.msra.mxu0 %v8628_v0 }
 0x8c3   :  { %7437 = vmatprep.subr.mxu0 %v8630_v12  ;;  %v1552_v53 = vpop.permute.xlu0 %1551  ;;  %v1558_v55 = vpop.permute.xlu1 %1557 }
 0x8c4   :  { %7438 = vmatpush3.msra.mxu0 %v8628_v0 }
 0x8c5   :  { %7439 = vmatprep.subr.mxu0 %v8630_v12 }
 0x8c6   :  { %7440 = vmatpush3.msra.mxu0 %v8628_v0 }
 0x8c7   :  { %7441 = vmatprep.subr.mxu0 %v8630_v12 }
 0x8c8   :  { %7442 = vmatpush3.msra.mxu0 %v8628_v0 }
 0x8c9   :  { %7443 = vmatprep.subr.mxu0 %v8630_v12 }
 0x8ca   :  { %7444 = vmatpush3.msra.mxu0 %v8628_v0 }
 0x8cb   :  { %7445 = vmatprep.subr.mxu0 %v8630_v12 }
 0x8cc   :  { %7446 = vmatpush3.msra.mxu0 %v8628_v0 }
 0x8cd   :  { %7447 = vmatprep.subr.mxu0 %v8630_v12 }
 0x8ce   :  { %7448 = vmatpush3.msra.mxu0 %v8628_v0 }
 0x8cf   :  { %7449 = vmatprep.subr.mxu0 %v8630_v12 }
 0x8d0   :  { %7450 = vmatpush3.msra.mxu0 %v8628_v0 }
 0x8d1   :  { %7451 = vmatprep.subr.mxu0 %v8630_v12 }
 0x8d2   :  { %7452 = vmatpush3.msra.mxu0 %v8628_v0 }
 0x8d3   :  { %7453 = vmatprep.subr.mxu0 %v8630_v12 }
 0x8d4   :  { %7454 = vmatpush3.msra.mxu0 %v8628_v0 }
 0x8d5   :  { %7455 = vmatprep.subr.mxu0 %v8630_v12 }
 0x8d6   :  { %7456 = vmatpush3.msra.mxu0 %v8628_v0 }
 0x8d7   :  { %7457 = vmatprep.subr.mxu0 %v8630_v12 }
 0x8d8   :  { %7458 = vmatpush3.msra.mxu0 %v8628_v0 }
 0x8d9   :  { %7459 = vmatprep.subr.mxu0 %v8630_v12 }
 0x8da   :  { %7460 = vmatpush3.msra.mxu0 %v8628_v0 }
 0x8db   :  { %7461 = vmatprep.subr.mxu0 %v8630_v12 }
 0x8dc   :  { %7462 = vmatpush3.msra.mxu0 %v8628_v0 }
 0x8dd   :  { %7463 = vmatprep.subr.mxu0 %v8630_v12 }
 0x8de   :  { %7464 = vmatpush3.msra.mxu0 %v8628_v0 }
 0x8df   :  { %7509 = vmatprep.subr.mxu0 %v8628_v0 }
 0x97f   :  { %v1393_v33 = vpop.f32.mrf.mxu0 }
 0x980   :  { %v1470_v35 = vmul.f32 %v1393_v33, %v1393_v33  ;;  %7431 = vmatmul.mubr.f32.vlgmr.msra.gmra.mxu1 %v1393_v33 }
 0x981   :  { %v7396_v36 = vpop.f32.mrf.mxu0  ;;  %7470 = vmatprep.mubr.msk.bf16.mxu1 %vm8631_vm0, %v8630_v12 }
 0x982   :  { %7466 = vmatmul.mubr.f32.vlgmr.msra.gmra.mxu0 %v1470_v35 }
 0x983   :  { %v1396_v37 = vpop.f32.mrf.mxu0  ;;  %7510 = vmatpush3.msra.mxu0 %v8628_v0 }
 0x984   :  { %7511 = vmatprep.subr.mxu0 %v8628_v0  ;;  %v1809_v37 = vpop.permute.xlu0 %1808 }
 0x985   :  { %v7397_v41 = vpop.f32.mrf.mxu0  ;;  %7512 = vmatpush3.msra.mxu0 %v8628_v0 }
 0x986   :  { %7513 = vmatprep.subr.mxu0 %v8628_v0 }
 0x987   :  { %7514 = vmatpush3.msra.mxu0 %v8628_v0 }
 0x988   :  { %7515 = vmatprep.subr.mxu0 %v8628_v0 }
 0x989   :  { %7516 = vmatpush3.msra.mxu0 %v8628_v0 }
 0x98a   :  { %7517 = vmatprep.subr.mxu0 %v8628_v0 }
 0x98b   :  { %7518 = vmatpush3.msra.mxu0 %v8628_v0 }
 0x98c   :  { %7519 = vmatprep.subr.mxu0 %v8628_v0 }
 0x98d   :  { %7520 = vmatpush3.msra.mxu0 %v8628_v0 }
 0x98e   :  { %7521 = vmatprep.subr.mxu0 %v8628_v0 }
 0x98f   :  { %7522 = vmatpush3.msra.mxu0 %v8628_v0 }
 0x990   :  { %7523 = vmatprep.subr.mxu0 %v8628_v0 }
 0x991   :  { %7524 = vmatpush3.msra.mxu0 %v8628_v0 }
 0x992   :  { %7525 = vmatprep.subr.mxu0 %v8628_v0 }
 0x993   :  { %7526 = vmatpush3.msra.mxu0 %v8628_v0 }
 0x994   :  { %7527 = vmatprep.subr.mxu0 %v8628_v0 }
 0x995   :  { %7528 = vmatpush3.msra.mxu0 %v8628_v0 }
 0x996   :  { %7529 = vmatprep.subr.mxu0 %v8628_v0 }
 0x997   :  { %7530 = vmatpush3.msra.mxu0 %v8628_v0 }
 0x998   :  { %7531 = vmatprep.subr.mxu0 %v8628_v0 }
 0x999   :  { %7532 = vmatpush3.msra.mxu0 %v8628_v0 }
 0x99a   :  { %7533 = vmatprep.subr.mxu0 %v8628_v0 }
 0x99b   :  { %7534 = vmatpush3.msra.mxu0 %v8628_v0 }
 0x99c   :  { %7535 = vmatprep.subr.mxu0 %v8628_v0 }
 0x99d   :  { %7536 = vmatpush3.msra.mxu0 %v8628_v0 }
 0x99e   :  { %7537 = vmatprep.subr.mxu0 %v8628_v0 }
 0x99f   :  { %7538 = vmatpush3.msra.mxu0 %v8628_v0 }
 0x9a0   :  { %7539 = vmatprep.subr.mxu0 %v8628_v0 }
 0x9a1   :  { %7540 = vmatpush3.msra.mxu0 %v8628_v0 }
 0x9a2   :  { %7585 = vmatprep.subr.mxu0 %v8630_v12 }
 0xa40   :  { %v1465_v42 = vpop.f32.mrf.mxu1 }
 0xa41   :  { %v1469_v1 = vmul.f32 0.0078125, %v1465_v42 }
 0xa42   :  { %v7432_v2 = vpop.f32.mrf.mxu1  ;;  %v1537_v43 = vpop.f32.mrf.mxu0 }
 0xa43   :  { %v1542_v44 = vmul.f32 %v1469_v1, %v1469_v1  ;;  %v1541_v45 = vmul.f32 0.0078125, %v1537_v43  ;;  %v1545_v50 = vsub.f32 %v1393_v33, %v1469_v1  ;;  %v1814_v33 = vpop.permute.xlu1 %1813 }
 0xa44   :  { %v7467_v46 = vpop.f32.mrf.mxu0 }
 0xa45   :  { %v1543_v47 = vsub.f32 %v1541_v45, %v1542_v44 }
 0xa47   :  { %v1544_v48 = vmax.f32 %v1543_v47, 0.0  ;;  %v1826_v44 = vpop.permute.xlu1 %1825  ;;  %v1821_v47 = vpop.permute.xlu0 %1820 }
 0xa49   :  { %v1546_v49 = vadd.f32 1e-05, %v1544_v48 }
 0xa4b   :  { %8544 = vrsqrt.f32 %v1546_v49 }
 0xa58   :  { %v8545_v51 = vpop.eup %8544 }
 0xa59   :  { %v1548_v52 = vmul.f32 %v8545_v51, %v1545_v50 }
 0xa5b   :  { %v1554_v54 = vmul.f32 %v1552_v53, %v1548_v52  ;;  %v6213_v52 = vld [vmem:[%s10789_s27 + $0x4] sm:$0x3] }
 0xa5d   :  { %v1560_v56 = vadd.f32 %v1558_v55, %v1554_v54 }
 0xa5f   :  { %v1561_v57 = vmax.f32 %v1560_v56, 0.0 }
 0xa61   :  { %v1562_v58 = vpack.c.bf16 %v1561_v57, %v1561_v57 }
 0xa63   :  { %v1572_v59 = vsel %vm625_vm2, %v1562_v58, 0 }
 0xa64   :  { %7469 = vmatpush3.bf16.msra.mxu1 %v1572_v59 }
 0xa65   :  { %7474 = vmatprep.subr.mxu1 %v8628_v0 }
 0xa67   :  { %7471 = vmatmul.mubr.msk.bf16.vlgmr.msra.gmra.mxu1 %vm838_vm5, %v8495_v60 }
 0xa68   :  { %7475 = vmatpush3.msra.mxu1 %v8628_v0 }
 0xa69   :  { %7476 = vmatprep.subr.mxu1 %v8628_v0 }
 0xa6a   :  { %7477 = vmatpush3.msra.mxu1 %v8628_v0 }
 0xa6b   :  { %7478 = vmatprep.subr.mxu1 %v8628_v0 }
 0xa6c   :  { %7479 = vmatpush3.msra.mxu1 %v8628_v0 }
 0xa6d   :  { %7480 = vmatprep.subr.mxu1 %v8628_v0 }
 0xa6e   :  { %7481 = vmatpush3.msra.mxu1 %v8628_v0 }
 0xa6f   :  { %7482 = vmatprep.subr.mxu1 %v8628_v0 }
 0xa70   :  { %7483 = vmatpush3.msra.mxu1 %v8628_v0 }
 0xa71   :  { %7484 = vmatprep.subr.mxu1 %v8628_v0 }
 0xa72   :  { %7485 = vmatpush3.msra.mxu1 %v8628_v0 }
 0xa73   :  { %7486 = vmatprep.subr.mxu1 %v8628_v0 }
 0xa74   :  { %7487 = vmatpush3.msra.mxu1 %v8628_v0 }
 0xa75   :  { %7488 = vmatprep.subr.mxu1 %v8628_v0 }
 0xa76   :  { %7489 = vmatpush3.msra.mxu1 %v8628_v0 }
 0xa77   :  { %7490 = vmatprep.subr.mxu1 %v8628_v0 }
 0xa78   :  { %7491 = vmatpush3.msra.mxu1 %v8628_v0 }
 0xa79   :  { %7492 = vmatprep.subr.mxu1 %v8628_v0 }
 0xa7a   :  { %7493 = vmatpush3.msra.mxu1 %v8628_v0 }
 0xa7b   :  { %7494 = vmatprep.subr.mxu1 %v8628_v0 }
 0xa7c   :  { %7495 = vmatpush3.msra.mxu1 %v8628_v0 }
 0xa7d   :  { %7496 = vmatprep.subr.mxu1 %v8628_v0 }
 0xa7e   :  { %7497 = vmatpush3.msra.mxu1 %v8628_v0 }
 0xa7f   :  { %7498 = vmatprep.subr.mxu1 %v8628_v0 }
 0xa80   :  { %7499 = vmatpush3.msra.mxu1 %v8628_v0 }
 0xa81   :  { %7500 = vmatprep.subr.mxu1 %v8628_v0 }
 0xa82   :  { %7501 = vmatpush3.msra.mxu1 %v8628_v0 }
 0xa83   :  { %7502 = vmatprep.subr.mxu1 %v8628_v0 }
 0xa84   :  { %7503 = vmatpush3.msra.mxu1 %v8628_v0 }
 0xa85   :  { %7504 = vmatprep.subr.mxu1 %v8628_v0 }
 0xa86   :  { %7505 = vmatpush3.msra.mxu1 %v8628_v0 }
 0xa87   :  { %7544 = vmatprep.subr.bf16.mxu1 %v8630_v12 }
 0xb27   :  { %v1608_v61 = vpop.f32.mrf.mxu1 }
 0xb28   :  { %v9457_v62 = vadd.f32 %v1608_v61, %v9174_v34 }
 0xb29   :  { %v7472_v63 = vpop.f32.mrf.mxu1 }
 0xb2a   :  { %7506 = vmatprep.mubr.f32.mxu1 %v9457_v62  ;;  %v1713_v3 = vmul.f32 %v9457_v62, %v9457_v62 }
 0xb2b   :  { %v1611_v4 = vpop.f32.mrf.mxu1 }
 0xb2c   :  { %v9463_v5 = vadd.f32 %v1611_v4, %v9180_v40  ;;  %7541 = vmatprep.mubr.f32.mxu0 %v1713_v3 }
 0xb2d   :  { %v7473_v6 = vpop.f32.mrf.mxu1 }
 0xb2e   :  { %7507 = vmatmul.mubr.f32.vlgmr.msra.gmra.mxu1 %v9463_v5  ;;  %v1714_v8 = vmul.f32 %v9463_v5, %v9463_v5 }
 0xb2f   :  { %7546 = vmatprep.mubr.msk.bf16.mxu1 %vm8631_vm0, %v8630_v12 }
 0xb30   :  { %7542 = vmatmul.mubr.f32.vlgmr.msra.gmra.mxu0 %v1714_v8 }
 0xb31   :  { %7586 = vmatpush3.msra.mxu0 %v8628_v0  ;;  %7617 = vmatprep.mubr.msk.f32.mxu0 %vm8631_vm0, %v8630_v12 }
 0xb32   :  { %7587 = vmatprep.subr.mxu0 %v8630_v12 }
 0xb33   :  { %7588 = vmatpush3.msra.mxu0 %v8628_v0 }
 0xb34   :  { %7589 = vmatprep.subr.mxu0 %v8630_v12 }
 0xb35   :  { %7590 = vmatpush3.msra.mxu0 %v8628_v0 }
 0xb36   :  { %7591 = vmatprep.subr.mxu0 %v8630_v12 }
 0xb37   :  { %7592 = vmatpush3.msra.mxu0 %v8628_v0 }
 0xb38   :  { %7593 = vmatprep.subr.mxu0 %v8630_v12 }
 0xb39   :  { %7594 = vmatpush3.msra.mxu0 %v8628_v0 }
 0xb3a   :  { %7595 = vmatprep.subr.mxu0 %v8630_v12 }
 0xb3b   :  { %7596 = vmatpush3.msra.mxu0 %v8628_v0 }
 0xb3c   :  { %7597 = vmatprep.subr.mxu0 %v8630_v12 }
 0xb3d   :  { %7598 = vmatpush3.msra.mxu0 %v8628_v0 }
 0xb3e   :  { %7599 = vmatprep.subr.mxu0 %v8630_v12 }
 0xb3f   :  { %7600 = vmatpush3.msra.mxu0 %v8628_v0 }
 0xb40   :  { %7601 = vmatprep.subr.mxu0 %v8630_v12 }
 0xb41   :  { %7602 = vmatpush3.msra.mxu0 %v8628_v0 }
 0xb42   :  { %7603 = vmatprep.subr.mxu0 %v8630_v12 }
 0xb43   :  { %7604 = vmatpush3.msra.mxu0 %v8628_v0 }
 0xb44   :  { %7605 = vmatprep.subr.mxu0 %v8630_v12 }
 0xb45   :  { %7606 = vmatpush3.msra.mxu0 %v8628_v0 }
 0xb46   :  { %7607 = vmatprep.subr.mxu0 %v8630_v12 }
 0xb47   :  { %7608 = vmatpush3.msra.mxu0 %v8628_v0 }
 0xb48   :  { %7609 = vmatprep.subr.mxu0 %v8630_v12 }
 0xb49   :  { %7610 = vmatpush3.msra.mxu0 %v8628_v0 }
 0xb4a   :  { %7611 = vmatprep.subr.mxu0 %v8630_v12 }
 0xb4b   :  { %7612 = vmatpush3.msra.mxu0 %v8628_v0 }
 0xb4c   :  { %7613 = vmatprep.subr.mxu0 %v8630_v12 }
 0xb4d   :  { %7614 = vmatpush3.msra.mxu0 %v8628_v0 }
 0xb4e   :  { %7615 = vmatprep.subr.mxu0 %v8630_v12 }
 0xb4f   :  { %7616 = vmatpush3.msra.mxu0 %v8628_v0 }
 0xb50   :  { %7630 = vmatprep.subr.mxu0 %v8630_v12 }
 0xbee   :  { %v7508_v9 = vpop.f32.mrf.mxu1 }
 0xbef   :  { %v1712_v10 = vmul.f32 0.0078125, %v7508_v9 }
 0xbf0   :  { %v1702_v11 = vpop.f32.mrf.mxu1  ;;  %v7543_v13 = vpop.f32.mrf.mxu0 }
 0xbf1   :  { %v1793_v14 = vmul.f32 %v1712_v10, %v1712_v10  ;;  %v1711_v15 = vmul.f32 0.0078125, %v1702_v11  ;;  %v1791_v16 = vmul.f32 0.0078125, %v7543_v13  ;;  %v1799_v35 = vsub.f32 %v9463_v5, %v1712_v10 }
 0xbf2   :  { %v1781_v17 = vpop.f32.mrf.mxu0 }
 0xbf3   :  { %v1792_v18 = vmul.f32 %v1711_v15, %v1711_v15  ;;  %v1795_v19 = vsub.f32 %v1791_v16, %v1793_v14  ;;  %v1790_v20 = vmul.f32 0.0078125, %v1781_v17  ;;  %v1798_v41 = vsub.f32 %v9457_v62, %v1711_v15  ;;  %v2029_v14 = vpop.permute.xlu0 %2028  ;;  %v2035_v16 = vpop.permute.xlu1 %2034 }
 0xbf5   :  { %v1797_v25 = vmax.f32 %v1795_v19, 0.0  ;;  %v1794_v26 = vsub.f32 %v1790_v20, %v1792_v18  ;;  %v6218_v19 = vld [vmem:[%s10736_s8 + $0x8] sm:$0xf] }
 0xbf6   :  { %v6217_v20 = vld [vmem:[%s10735_s7 + $0x8] sm:$0xf] }
 0xbf7   :  { %v1801_v28 = vadd.f32 1e-05, %v1797_v25  ;;  %v1796_v29 = vmax.f32 %v1794_v26, 0.0  ;;  %v8459_v25 = vpack.i.bf16 %v9180_v40, %v9174_v34  ;;  %v6234_v26 = vld [vmem:[%s10786_s26 + $0x38] sm:$0xff] }
 0xbf9   :  { %8546 = vrsqrt.f32 %v1801_v28  ;;  %v1800_v32 = vadd.f32 1e-05, %v1796_v29  ;;  %v6233_v28 = vld [vmem:[%s10786_s26 + $0x30] sm:$0xff]  ;;  %v6236_v29 = vld [vmem:[%s10787_s4 + $0x38] sm:$0xff] }
 0xbfb   :  { %8548 = vrsqrt.f32 %v1800_v32  ;;  %v6235_v32 = vld [vmem:[%s10787_s4 + $0x30] sm:$0xff] }
 0xc06   :  { %v8547_v36 = vpop.eup %8546 }
 0xc07   :  { %v1805_v42 = vmul.f32 %v8547_v36, %v1799_v35  ;;  %v6238_v35 = vld [vmem:[%s10788_s23 + $0xc] sm:$0xf] }
 0xc08   :  { %v8549_v1 = vpop.eup %8548  ;;  %v6242_v36 = vld [vmem:[%s10736_s8 + $0xc] sm:$0xf] }
 0xc09   :  { %v1804_v2 = vmul.f32 %v8549_v1, %v1798_v41  ;;  %v1817_v43 = vmul.f32 %v1814_v33, %v1805_v42  ;;  %v6239_v33 = vld [vmem:[%s10733_s5 + $0xc] sm:$0xf]  ;;  %v6284_v42 = vld [vmem:[%s10786_s26 + $0x40] sm:$0xff] }
 0xc0a   :  { %v6285_v41 = vld [vmem:[%s10786_s26 + $0x48] sm:$0xff] }
 0xc0b   :  { %v1816_v45 = vmul.f32 %v1809_v37, %v1804_v2  ;;  %v1829_v46 = vadd.f32 %v1826_v44, %v1817_v43  ;;  %v6241_v37 = vld [vmem:[%s10735_s7 + $0xc] sm:$0xf]  ;;  %v6286_v2 = vld [vmem:[%s10787_s4 + $0x40] sm:$0xff]  ;;  %v6290_v43 = vld [vmem:[%s10733_s5 + $0x10] sm:$0xf] }
 0xc0c   :  { %v6287_v1 = vld [vmem:[%s10787_s4 + $0x48] sm:$0xff]  ;;  %v6289_v44 = vld [vmem:[%s10788_s23 + $0x10] sm:$0xf] }
 0xc0d   :  { %v1828_v48 = vadd.f32 %v1821_v47, %v1816_v45  ;;  %v1831_v50 = vmax.f32 %v1829_v46, 0.0  ;;  %v6293_v45 = vld [vmem:[%s10736_s8 + $0x10] sm:$0xf]  ;;  %v4927_v47 = vld [vmem:[%s10738_s10 + $0x8] sm:$0xff] }
 0xc0e   :  { %v6292_v46 = vld [vmem:[%s10735_s7 + $0x10] sm:$0xf] }
 0xc0f   :  { %v1830_v49 = vmax.f32 %v1828_v48, 0.0  ;;  %v4926_v48 = vld [vmem:[%s10738_s10] sm:$0xff] }
 0xc11   :  { %v1832_v51 = vpack.c.bf16 %v1831_v50, %v1830_v49  ;;  %v4929_v49 = vld [vmem:[%s10739_s11 + $0x8] sm:$0xff]  ;;  %v4928_v50 = vld [vmem:[%s10739_s11] sm:$0xff] }
 0xc13   :  { %7545 = vmatpush3.bf16.msra.mxu1 %v1832_v51  ;;  %v5179_v51 = vld [vmem:[%s10741_s13 + $0x8] sm:$0xff] }
 0xc14   :  { %7550 = vmatprep.subr.mxu1 %v8630_v12 }
 0xc16   :  { %7547 = vmatmul.mubr.msk.bf16.vlgmr.msra.gmra.mxu1 %vm370_vm1, %v6213_v52  ;;  %v5178_v52 = vld [vmem:[%s10741_s13] sm:$0xff] }
 0xc17   :  { %7551 = vmatpush3.msra.mxu1 %v8628_v0  ;;  %7582 = vmatprep.mubr.msk.f32.mxu1 %vm8631_vm0, %v8630_v12 }
 0xc18   :  { %7552 = vmatprep.subr.mxu1 %v8630_v12 }
 0xc19   :  { %7553 = vmatpush3.msra.mxu1 %v8628_v0 }
 0xc1a   :  { %7554 = vmatprep.subr.mxu1 %v8630_v12 }
 0xc1b   :  { %7555 = vmatpush3.msra.mxu1 %v8628_v0 }
 0xc1c   :  { %7556 = vmatprep.subr.mxu1 %v8630_v12 }
 0xc1d   :  { %7557 = vmatpush3.msra.mxu1 %v8628_v0 }
 0xc1e   :  { %7558 = vmatprep.subr.mxu1 %v8630_v12 }
 0xc1f   :  { %7559 = vmatpush3.msra.mxu1 %v8628_v0 }
 0xc20   :  { %7560 = vmatprep.subr.mxu1 %v8630_v12 }
 0xc21   :  { %7561 = vmatpush3.msra.mxu1 %v8628_v0 }
 0xc22   :  { %7562 = vmatprep.subr.mxu1 %v8630_v12 }
 0xc23   :  { %7563 = vmatpush3.msra.mxu1 %v8628_v0 }
 0xc24   :  { %7564 = vmatprep.subr.mxu1 %v8630_v12 }
 0xc25   :  { %7565 = vmatpush3.msra.mxu1 %v8628_v0 }
 0xc26   :  { %7566 = vmatprep.subr.mxu1 %v8630_v12 }
 0xc27   :  { %7567 = vmatpush3.msra.mxu1 %v8628_v0 }
 0xc28   :  { %7568 = vmatprep.subr.mxu1 %v8630_v12 }
 0xc29   :  { %7569 = vmatpush3.msra.mxu1 %v8628_v0 }
 0xc2a   :  { %7570 = vmatprep.subr.mxu1 %v8630_v12 }
 0xc2b   :  { %7571 = vmatpush3.msra.mxu1 %v8628_v0 }
 0xc2c   :  { %7572 = vmatprep.subr.mxu1 %v8630_v12 }
 0xc2d   :  { %7573 = vmatpush3.msra.mxu1 %v8628_v0 }
 0xc2e   :  { %7574 = vmatprep.subr.mxu1 %v8630_v12 }
 0xc2f   :  { %7575 = vmatpush3.msra.mxu1 %v8628_v0 }
 0xc30   :  { %7576 = vmatprep.subr.mxu1 %v8630_v12 }
 0xc31   :  { %7577 = vmatpush3.msra.mxu1 %v8628_v0 }
 0xc32   :  { %7578 = vmatprep.subr.mxu1 %v8630_v12 }
 0xc33   :  { %7579 = vmatpush3.msra.mxu1 %v8628_v0 }
 0xc34   :  { %7580 = vmatprep.subr.mxu1 %v8630_v12 }
 0xc35   :  { %7581 = vmatpush3.msra.mxu1 %v8628_v0 }
 0xc36   :  { %7620 = vmatprep.subr.bf16.mxu1 %v8630_v12 }
 0xcd6   :  { %v1870_v53 = vpop.f32.mrf.mxu1 }
 0xcd7   :  { %v1947_v54 = vmul.f32 %v1870_v53, %v1870_v53  ;;  %7583 = vmatmul.mubr.f32.vlgmr.msra.gmra.mxu1 %v1870_v53 }
 0xcd8   :  { %v7548_v55 = vpop.f32.mrf.mxu1  ;;  %7626 = vmatprep.mubr.msk.bf16.mxu1 %vm8631_vm0, %v8630_v12 }
 0xcd9   :  { %7618 = vmatmul.mubr.f32.vlgmr.msra.gmra.mxu0 %v1947_v54  ;;  %v5180_v54 = vld [vmem:[%s10742_s14] sm:$0xff]  ;;  %v6325_v55 = vld [vmem:[%s10786_s26 + $0x58] sm:$0xff] }
 0xcda   :  { %v1873_v56 = vpop.f32.mrf.mxu1  ;;  %7631 = vmatpush3.msra.mxu0 %v8628_v0  ;;  %7662 = vmatprep.mubr.msk.f32.mxu0 %vm8631_vm0, %v8630_v12 }
 0xcdb   :  { %7632 = vmatprep.subr.mxu0 %v8630_v12  ;;  %v6324_v56 = vld [vmem:[%s10786_s26 + $0x50] sm:$0xff] }
 0xcdc   :  { %v7549_v57 = vpop.f32.mrf.mxu1  ;;  %7633 = vmatpush3.msra.mxu0 %v8628_v0 }
 0xcdd   :  { %7634 = vmatprep.subr.mxu0 %v8630_v12  ;;  %v6327_v57 = vld [vmem:[%s10787_s4 + $0x58] sm:$0xff] }
 0xcde   :  { %7635 = vmatpush3.msra.mxu0 %v8628_v0 }
 0xcdf   :  { %7636 = vmatprep.subr.mxu0 %v8630_v12 }
 0xce0   :  { %7637 = vmatpush3.msra.mxu0 %v8628_v0 }
 0xce1   :  { %7638 = vmatprep.subr.mxu0 %v8630_v12 }
 0xce2   :  { %7639 = vmatpush3.msra.mxu0 %v8628_v0 }
 0xce3   :  { %7640 = vmatprep.subr.mxu0 %v8630_v12 }
 0xce4   :  { %7641 = vmatpush3.msra.mxu0 %v8628_v0 }
 0xce5   :  { %7642 = vmatprep.subr.mxu0 %v8630_v12 }
 0xce6   :  { %7643 = vmatpush3.msra.mxu0 %v8628_v0 }
 0xce7   :  { %7644 = vmatprep.subr.mxu0 %v8630_v12 }
 0xce8   :  { %7645 = vmatpush3.msra.mxu0 %v8628_v0 }
 0xce9   :  { %7646 = vmatprep.subr.mxu0 %v8630_v12 }
 0xcea   :  { %7647 = vmatpush3.msra.mxu0 %v8628_v0 }
 0xceb   :  { %7648 = vmatprep.subr.mxu0 %v8630_v12 }
 0xcec   :  { %7649 = vmatpush3.msra.mxu0 %v8628_v0 }
 0xced   :  { %7650 = vmatprep.subr.mxu0 %v8630_v12 }
 0xcee   :  { %7651 = vmatpush3.msra.mxu0 %v8628_v0 }
 0xcef   :  { %7652 = vmatprep.subr.mxu0 %v8630_v12 }
 0xcf0   :  { %7653 = vmatpush3.msra.mxu0 %v8628_v0 }
 0xcf1   :  { %7654 = vmatprep.subr.mxu0 %v8630_v12 }
 0xcf2   :  { %7655 = vmatpush3.msra.mxu0 %v8628_v0 }
 0xcf3   :  { %7656 = vmatprep.subr.mxu0 %v8630_v12 }
 0xcf4   :  { %7657 = vmatpush3.msra.mxu0 %v8628_v0 }
 0xcf5   :  { %7658 = vmatprep.subr.mxu0 %v8630_v12 }
 0xcf6   :  { %7659 = vmatpush3.msra.mxu0 %v8628_v0 }
 0xcf7   :  { %7660 = vmatprep.subr.mxu0 %v8630_v12 }
 0xcf8   :  { %7661 = vmatpush3.msra.mxu0 %v8628_v0 }
 0xcf9   :  { %7700 = vmatprep.subr.bf16.mxu0 %v8630_v12 }
 0xd97   :  { %v1942_v58 = vpop.f32.mrf.mxu1 }
 0xd98   :  { %v1946_v59 = vmul.f32 0.0078125, %v1942_v58  ;;  %v6326_v58 = vld [vmem:[%s10787_s4 + $0x50] sm:$0xff]  ;;  %s10802_s4 = sld [smem:[#allocation11_spill]] }
 0xd99   :  { %v7584_v60 = vpop.f32.mrf.mxu1  ;;  %v2014_v61 = vpop.f32.mrf.mxu0 }
 0xd9a   :  { %v2019_v63 = vmul.f32 %v1946_v59, %v1946_v59  ;;  %v2018_v3 = vmul.f32 0.0078125, %v2014_v61  ;;  %v2022_v10 = vsub.f32 %v1870_v53, %v1946_v59  ;;  %v5181_v53 = vld [vmem:[%s10742_s14 + $0x8] sm:$0xff]  ;;  %v6330_v59 = vld [vmem:[%s10733_s5 + $0x14] sm:$0xf]  ;;  %s10798_s14 = sld [smem:[#allocation13_spill]] }
 0xd9b   :  { %v7619_v4 = vpop.f32.mrf.mxu0  ;;  %v6329_v60 = vld [vmem:[%s10788_s23 + $0x14] sm:$0xf] }
 0xd9c   :  { %v2020_v6 = vsub.f32 %v2018_v3, %v2019_v63 }
 0xd9e   :  { %v2021_v8 = vmax.f32 %v2020_v6, 0.0 }
 0xda0   :  { %v2023_v9 = vadd.f32 1e-05, %v2021_v8 }
 0xda2   :  { %8550 = vrsqrt.f32 %v2023_v9 }
 0xdaf   :  { %v8551_v11 = vpop.eup %8550 }
 0xdb0   :  { %v2025_v13 = vmul.f32 %v8551_v11, %v2022_v10 }
 0xdb2   :  { %v2031_v15 = vmul.f32 %v2029_v14, %v2025_v13 }
 0xdb4   :  { %v2037_v17 = vadd.f32 %v2035_v16, %v2031_v15 }
 0xdb6   :  { %v9581_v18 = vmax.f32 %v2037_v17, 0.0 }
 0xdb8   :  { %2051 = vrot.lane.b32.xlu1 %v9581_v18, %s10797_s28  ;;  %2060 = vrot.lane.b32.xlu0 %v9581_v18, %s10790_s22 }
 0xdbc   :  { %2054 = vrot.lane.b32.xlu1 %v9581_v18, %s10791_s24  ;;  %2057 = vrot.lane.b32.xlu0 %v9581_v18, %s10792_s2 }
 0xdc0   :  { %2048 = vrot.lane.b32.xlu1 %v9581_v18, %s10793_s25  ;;  %2042 = vrot.lane.b32.xlu0 %v9581_v18, %s10794_s0 }
 0xdc4   :  { %2045 = vrot.lane.b32.xlu1 %v9581_v18, %s10795_s3  ;;  %2039 = vrot.lane.b32.xlu0 %v9581_v18, %s10796_s21 }
 0xdc8   :  { %2286 = vperm.xlu1 %8453, %v6218_v19   ;;  %2280 = vperm.xlu0 %8452, %v6217_v20  }
 0xdcc   :  { %8460 = vrot.lane.b32.xlu1 %v8459_v25, %s10794_s0  ;;  %8455 = vrot.lane.b32.xlu0 %v8459_v25, %s10796_s21 }
 0xdd0   :  { %8470 = vrot.lane.b32.xlu1 %v8459_v25, %s10793_s25  ;;  %8465 = vrot.lane.b32.xlu0 %v8459_v25, %s10795_s3 }
 0xdd4   :  { %8480 = vrot.lane.b32.xlu1 %v8459_v25, %s10791_s24  ;;  %8475 = vrot.lane.b32.xlu0 %v8459_v25, %s10797_s28 }
 0xdd8   :  { %8490 = vrot.lane.b32.xlu1 %v8459_v25, %s10790_s22  ;;  %8485 = vrot.lane.b32.xlu0 %v8459_v25, %s10792_s2 }
 0xddc   :  { %2781 = vperm.xlu1 %8453, %v6234_v26   ;;  %2776 = vperm.xlu0 %8452, %v6233_v28  }
 0xde0   :  { %2793 = vperm.xlu1 %8453, %v6236_v29   ;;  %2788 = vperm.xlu0 %8452, %v6235_v32  }
 0xde4   :  { %3008 = vperm.xlu1 %8453, %v6239_v33   ;;  %3002 = vperm.xlu0 %8452, %v6238_v35  }
 0xde8   :  { %3714 = vperm.xlu1 %8453, %v6242_v36   ;;  %3708 = vperm.xlu0 %8452, %v6241_v37  }
 0xdec   :  { %3982 = vperm.xlu1 %8453, %v6285_v41   ;;  %3977 = vperm.xlu0 %8452, %v6284_v42  }
 0xdf0   :  { %3994 = vperm.xlu1 %8453, %v6287_v1   ;;  %3989 = vperm.xlu0 %8452, %v6286_v2   ;;  %v6216_v1 = vld [vmem:[%s10734_s6 + $0x4] sm:$0x3] }
 0xdf4   :  { %4209 = vperm.xlu1 %8453, %v6290_v43   ;;  %4203 = vperm.xlu0 %8452, %v6289_v44  }
 0xdf8   :  { %4807 = vperm.xlu1 %8453, %v6293_v45   ;;  %4801 = vperm.xlu0 %8452, %v6292_v46  }
 0xdfc   :  { %5107 = vperm.xlu1 %8453, %v4927_v47   ;;  %5102 = vperm.xlu0 %8452, %v4926_v48  }
 0xe00   :  { %5119 = vperm.xlu1 %8453, %v4929_v49   ;;  %5114 = vperm.xlu0 %8452, %v4928_v50  }
 0xe04   :  { %5359 = vperm.xlu1 %8453, %v5179_v51   ;;  %5354 = vperm.xlu0 %8452, %v5178_v52  }
 0xe08   :  { %5371 = vperm.xlu1 %8453, %v5181_v53   ;;  %5366 = vperm.xlu0 %8452, %v5180_v54  }
 0xe0c   :  { %5640 = vperm.xlu1 %8453, %v6325_v55   ;;  %5635 = vperm.xlu0 %8452, %v6324_v56  }
 0xe10   :  { %5652 = vperm.xlu1 %8453, %v6327_v57   ;;  %5647 = vperm.xlu0 %8452, %v6326_v58   ;;  %v8590_v58 = vld [vmem:[%s10744_s16] sm:$0x1] }
 0xe11   :  { %vm2364_vm6 = vcmp.gt.f32.partialorder %v8590_v58, 0.0 }
 0xe14   :  { %5861 = vperm.xlu1 %8453, %v6330_v59   ;;  %5855 = vperm.xlu0 %8452, %v6329_v60  }
 0xe2a   :  { %v2052_v61 = vpop.permute.xlu1 %2051  ;;  %v2061_v63 = vpop.permute.xlu0 %2060 }
 0xe2b   :  { %v2053_v3 = vmul.f32 %v9009_v22, %v2052_v61  ;;  %v2062_v4 = vmul.f32 %v9014_v23, %v2061_v63  ;;  %v2365_v61 = vsel %vm2364_vm6, 1, %v8629_v7 }
 0xe2d   :  { %v2081_v6 = vpack.c.bf16 %v2062_v4, %v2062_v4  ;;  %v2070_v10 = vrot.slane %v2053_v3, 4  ;;  %v8591_v4 = vld [vmem:[%s10744_s16 + $0x1] sm:$0x1] }
 0xe2e   :  { %v2055_v8 = vpop.permute.xlu1 %2054  ;;  %v2058_v9 = vpop.permute.xlu0 %2057  ;;  %vm2379_vm7 = vcmp.gt.f32.partialorder %v8591_v4, 0.0 }
 0xe2f   :  { %v2086_v11 = vsel %vm625_vm2, %v2081_v6, 0  ;;  %v2059_v13 = vmul.f32 %v9019_v24, %v2058_v9  ;;  %v2056_v14 = vmul.f32 %v9024_v27, %v2055_v8  ;;  %v2077_v19 = vsel %vm613_vm3, %v9581_v18, %v2070_v10  ;;  %v8592_v10 = vld [vmem:[%s10744_s16 + $0x2] sm:$0x1] }
 0xe30   :  { %7621 = vmatpush3.bf16.msra.mxu1 %v2086_v11  ;;  %v2369_v6 = vrot.slane %v2365_v61, %v9004_v21  ;;  %vm2394_vm8 = vcmp.gt.f32.partialorder %v8592_v10, 0.0 }
 0xe31   :  { %v2073_v15 = vrot.slane %v2059_v13, 4  ;;  %7622 = vmatprep.subr.bf16.mxu1 %v8630_v12  ;;  %v2380_v13 = vsel %vm2379_vm7, 1, %v8629_v7 }
 0xe32   :  { %v2049_v16 = vpop.permute.xlu1 %2048  ;;  %v2043_v17 = vpop.permute.xlu0 %2042  ;;  %vm2370_vm9 = vcmp.eq.s32.totalorder %v2369_v6, 1 }
 0xe33   :  { %v2078_v20 = vsel %vm613_vm3, %v2056_v14, %v2073_v15  ;;  %v2050_v25 = vmul.f32 %v9031_v30, %v2049_v16  ;;  %v2044_v26 = vmul.f32 %v9036_v31, %v2043_v17  ;;  %v2395_v17 = vsel %vm2394_vm8, 1, %v8629_v7 }
 0xe34   :  { %v2080_v28 = vpack.c.bf16 %v2078_v20, %v2077_v19  ;;  %v2384_v19 = vrot.slane %v2380_v13, %v9004_v21 }
 0xe35   :  { %v2067_v33 = vrot.slane %v2050_v25, 4  ;;  %v2064_v35 = vrot.slane %v2044_v26, 4 }
 0xe36   :  { %v2046_v29 = vpop.permute.xlu1 %2045  ;;  %7623 = vmatpush3.bf16.msra.mxu1 %v2080_v28  ;;  %v2040_v32 = vpop.permute.xlu0 %2039  ;;  %vm2385_vm11 = vcmp.eq.s32.totalorder %v2384_v19, 1 }
 0xe37   :  { %v2047_v36 = vmul.f32 %v9043_v38, %v2046_v29  ;;  %v2041_v37 = vmul.f32 %v9048_v39, %v2040_v32  ;;  %7624 = vmatprep.subr.bf16.mxu1 %v8630_v12  ;;  %v8593_v29 = vld [vmem:[%s10744_s16 + $0x3] sm:$0x1]  ;;  %v2399_v32 = vrot.slane %v2395_v17, %v9004_v21 }
 0xe38   :  { %vm2409_vm10 = vcmp.gt.f32.partialorder %v8593_v29, 0.0 }
 0xe39   :  { %v2076_v18 = vsel %vm613_vm3, %v2047_v36, %v2067_v33  ;;  %v2075_v41 = vsel %vm613_vm3, %v2041_v37, %v2064_v35  ;;  %v8496_v36 = vld [vmem:[%s10737_s9 + $0x10] sm:$0xff]   ;;  %vm2400_vm13 = vcmp.eq.s32.totalorder %v2399_v32, 1  ;;  %v8501_v32 = vld [vmem:[%s10798_s14 + $0x18] sm:$0xff]  }
 0xe3a   :  { %v2079_v42 = vpack.c.bf16 %v2076_v18, %v2075_v41  ;;  %v8497_v41 = vld [vmem:[%s10798_s14 + $0x38] sm:$0xff]  }
 0xe3c   :  { %7625 = vmatpush3.bf16.msra.mxu1 %v2079_v42 }
 0xe3d   :  { %7665 = vmatprep.subr.mxu1 %v8630_v12 }
 0xe3f   :  { %7627 = vmatmul.mubr.msk.bf16.vlgmr.msra.gmra.mxu1 %vm621_vm4, %v6216_v1 }
 0xe40   :  { %7666 = vmatpush3.msra.mxu1 %v8628_v0  ;;  %7697 = vmatprep.mubr.msk.f32.mxu1 %vm8631_vm0, %v8630_v12 }
 0xe41   :  { %7667 = vmatprep.subr.mxu1 %v8630_v12 }
 0xe42   :  { %7668 = vmatpush3.msra.mxu1 %v8628_v0 }
 0xe43   :  { %7669 = vmatprep.subr.mxu1 %v8630_v12  ;;  %v2281_v57 = vpop.permute.xlu0 %2280  ;;  %v2287_v3 = vpop.permute.xlu1 %2286 }
 0xe44   :  { %7670 = vmatpush3.msra.mxu1 %v8628_v0 }
 0xe45   :  { %7671 = vmatprep.subr.mxu1 %v8630_v12 }
 0xe46   :  { %7672 = vmatpush3.msra.mxu1 %v8628_v0 }
 0xe47   :  { %7673 = vmatprep.subr.mxu1 %v8630_v12  ;;  %v8456_v8 = vpop.permute.xlu0 %8455  ;;  %v8461_v20 = vpop.permute.xlu1 %8460 }
 0xe48   :  { %7674 = vmatpush3.msra.mxu1 %v8628_v0  ;;  %v8458_v14 = vunpack.i.h.bf16 %v8456_v8  ;;  %v8457_v15 = vunpack.i.l.bf16 %v8456_v8  ;;  %v8463_v37 = vunpack.i.h.bf16 %v8461_v20  ;;  %v8462_v18 = vunpack.i.l.bf16 %v8461_v20  ;;  %v8597_v20 = vld [vmem:[%s10744_s16 + $0x8] sm:$0x1] }
 0xe49   :  { %7675 = vmatprep.subr.mxu1 %v8630_v12  ;;  %vm2469_vm8 = vcmp.gt.f32.partialorder %v8597_v20, 0.0 }
 0xe4a   :  { %7676 = vmatpush3.msra.mxu1 %v8628_v0  ;;  %v2372_v26 = vsel %vm2370_vm9, %v8458_v14, -1e+30  ;;  %v2371_v28 = vsel %vm2370_vm9, %v8457_v15, -1e+30 }
 0xe4b   :  { %7677 = vmatprep.subr.mxu1 %v8630_v12  ;;  %v8466_v33 = vpop.permute.xlu0 %8465  ;;  %v2374_v42 = vmax.f32 %v9180_v40, %v2372_v26  ;;  %v2373_v1 = vmax.f32 %v9174_v34, %v2371_v28  ;;  %v8498_v34 = vld [vmem:[%s10798_s14 + $0x30] sm:$0xff]  }
 0xe4c   :  { %7678 = vmatpush3.msra.mxu1 %v8628_v0 }
 0xe4d   :  { %7679 = vmatprep.subr.mxu1 %v8630_v12 }
 0xe4e   :  { %7680 = vmatpush3.msra.mxu1 %v8628_v0 }
 0xe4f   :  { %7681 = vmatprep.subr.mxu1 %v8630_v12 }
 0xe50   :  { %7682 = vmatpush3.msra.mxu1 %v8628_v0 }
 0xe51   :  { %7683 = vmatprep.subr.mxu1 %v8630_v12 }
 0xe52   :  { %7684 = vmatpush3.msra.mxu1 %v8628_v0 }
 0xe53   :  { %7685 = vmatprep.subr.mxu1 %v8630_v12 }
 0xe54   :  { %7686 = vmatpush3.msra.mxu1 %v8628_v0 }
 0xe55   :  { %7687 = vmatprep.subr.mxu1 %v8630_v12 }
 0xe56   :  { %7688 = vmatpush3.msra.mxu1 %v8628_v0 }
 0xe57   :  { %7689 = vmatprep.subr.mxu1 %v8630_v12 }
 0xe58   :  { %7690 = vmatpush3.msra.mxu1 %v8628_v0 }
 0xe59   :  { %7691 = vmatprep.subr.mxu1 %v8630_v12 }
 0xe5a   :  { %7692 = vmatpush3.msra.mxu1 %v8628_v0 }
 0xe5b   :  { %7693 = vmatprep.subr.mxu1 %v8630_v12 }
 0xe5c   :  { %7694 = vmatpush3.msra.mxu1 %v8628_v0 }
 0xe5d   :  { %7695 = vmatprep.subr.mxu1 %v8630_v12 }
 0xe5e   :  { %7696 = vmatpush3.msra.mxu1 %v8628_v0 }
 0xe5f   :  { %7726 = vmatprep.subr.mxu1 %v8628_v0 }
 0xeff   :  { %v2122_v2 = vpop.f32.mrf.mxu1 }
 0xf00   :  { %v2199_v43 = vmul.f32 %v2122_v2, %v2122_v2  ;;  %7663 = vmatmul.mubr.f32.vlgmr.msra.gmra.mxu0 %v2122_v2 }
 0xf01   :  { %v7628_v44 = vpop.f32.mrf.mxu1  ;;  %7702 = vmatprep.mubr.msk.bf16.mxu0 %vm8631_vm0, %v8630_v12 }
 0xf02   :  { %7698 = vmatmul.mubr.f32.vlgmr.msra.gmra.mxu1 %v2199_v43  ;;  %v2410_v43 = vsel %vm2409_vm10, 1, %v8629_v7  ;;  %v8468_v44 = vunpack.i.h.bf16 %v8466_v33 }
 0xf03   :  { %v2125_v45 = vpop.f32.mrf.mxu1  ;;  %7727 = vmatpush3.msra.mxu1 %v8628_v0 }
 0xf04   :  { %7728 = vmatprep.subr.mxu1 %v8628_v0  ;;  %v8467_v45 = vunpack.i.l.bf16 %v8466_v33 }
 0xf05   :  { %v7629_v46 = vpop.f32.mrf.mxu1  ;;  %7729 = vmatpush3.msra.mxu1 %v8628_v0 }
 0xf06   :  { %7730 = vmatprep.subr.mxu1 %v8628_v0  ;;  %v2387_v46 = vsel %vm2385_vm11, %v8463_v37, -1e+30 }
 0xf07   :  { %7731 = vmatpush3.msra.mxu1 %v8628_v0 }
 0xf08   :  { %7732 = vmatprep.subr.mxu1 %v8628_v0 }
 0xf09   :  { %7733 = vmatpush3.msra.mxu1 %v8628_v0 }
 0xf0a   :  { %7737 = vmatprep.subr.mxu1 %v8628_v0 }
 0xfc0   :  { %v2194_v47 = vpop.f32.mrf.mxu0 }
 0xfc1   :  { %v2198_v48 = vmul.f32 0.0078125, %v2194_v47  ;;  %v2386_v47 = vsel %vm2385_vm11, %v8462_v18, -1e+30 }
 0xfc2   :  { %v7664_v49 = vpop.f32.mrf.mxu0  ;;  %v2266_v50 = vpop.f32.mrf.mxu1 }
 0xfc3   :  { %v2271_v51 = vmul.f32 %v2198_v48, %v2198_v48  ;;  %v2270_v52 = vmul.f32 0.0078125, %v2266_v50  ;;  %v2274_v59 = vsub.f32 %v2122_v2, %v2198_v48  ;;  %v8594_v2 = vld [vmem:[%s10744_s16 + $0x5] sm:$0x1]  ;;  %v2414_v48 = vrot.slane %v2410_v43, %v9004_v21  ;;  %v8471_v49 = vpop.permute.xlu1 %8470 }
 0xfc4   :  { %v7699_v53 = vpop.f32.mrf.mxu1  ;;  %vm2424_vm12 = vcmp.gt.f32.partialorder %v8594_v2, 0.0  ;;  %v2388_v50 = vmax.f32 %v2373_v1, %v2386_v47  ;;  %v8472_v58 = vunpack.i.l.bf16 %v8471_v49  ;;  %v8502_v1 = vld [vmem:[%s10798_s14 + $0x10] sm:$0xff]  }
 0xfc5   :  { %v2272_v54 = vsub.f32 %v2270_v52, %v2271_v51  ;;  %v2425_v40 = vsel %vm2424_vm12, 1, %v8629_v7  ;;  %v2389_v51 = vmax.f32 %v2374_v42, %v2387_v46  ;;  %v2402_v52 = vsel %vm2400_vm13, %v8468_v44, -1e+30 }
 0xfc6   :  { %v2401_v53 = vsel %vm2400_vm13, %v8467_v45, -1e+30  ;;  %vm2415_vm15 = vcmp.eq.s32.totalorder %v2414_v48, 1  ;;  %vm2591_vm12 = vcmask 261120  }
 0xfc7   :  { %v2273_v55 = vmax.f32 %v2272_v54, 0.0  ;;  %v8595_v54 = vld [vmem:[%s10744_s16 + $0x6] sm:$0x1]  ;;  %v2404_v61 = vmax.f32 %v2389_v51, %v2402_v52  ;;  %v8481_v14 = vpop.permute.xlu1 %8480 }
 0xfc8   :  { %vm2439_vm14 = vcmp.gt.f32.partialorder %v8595_v54, 0.0  ;;  %v8483_v28 = vunpack.i.h.bf16 %v8481_v14  ;;  %v8482_v29 = vunpack.i.l.bf16 %v8481_v14  ;;  %v8504_v51 = vld [vmem:[%s10798_s14] sm:$0xff]  }
 0xfc9   :  { %v2275_v56 = vadd.f32 1e-05, %v2273_v55  ;;  %v2429_v55 = vrot.slane %v2425_v40, %v9004_v21 }
 0xfcb   :  { %8552 = vrsqrt.f32 %v2275_v56  ;;  %v8476_v56 = vpop.permute.xlu0 %8475  ;;  %vm2430_vm7 = vcmp.eq.s32.totalorder %v2429_v55, 1  ;;  %v8491_v43 = vpop.permute.xlu1 %8490 }
 0xfcc   :  { %v8478_v4 = vunpack.i.h.bf16 %v8476_v56  ;;  %v8477_v6 = vunpack.i.l.bf16 %v8476_v56  ;;  %v8492_v40 = vunpack.i.l.bf16 %v8491_v43 }
 0xfce   :  { %v2432_v17 = vsel %vm2430_vm7, %v8478_v4, -1e+30  ;;  %v2431_v19 = vsel %vm2430_vm7, %v8477_v6, -1e+30 }
 0xfcf   :  { %v8486_v26 = vpop.permute.xlu0 %8485 }
 0xfd0   :  { %v8488_v37 = vunpack.i.h.bf16 %v8486_v26  ;;  %v8487_v18 = vunpack.i.l.bf16 %v8486_v26 }
 0xfd8   :  { %v8553_v60 = vpop.eup %8552 }
 0xfd9   :  { %v2277_v63 = vmul.f32 %v8553_v60, %v2274_v59  ;;  %v8499_v59 = vld [vmem:[%s10798_s14 + $0x28] sm:$0xff]   ;;  %v2403_v60 = vmax.f32 %v2388_v50, %v2401_v53 }
 0xfdb   :  { %v2283_v9 = vmul.f32 %v2281_v57, %v2277_v63  ;;  %v8473_v57 = vunpack.i.h.bf16 %v8471_v49  ;;  %v8596_v63 = vld [vmem:[%s10744_s16 + $0x7] sm:$0x1] }
 0xfdc   :  { %vm2454_vm6 = vcmp.gt.f32.partialorder %v8596_v63, 0.0 }
 0xfdd   :  { %v2289_v11 = vadd.f32 %v2287_v3, %v2283_v9  ;;  %v2440_v3 = vsel %vm2439_vm14, 1, %v8629_v7  ;;  %v2417_v8 = vsel %vm2415_vm15, %v8473_v57, -1e+30  ;;  %v2416_v9 = vsel %vm2415_vm15, %v8472_v58, -1e+30 }
 0xfde   :  { %v2455_v10 = vsel %vm2454_vm6, 1, %v8629_v7  ;;  %v2444_v13 = vrot.slane %v2440_v3, %v9004_v21  ;;  %v2418_v15 = vmax.f32 %v2403_v60, %v2416_v9 }
 0xfdf   :  { %v2290_v16 = vmax.f32 %v2289_v11, 0.0  ;;  %v8500_v11 = vld [vmem:[%s10798_s14 + $0x20] sm:$0xff]  }
 0xfe0   :  { %vm2445_vm9 = vcmp.eq.s32.totalorder %v2444_v13, 1  ;;  %v2433_v33 = vmax.f32 %v2418_v15, %v2431_v19 }
 0xfe1   :  { %v2291_v25 = vpack.c.bf16 %v2290_v16, %v2290_v16  ;;  %v2419_v16 = vmax.f32 %v2404_v61, %v2417_v8  ;;  %v2446_v42 = vsel %vm2445_vm9, %v8482_v29, -1e+30 }
 0xfe2   :  { %v2448_v44 = vmax.f32 %v2433_v33, %v2446_v42 }
 0xfe3   :  { %v2301_v35 = vsel %vm625_vm2, %v2291_v25, 0  ;;  %v2459_v25 = vrot.slane %v2455_v10, %v9004_v21 }
 0xfe4   :  { %7701 = vmatpush3.bf16.msra.mxu0 %v2301_v35  ;;  %v2434_v35 = vmax.f32 %v2419_v16, %v2432_v17 }
 0xfe5   :  { %7706 = vmatprep.subr.bf16.mxu0 %v8630_v12  ;;  %vm2460_vm10 = vcmp.eq.s32.totalorder %v2459_v25, 1 }
 0xfe6   :  { %v2462_v46 = vsel %vm2460_vm10, %v8488_v37, -1e+30  ;;  %v2461_v47 = vsel %vm2460_vm10, %v8487_v18, -1e+30 }
 0xfe7   :  { %7703 = vmatmul.mubr.msk.bf16.vlgmr.msra.gmra.mxu0 %vm838_vm5, %v8496_v36  ;;  %v2470_v36 = vsel %vm2469_vm8, 1, %v8629_v7  ;;  %v8493_v7 = vunpack.i.h.bf16 %v8491_v43  ;;  %v2463_v48 = vmax.f32 %v2448_v44, %v2461_v47 }
 0xfe8   :  { %7707 = vmatpush3.bf16.msra.mxu0 %v8497_v41  ;;  %7722 = vmatprep.mubr.msk.bf16.mxu0 %vm8631_vm0, %v8630_v12  ;;  %v2447_v41 = vsel %vm2445_vm9, %v8483_v28, -1e+30  ;;  %v2474_v2 = vrot.slane %v2470_v36, %v9004_v21  ;;  %v2777_v36 = vpop.permute.xlu0 %2776 }
 0xfe9   :  { %7708 = vmatprep.subr.bf16.mxu0 %v8630_v12  ;;  %v2449_v45 = vmax.f32 %v2434_v35, %v2447_v41 }
 0xfea   :  { %vm2475_vm11 = vcmp.eq.s32.totalorder %v2474_v2, 1 }
 0xfeb   :  { %v2464_v49 = vmax.f32 %v2449_v45, %v2462_v46  ;;  %v2477_v21 = vsel %vm2475_vm11, %v8493_v7, -1e+30  ;;  %v2476_v50 = vsel %vm2475_vm11, %v8492_v40, -1e+30 }
 0xfec   :  { %7709 = vmatpush3.bf16.msra.mxu0 %v8498_v34  ;;  %v8503_v34 = vld [vmem:[%s10798_s14 + $0x8] sm:$0xff]   ;;  %v2478_v52 = vmax.f32 %v2463_v48, %v2476_v50  ;;  %v2789_v45 = vpop.permute.xlu0 %2788  ;;  %s10801_s14 = sld [smem:[#allocation10_spill]] }
 0xfed   :  { %7710 = vmatprep.subr.bf16.mxu0 %v8630_v12  ;;  %v2479_v53 = vmax.f32 %v2464_v49, %v2477_v21 }
 0xfef   :  { %v2480_v54 = vpack.c.bf16 %v2479_v53, %v2478_v52  ;;  %v9916_v52 = vld [vmem:[%s10799_s30 + $0x8] sm:$0xff]   ;;  %v9921_v53 = vld [vmem:[%s10799_s30 + $0x18] sm:$0xff]  }
 0xff0   :  { %7711 = vmatpush3.bf16.msra.mxu0 %v8499_v59 }
 0xff1   :  { %7712 = vmatprep.subr.bf16.mxu0 %v8630_v12 }
 0xff4   :  { %7713 = vmatpush3.bf16.msra.mxu0 %v8500_v11 }
 0xff5   :  { %7714 = vmatprep.subr.bf16.mxu0 %v8630_v12 }
 0xff8   :  { %7715 = vmatpush3.bf16.msra.mxu0 %v8501_v32  ;;  %v2782_v32 = vpop.permute.xlu1 %2781 }
 0xff9   :  { %7716 = vmatprep.subr.bf16.mxu0 %v8630_v12 }
 0xffc   :  { %7717 = vmatpush3.bf16.msra.mxu0 %v8502_v1  ;;  %v2794_v2 = vpop.permute.xlu1 %2793 }
 0xffd   :  { %7718 = vmatprep.subr.bf16.mxu0 %v8630_v12 }
0x1000   :  { %7719 = vmatpush3.bf16.msra.mxu0 %v8503_v34  ;;  %v6237_v34 = vld [vmem:[%s10789_s27 + $0x6] sm:$0x3] }
0x1001   :  { %7720 = vmatprep.subr.bf16.mxu0 %v8630_v12 }
0x1004   :  { %7721 = vmatpush3.bf16.msra.mxu0 %v8504_v51 }
0x1005   :  { %7765 = vmatprep.subr.mxu0 %v8630_v12 }
0x1007   :  { %7723 = vmatmul.mubr.bf16.vlgmr.msra.gmra.mxu0 %v2480_v54  ;;  %v9930_v54 = vld [vmem:[%s10799_s30] sm:$0xff]  }
0x1008   :  { %7766 = vmatpush3.msra.mxu0 %v8628_v0  ;;  %7773 = vmatprep.mubr.msk.f32.mxu0 %vm8631_vm0, %v8630_v12 }
0x1009   :  { %7767 = vmatprep.subr.mxu0 %v8630_v12 }
0x100a   :  { %7768 = vmatpush3.msra.mxu0 %v8628_v0 }
0x100b   :  { %7769 = vmatprep.subr.mxu0 %v8630_v12 }
0x100c   :  { %7770 = vmatpush3.msra.mxu0 %v8628_v0 }
0x100d   :  { %7771 = vmatprep.subr.mxu0 %v8630_v12 }
0x100e   :  { %7772 = vmatpush3.msra.mxu0 %v8628_v0 }
0x100f   :  { %7784 = vmatprep.subr.bf16.mxu0 %v8630_v12 }
0x10a7   :  { %v9862_v55 = vpop.f32.mrf.mxu0 }
0x10a9   :  { %v7704_v56 = vpop.f32.mrf.mxu0 }
0x10aa   :  { %v9935_v56 = vld [vmem:[%s10799_s30 + $0x10] sm:$0xff]  }
0x10ab   :  { %v9864_v57 = vpop.f32.mrf.mxu0 }
0x10ad   :  { %v7705_v58 = vpop.f32.mrf.mxu0 }
0x10c7   :  { %v9866_v59 = vpop.f32.mrf.mxu0 }
0x10c8   :  { %7734 = vmatprep.mubr.msk.f32.mxu1 %vm2591_vm12, %v9866_v59  ;;  %v2675_v61 = vmul.f32 %v9866_v59, %v9866_v59 }
0x10c9   :  { %v7724_v60 = vpop.f32.mrf.mxu0 }
0x10cb   :  { %v9872_v63 = vpop.f32.mrf.mxu0 }
0x10cc   :  { %7735 = vmatmul.mubr.msk.f32.vlgmr.msra.gmra.mxu1 %vm2591_vm12, %v9872_v63  ;;  %v2676_v4 = vmul.f32 %v9872_v63, %v9872_v63 }
0x10cd   :  { %7738 = vmatpush3.msra.mxu1 %v8628_v0  ;;  %v7725_v3 = vpop.f32.mrf.mxu0  ;;  %7745 = vmatprep.mubr.msk.f32.mxu1 %vm2591_vm12, %v2675_v61 }
0x10ce   :  { %7739 = vmatprep.subr.mxu1 %v8628_v0 }
0x10cf   :  { %7740 = vmatpush3.msra.mxu1 %v8628_v0 }
0x10d0   :  { %7741 = vmatprep.subr.mxu1 %v8628_v0 }
0x10d1   :  { %7742 = vmatpush3.msra.mxu1 %v8628_v0 }
0x10d2   :  { %7743 = vmatprep.subr.mxu1 %v8628_v0 }
0x10d3   :  { %7744 = vmatpush3.msra.mxu1 %v8628_v0 }
0x10d4   :  { %7746 = vmatmul.mubr.msk.f32.vlgmr.msra.gmra.mxu1 %vm2591_vm12, %v2676_v4  ;;  %7748 = vmatprep.subr.bf16.mxu1 %v8630_v12 }
0x10d5   :  { %7750 = vmatprep.mubr.msk.bf16.mxu1 %vm8631_vm0, %v8630_v12 }
0x118c   :  { %v7736_v6 = vpop.f32.mrf.mxu1 }
0x118d   :  { %v2674_v9 = vmul.f32 0.03125, %v7736_v6 }
0x118e   :  { %v2664_v8 = vpop.f32.mrf.mxu1 }
0x118f   :  { %v2673_v10 = vmul.f32 0.03125, %v2664_v8  ;;  %v2761_v13 = vmul.f32 %v2674_v9, %v2674_v9  ;;  %v2767_v33 = vsub.f32 %v9872_v63, %v2674_v9 }
0x1191   :  { %v2760_v16 = vmul.f32 %v2673_v10, %v2673_v10  ;;  %v2766_v37 = vsub.f32 %v9866_v59, %v2673_v10 }
0x1194   :  { %v7747_v11 = vpop.f32.mrf.mxu1 }
0x1195   :  { %v2759_v14 = vmul.f32 0.03125, %v7747_v11 }
0x1196   :  { %v2749_v15 = vpop.f32.mrf.mxu1 }
0x1197   :  { %v2763_v17 = vsub.f32 %v2759_v14, %v2761_v13  ;;  %v2758_v19 = vmul.f32 0.03125, %v2749_v15 }
0x1199   :  { %v2765_v20 = vmax.f32 %v2763_v17, 0.0  ;;  %v2762_v25 = vsub.f32 %v2758_v19, %v2760_v16  ;;  %v3003_v16 = vpop.permute.xlu0 %3002  ;;  %v3009_v19 = vpop.permute.xlu1 %3008 }
0x119b   :  { %v2769_v26 = vadd.f32 1e-05, %v2765_v20  ;;  %v2764_v28 = vmax.f32 %v2762_v25, 0.0 }
0x119d   :  { %8554 = vrsqrt.f32 %v2769_v26  ;;  %v2768_v29 = vadd.f32 1e-05, %v2764_v28  ;;  %v9944_v26 = vld [vmem:[%s10799_s30 + $0x28] sm:$0xff]   ;;  %v9949_v28 = vld [vmem:[%s10799_s30 + $0x38] sm:$0xff]  }
0x119f   :  { %8556 = vrsqrt.f32 %v2768_v29 }
0x11aa   :  { %v8555_v35 = vpop.eup %8554 }
0x11ab   :  { %v2773_v18 = vmul.f32 %v8555_v35, %v2767_v33  ;;  %v9963_v33 = vld [vmem:[%s10799_s30 + $0x30] sm:$0xff]   ;;  %v9976_v35 = vld [vmem:[%s10799_s30 + $0x48] sm:$0xff]  }
0x11ac   :  { %v8557_v41 = vpop.eup %8556 }
0x11ad   :  { %v2772_v42 = vmul.f32 %v8557_v41, %v2766_v37  ;;  %v2785_v1 = vmul.f32 %v2782_v32, %v2773_v18  ;;  %v9958_v32 = vld [vmem:[%s10799_s30 + $0x20] sm:$0xff]   ;;  %v9997_v18 = vld [vmem:[%s10799_s30 + $0x50] sm:$0xff]   ;;  %v10010_v41 = vld [vmem:[%s10799_s30 + $0x68] sm:$0xff]  }
0x11ae   :  { %v9992_v37 = vld [vmem:[%s10799_s30 + $0x40] sm:$0xff]  }
0x11af   :  { %v2784_v43 = vmul.f32 %v2777_v36, %v2772_v42  ;;  %v2797_v44 = vadd.f32 %v2794_v2, %v2785_v1  ;;  %v9981_v36 = vld [vmem:[%s10799_s30 + $0x58] sm:$0xff]   ;;  %v10026_v1 = vld [vmem:[%s10799_s30 + $0x60] sm:$0xff]   ;;  %v10031_v2 = vld [vmem:[%s10799_s30 + $0x70] sm:$0xff]  }
0x11b0   :  { %v10015_v42 = vld [vmem:[%s10799_s30 + $0x78] sm:$0xff]  }
0x11b1   :  { %v2796_v46 = vadd.f32 %v2789_v45, %v2784_v43  ;;  %v2799_v7 = vmax.f32 %v2797_v44, 0.0  ;;  %v10044_v43 = vld [vmem:[%s10799_s30 + $0x88] sm:$0xff]   ;;  %v10054_v44 = vld [vmem:[%s10799_s30 + $0x80] sm:$0xff]  }
0x11b3   :  { %v2798_v47 = vmax.f32 %v2796_v46, 0.0 }
0x11b5   :  { %v2800_v40 = vpack.c.bf16 %v2799_v7, %v2798_v47 }
0x11b7   :  { %7749 = vmatpush3.bf16.msra.mxu1 %v2800_v40 }
0x11b8   :  { %7754 = vmatprep.subr.mxu1 %v8630_v12 }
0x11ba   :  { %7751 = vmatmul.mubr.msk.bf16.vlgmr.msra.gmra.mxu1 %vm370_vm1, %v6237_v34 }
0x11bb   :  { %7755 = vmatpush3.msra.mxu1 %v8628_v0  ;;  %7762 = vmatprep.mubr.msk.f32.mxu1 %vm8631_vm0, %v8630_v12 }
0x11bc   :  { %7756 = vmatprep.subr.mxu1 %v8630_v12 }
0x11bd   :  { %7757 = vmatpush3.msra.mxu1 %v8628_v0 }
0x11be   :  { %7758 = vmatprep.subr.mxu1 %v8630_v12 }
0x11bf   :  { %7759 = vmatpush3.msra.mxu1 %v8628_v0 }
0x11c0   :  { %7760 = vmatprep.subr.mxu1 %v8630_v12 }
0x11c1   :  { %7761 = vmatpush3.msra.mxu1 %v8628_v0 }
0x11c2   :  { %7776 = vmatprep.subr.bf16.mxu1 %v8630_v12 }
0x127a   :  { %v2838_v48 = vpop.f32.mrf.mxu1 }
0x127b   :  { %v2918_v49 = vmul.f32 %v2838_v48, %v2838_v48  ;;  %7763 = vmatmul.mubr.msk.f32.vlgmr.msra.gmra.mxu1 %vm2591_vm12, %v2838_v48 }
0x127c   :  { %v7752_v21 = vpop.f32.mrf.mxu1  ;;  %7780 = vmatprep.mubr.msk.bf16.mxu1 %vm8631_vm0, %v8630_v12  ;;  %7777 = vmatpush3.bf16.msra.mxu1 %v9916_v52 }
0x127d   :  { %7774 = vmatmul.mubr.msk.f32.vlgmr.msra.gmra.mxu0 %vm2591_vm12, %v2918_v49  ;;  %7778 = vmatprep.subr.bf16.mxu1 %v8630_v12 }
0x127e   :  { %v2841_v50 = vpop.f32.mrf.mxu1  ;;  %7788 = vmatprep.mubr.msk.bf16.mxu0 %vm8631_vm0, %v8630_v12  ;;  %7785 = vmatpush3.bf16.msra.mxu0 %v9921_v53 }
0x127f   :  { %7786 = vmatprep.subr.bf16.mxu0 %v8630_v12 }
0x1280   :  { %v7753_v51 = vpop.f32.mrf.mxu1  ;;  %7779 = vmatpush3.bf16.msra.mxu1 %v9930_v54 }
0x1281   :  { %7792 = vmatprep.subr.bf16.mxu1 %v8630_v12 }
0x1282   :  { %7787 = vmatpush3.bf16.msra.mxu0 %v9935_v56 }
0x1283   :  { %7800 = vmatprep.subr.bf16.mxu0 %v8630_v12 }
0x133b   :  { %v2913_v58 = vpop.f32.mrf.mxu1 }
0x133c   :  { %v2917_v60 = vmul.f32 0.03125, %v2913_v58 }
0x133d   :  { %v7764_v61 = vpop.f32.mrf.mxu1  ;;  %v2988_v3 = vpop.f32.mrf.mxu0 }
0x133e   :  { %v2993_v4 = vmul.f32 %v2917_v60, %v2917_v60  ;;  %v2992_v6 = vmul.f32 0.03125, %v2988_v3  ;;  %v2996_v13 = vsub.f32 %v2838_v48, %v2917_v60 }
0x133f   :  { %v7775_v8 = vpop.f32.mrf.mxu0 }
0x1340   :  { %v2994_v9 = vsub.f32 %v2992_v6, %v2993_v4 }
0x1342   :  { %v2995_v10 = vmax.f32 %v2994_v9, 0.0 }
0x1344   :  { %v2997_v11 = vadd.f32 1e-05, %v2995_v10 }
0x1346   :  { %8558 = vrsqrt.f32 %v2997_v11 }
0x1353   :  { %v8559_v14 = vpop.eup %8558 }
0x1354   :  { %v2999_v15 = vmul.f32 %v8559_v14, %v2996_v13 }
0x1356   :  { %v3005_v17 = vmul.f32 %v3003_v16, %v2999_v15 }
0x1358   :  { %v3011_v20 = vadd.f32 %v3009_v19, %v3005_v17 }
0x135a   :  { %v3012_v25 = vmax.f32 %v3011_v20, 0.0 }
0x135c   :  { %v3013_v29 = vpack.c.bf16 %v3012_v25, %v3012_v25 }
0x135e   :  { %7781 = vmatmul.mubr.msk.bf16.vlgmr.msra.gmra.mxu1 %vm2591_vm12, %v3013_v29  ;;  %7789 = vmatmul.mubr.msk.bf16.vlgmr.msra.gmra.mxu0 %vm2591_vm12, %v3013_v29 }
0x135f   :  { %7793 = vmatpush3.bf16.msra.mxu1 %v9944_v26  ;;  %7801 = vmatpush3.bf16.msra.mxu0 %v9949_v28 }
0x1360   :  { %7794 = vmatprep.subr.bf16.mxu1 %v8630_v12  ;;  %7802 = vmatprep.subr.bf16.mxu0 %v8630_v12 }
0x1361   :  { %7796 = vmatprep.mubr.msk.bf16.mxu1 %vm8631_vm0, %v8630_v12  ;;  %7804 = vmatprep.mubr.msk.bf16.mxu0 %vm8631_vm0, %v8630_v12 }
0x1363   :  { %7795 = vmatpush3.bf16.msra.mxu1 %v9958_v32  ;;  %7803 = vmatpush3.bf16.msra.mxu0 %v9963_v33 }
0x1364   :  { %7808 = vmatprep.subr.bf16.mxu1 %v8630_v12  ;;  %7816 = vmatprep.subr.bf16.mxu0 %v8630_v12 }
0x1366   :  { %7797 = vmatmul.mubr.msk.bf16.vlgmr.msra.gmra.mxu1 %vm2591_vm12, %v3013_v29  ;;  %7805 = vmatmul.mubr.msk.bf16.vlgmr.msra.gmra.mxu0 %vm2591_vm12, %v3013_v29 }
0x1367   :  { %7809 = vmatpush3.bf16.msra.mxu1 %v9976_v35  ;;  %7817 = vmatpush3.bf16.msra.mxu0 %v9981_v36 }
0x1368   :  { %7810 = vmatprep.subr.bf16.mxu1 %v8630_v12  ;;  %7818 = vmatprep.subr.bf16.mxu0 %v8630_v12 }
0x1369   :  { %7812 = vmatprep.mubr.msk.bf16.mxu1 %vm8631_vm0, %v8630_v12  ;;  %7820 = vmatprep.mubr.msk.bf16.mxu0 %vm8631_vm0, %v8630_v12 }
0x136b   :  { %7811 = vmatpush3.bf16.msra.mxu1 %v9992_v37  ;;  %7819 = vmatpush3.bf16.msra.mxu0 %v9997_v18 }
0x136c   :  { %7824 = vmatprep.subr.bf16.mxu1 %v8630_v12  ;;  %7832 = vmatprep.subr.bf16.mxu0 %v8630_v12 }
0x136e   :  { %7813 = vmatmul.mubr.msk.bf16.vlgmr.msra.gmra.mxu1 %vm2591_vm12, %v3013_v29  ;;  %7821 = vmatmul.mubr.msk.bf16.vlgmr.msra.gmra.mxu0 %vm2591_vm12, %v3013_v29 }
0x136f   :  { %7825 = vmatpush3.bf16.msra.mxu1 %v10010_v41  ;;  %7833 = vmatpush3.bf16.msra.mxu0 %v10015_v42 }
0x1370   :  { %7826 = vmatprep.subr.bf16.mxu1 %v8630_v12  ;;  %7834 = vmatprep.subr.bf16.mxu0 %v8630_v12 }
0x1371   :  { %7828 = vmatprep.mubr.msk.bf16.mxu1 %vm8631_vm0, %v8630_v12  ;;  %7836 = vmatprep.mubr.msk.bf16.mxu0 %vm8631_vm0, %v8630_v12 }
0x1373   :  { %7827 = vmatpush3.bf16.msra.mxu1 %v10026_v1  ;;  %7835 = vmatpush3.bf16.msra.mxu0 %v10031_v2 }
0x1374   :  { %7840 = vmatprep.subr.bf16.mxu1 %v8630_v12  ;;  %7848 = vmatprep.subr.bf16.mxu0 %v8630_v12 }
0x1376   :  { %7829 = vmatmul.mubr.msk.bf16.vlgmr.msra.gmra.mxu1 %vm2591_vm12, %v3013_v29  ;;  %7837 = vmatmul.mubr.msk.bf16.vlgmr.msra.gmra.mxu0 %vm2591_vm12, %v3013_v29 }
0x1377   :  { %7841 = vmatpush3.bf16.msra.mxu1 %v10044_v43  ;;  %7844 = vmatprep.mubr.msk.bf16.mxu1 %vm8631_vm0, %v8630_v12 }
0x1378   :  { %7842 = vmatprep.subr.bf16.mxu1 %v8630_v12  ;;  %7854 = vmatprep.mubr.msk.bf16.mxu0 %vm8631_vm0, %v8630_v12 }
0x137b   :  { %7843 = vmatpush3.bf16.msra.mxu1 %v10054_v44 }
0x137c   :  { %7858 = vmatprep.subr.mxu1 %v8630_v12 }
0x137e   :  { %7845 = vmatmul.mubr.msk.bf16.vlgmr.msra.gmra.mxu1 %vm2591_vm12, %v3013_v29 }
0x137f   :  { %7859 = vmatpush3.msra.mxu1 %v8628_v0  ;;  %7866 = vmatprep.mubr.msk.f32.mxu1 %vm8631_vm0, %v8630_v12 }
0x1380   :  { %7860 = vmatprep.subr.mxu1 %v8630_v12 }
0x1381   :  { %7861 = vmatpush3.msra.mxu1 %v8628_v0 }
0x1382   :  { %7862 = vmatprep.subr.mxu1 %v8630_v12 }
0x1383   :  { %7863 = vmatpush3.msra.mxu1 %v8628_v0 }
0x1384   :  { %7864 = vmatprep.subr.mxu1 %v8630_v12 }
0x1385   :  { %7865 = vmatpush3.msra.mxu1 %v8628_v0 }
0x1386   :  { %7869 = vmatprep.subr.mxu1 %v8630_v12 }
0x141e   :  { %v3063_v45 = vpop.f32.mrf.mxu1  ;;  %v3115_v46 = vpop.f32.mrf.mxu0 }
0x1420   :  { %v7782_v47 = vpop.f32.mrf.mxu1  ;;  %v7790_v7 = vpop.f32.mrf.mxu0 }
0x1422   :  { %v3066_v40 = vpop.f32.mrf.mxu1  ;;  %v3118_v34 = vpop.f32.mrf.mxu0 }
0x1424   :  { %v7783_v48 = vpop.f32.mrf.mxu1  ;;  %v7791_v49 = vpop.f32.mrf.mxu0 }
0x1426   :  { %v3167_v21 = vpop.f32.mrf.mxu1  ;;  %v3219_v50 = vpop.f32.mrf.mxu0 }
0x1428   :  { %v7798_v51 = vpop.f32.mrf.mxu1  ;;  %v7806_v58 = vpop.f32.mrf.mxu0 }
0x1429   :  { %v3489_v58 = vrot.slane %v3219_v50, 4 }
0x142a   :  { %v3170_v60 = vpop.f32.mrf.mxu1  ;;  %v3222_v61 = vpop.f32.mrf.mxu0 }
0x142c   :  { %v7799_v3 = vpop.f32.mrf.mxu1  ;;  %v7807_v4 = vpop.f32.mrf.mxu0 }
0x142d   :  { %v3486_v4 = vrot.slane %v3115_v46, 4 }
0x142e   :  { %v3271_v6 = vpop.f32.mrf.mxu1  ;;  %v3323_v8 = vpop.f32.mrf.mxu0 }
0x142f   :  { %v3492_v48 = vrot.slane %v3323_v8, 4  ;;  %v3497_v8 = vsel %vm613_vm3, %v3063_v45, %v3486_v4 }
0x1430   :  { %v7814_v9 = vpop.f32.mrf.mxu1  ;;  %v7822_v10 = vpop.f32.mrf.mxu0 }
0x1431   :  { %v3499_v9 = vsel %vm613_vm3, %v3271_v6, %v3492_v48 }
0x1432   :  { %v3274_v11 = vpop.f32.mrf.mxu1  ;;  %v3326_v13 = vpop.f32.mrf.mxu0 }
0x1433   :  { %v3498_v13 = vsel %vm613_vm3, %v3167_v21, %v3489_v58  ;;  %v3709_v58 = vpop.permute.xlu0 %3708 }
0x1434   :  { %v7815_v14 = vpop.f32.mrf.mxu1  ;;  %v7823_v15 = vpop.f32.mrf.mxu0  ;;  %v3501_v50 = vpack.c.bf16 %v3498_v13, %v3497_v8 }
0x1435   :  { %v6240_v14 = vld [vmem:[%s10734_s6 + $0x6] sm:$0x3] }
0x1436   :  { %v3375_v16 = vpop.f32.mrf.mxu1  ;;  %v3427_v17 = vpop.f32.mrf.mxu0 }
0x1437   :  { %v3495_v40 = vrot.slane %v3427_v17, 4 }
0x1438   :  { %v7830_v19 = vpop.f32.mrf.mxu1  ;;  %v7838_v20 = vpop.f32.mrf.mxu0 }
0x1439   :  { %v3500_v60 = vsel %vm613_vm3, %v3375_v16, %v3495_v40 }
0x143a   :  { %v3378_v25 = vpop.f32.mrf.mxu1  ;;  %v3430_v29 = vpop.f32.mrf.mxu0  ;;  %v3502_v10 = vpack.c.bf16 %v3500_v60, %v3499_v9 }
0x143c   :  { %v7831_v47 = vpop.f32.mrf.mxu1  ;;  %v7839_v7 = vpop.f32.mrf.mxu0 }
0x143e   :  { %v3479_v34 = vpop.f32.mrf.mxu1 }
0x143f   :  { %v3503_v49 = vpack.c.bf16 %v3479_v34, %v3479_v34 }
0x1440   :  { %v7846_v51 = vpop.f32.mrf.mxu1 }
0x1441   :  { %v3508_v61 = vsel %vm625_vm2, %v3503_v49, 0 }
0x1442   :  { %v3482_v3 = vpop.f32.mrf.mxu1  ;;  %7849 = vmatpush3.bf16.msra.mxu0 %v3508_v61  ;;  %v3715_v61 = vpop.permute.xlu1 %3714 }
0x1443   :  { %7850 = vmatprep.subr.bf16.mxu0 %v8630_v12 }
0x1444   :  { %v7847_v11 = vpop.f32.mrf.mxu1 }
0x1445   :  { %v8523_v11 = vld [vmem:[%s10737_s9 + $0x18] sm:$0xff]  }
0x1446   :  { %7851 = vmatpush3.bf16.msra.mxu0 %v3502_v10 }
0x1447   :  { %7852 = vmatprep.subr.bf16.mxu0 %v8630_v12 }
0x144a   :  { %7853 = vmatpush3.bf16.msra.mxu0 %v3501_v50 }
0x144b   :  { %7880 = vmatprep.subr.bf16.mxu0 %v8630_v12 }
0x144d   :  { %7855 = vmatmul.mubr.msk.bf16.vlgmr.msra.gmra.mxu0 %vm621_vm4, %v6240_v14 }
0x144e   :  { %7882 = vmatprep.mubr.msk.bf16.mxu0 %vm8631_vm0, %v8630_v12 }
0x150d   :  { %v3544_v46 = vpop.f32.mrf.mxu0 }
0x150e   :  { %7867 = vmatmul.mubr.msk.f32.vlgmr.msra.gmra.mxu1 %vm2591_vm12, %v3544_v46  ;;  %v3624_v15 = vmul.f32 %v3544_v46, %v3544_v46 }
0x150f   :  { %7870 = vmatpush3.msra.mxu1 %v8628_v0  ;;  %v7856_v45 = vpop.f32.mrf.mxu0  ;;  %7877 = vmatprep.mubr.msk.f32.mxu1 %vm8631_vm0, %v8630_v12 }
0x1510   :  { %7871 = vmatprep.subr.mxu1 %v8630_v12 }
0x1511   :  { %7872 = vmatpush3.msra.mxu1 %v8628_v0  ;;  %v3547_v21 = vpop.f32.mrf.mxu0 }
0x1512   :  { %7873 = vmatprep.subr.mxu1 %v8630_v12 }
0x1513   :  { %7874 = vmatpush3.msra.mxu1 %v8628_v0  ;;  %v7857_v6 = vpop.f32.mrf.mxu0 }
0x1514   :  { %7875 = vmatprep.subr.mxu1 %v8630_v12 }
0x1515   :  { %7876 = vmatpush3.msra.mxu1 %v8628_v0 }
0x1516   :  { %7878 = vmatmul.mubr.msk.f32.vlgmr.msra.gmra.mxu1 %vm2591_vm12, %v3624_v15  ;;  %7886 = vmatprep.subr.mxu1 %v8628_v0 }
0x1517   :  { %7887 = vmatpush3.msra.mxu1 %v8628_v0 }
0x1518   :  { %7888 = vmatprep.subr.mxu1 %v8628_v0 }
0x1519   :  { %7889 = vmatpush3.msra.mxu1 %v8628_v0 }
0x151a   :  { %7890 = vmatprep.subr.mxu1 %v8628_v0 }
0x151b   :  { %7891 = vmatpush3.msra.mxu1 %v8628_v0 }
0x151c   :  { %7892 = vmatprep.subr.mxu1 %v8628_v0 }
0x151d   :  { %7893 = vmatpush3.msra.mxu1 %v8628_v0 }
0x151e   :  { %7908 = vmatprep.subr.bf16.mxu1 %v8630_v12 }
0x15ce   :  { %v3619_v16 = vpop.f32.mrf.mxu1 }
0x15cf   :  { %v3623_v19 = vmul.f32 0.03125, %v3619_v16 }
0x15d0   :  { %v7868_v17 = vpop.f32.mrf.mxu1 }
0x15d1   :  { %v3699_v25 = vmul.f32 %v3623_v19, %v3623_v19  ;;  %v3702_v48 = vsub.f32 %v3544_v46, %v3623_v19 }
0x15d6   :  { %v3694_v20 = vpop.f32.mrf.mxu1 }
0x15d7   :  { %v3698_v29 = vmul.f32 0.03125, %v3694_v20 }
0x15d8   :  { %v7879_v47 = vpop.f32.mrf.mxu1 }
0x15d9   :  { %v3700_v7 = vsub.f32 %v3698_v29, %v3699_v25 }
0x15db   :  { %v3701_v40 = vmax.f32 %v3700_v7, 0.0 }
0x15dd   :  { %v3703_v34 = vadd.f32 1e-05, %v3701_v40 }
0x15df   :  { %8560 = vrsqrt.f32 %v3703_v34 }
0x15ec   :  { %v8561_v49 = vpop.eup %8560 }
0x15ed   :  { %v3705_v51 = vmul.f32 %v8561_v49, %v3702_v48 }
0x15ef   :  { %v3711_v60 = vmul.f32 %v3709_v58, %v3705_v51  ;;  %v3983_v58 = vpop.permute.xlu1 %3982 }
0x15f1   :  { %v3717_v3 = vadd.f32 %v3715_v61, %v3711_v60 }
0x15f3   :  { %v3718_v4 = vmax.f32 %v3717_v3, 0.0  ;;  %v3978_v3 = vpop.permute.xlu0 %3977 }
0x15f5   :  { %v3719_v9 = vpack.c.bf16 %v3718_v4, %v3718_v4 }
0x15f7   :  { %v3729_v10 = vsel %vm625_vm2, %v3719_v9, 0 }
0x15f8   :  { %7881 = vmatpush3.bf16.msra.mxu0 %v3729_v10 }
0x15f9   :  { %7897 = vmatprep.subr.mxu0 %v8628_v0 }
0x15fb   :  { %7883 = vmatmul.mubr.msk.bf16.vlgmr.msra.gmra.mxu0 %vm838_vm5, %v8523_v11 }
0x15fc   :  { %7898 = vmatpush3.msra.mxu0 %v8628_v0 }
0x15fd   :  { %7899 = vmatprep.subr.mxu0 %v8628_v0 }
0x15fe   :  { %7900 = vmatpush3.msra.mxu0 %v8628_v0 }
0x15ff   :  { %7901 = vmatprep.subr.mxu0 %v8628_v0 }
0x1600   :  { %7902 = vmatpush3.msra.mxu0 %v8628_v0 }
0x1601   :  { %7903 = vmatprep.subr.mxu0 %v8628_v0 }
0x1602   :  { %7904 = vmatpush3.msra.mxu0 %v8628_v0 }
0x1603   :  { %7914 = vmatprep.subr.mxu0 %v8630_v12 }
0x16bb   :  { %v3765_v13 = vpop.f32.mrf.mxu0 }
0x16bc   :  { %v10123_v8 = vadd.f32 %v3765_v13, %v9866_v59 }
0x16bd   :  { %v7884_v50 = vpop.f32.mrf.mxu0 }
0x16be   :  { %7894 = vmatprep.mubr.msk.f32.mxu1 %vm2591_vm12, %v10123_v8  ;;  %v3876_v14 = vmul.f32 %v10123_v8, %v10123_v8  ;;  %v3995_v50 = vpop.permute.xlu1 %3994 }
0x16bf   :  { %v3768_v46 = vpop.f32.mrf.mxu0 }
0x16c0   :  { %v10130_v45 = vadd.f32 %v3768_v46, %v9872_v63  ;;  %7905 = vmatprep.mubr.msk.f32.mxu0 %vm2591_vm12, %v3876_v14 }
0x16c1   :  { %v7885_v21 = vpop.f32.mrf.mxu0 }
0x16c2   :  { %v3877_v6 = vmul.f32 %v10130_v45, %v10130_v45  ;;  %7895 = vmatmul.mubr.msk.f32.vlgmr.msra.gmra.mxu1 %vm2591_vm12, %v10130_v45  ;;  %v3990_v21 = vpop.permute.xlu0 %3989 }
0x16c3   :  { %7910 = vmatprep.mubr.msk.bf16.mxu1 %vm8631_vm0, %v8630_v12 }
0x16c4   :  { %7906 = vmatmul.mubr.msk.f32.vlgmr.msra.gmra.mxu0 %vm2591_vm12, %v3877_v6 }
0x16c5   :  { %7915 = vmatpush3.msra.mxu0 %v8628_v0  ;;  %7922 = vmatprep.mubr.msk.f32.mxu0 %vm8631_vm0, %v8630_v12 }
0x16c6   :  { %7916 = vmatprep.subr.mxu0 %v8630_v12 }
0x16c7   :  { %7917 = vmatpush3.msra.mxu0 %v8628_v0 }
0x16c8   :  { %7918 = vmatprep.subr.mxu0 %v8630_v12 }
0x16c9   :  { %7919 = vmatpush3.msra.mxu0 %v8628_v0 }
0x16ca   :  { %7920 = vmatprep.subr.mxu0 %v8630_v12 }
0x16cb   :  { %7921 = vmatpush3.msra.mxu0 %v8628_v0 }
0x16cc   :  { %7936 = vmatprep.subr.bf16.mxu0 %v8630_v12 }
0x1782   :  { %v7896_v59 = vpop.f32.mrf.mxu1 }
0x1783   :  { %v3875_v63 = vmul.f32 0.03125, %v7896_v59 }
0x1784   :  { %v3865_v15 = vpop.f32.mrf.mxu1  ;;  %v7907_v16 = vpop.f32.mrf.mxu0 }
0x1785   :  { %v3962_v17 = vmul.f32 %v3875_v63, %v3875_v63  ;;  %v3874_v19 = vmul.f32 0.03125, %v3865_v15  ;;  %v3960_v20 = vmul.f32 0.03125, %v7907_v16  ;;  %v3968_v60 = vsub.f32 %v10130_v45, %v3875_v63  ;;  %v6288_v63 = vld [vmem:[%s10789_s27 + $0x8] sm:$0x3] }
0x1786   :  { %v3950_v25 = vpop.f32.mrf.mxu0 }
0x1787   :  { %v3961_v29 = vmul.f32 %v3874_v19, %v3874_v19  ;;  %v3964_v47 = vsub.f32 %v3960_v20, %v3962_v17  ;;  %v3959_v7 = vmul.f32 0.03125, %v3950_v25  ;;  %v3967_v4 = vsub.f32 %v10123_v8, %v3874_v19 }
0x1789   :  { %v3966_v40 = vmax.f32 %v3964_v47, 0.0  ;;  %v3963_v34 = vsub.f32 %v3959_v7, %v3961_v29 }
0x178b   :  { %v3970_v48 = vadd.f32 1e-05, %v3966_v40  ;;  %v3965_v49 = vmax.f32 %v3963_v34, 0.0 }
0x178d   :  { %8562 = vrsqrt.f32 %v3970_v48  ;;  %v3969_v51 = vadd.f32 1e-05, %v3965_v49 }
0x178f   :  { %8564 = vrsqrt.f32 %v3969_v51 }
0x179a   :  { %v8563_v61 = vpop.eup %8562 }
0x179b   :  { %v3974_v9 = vmul.f32 %v8563_v61, %v3968_v60 }
0x179c   :  { %v8565_v10 = vpop.eup %8564 }
0x179d   :  { %v3973_v11 = vmul.f32 %v8565_v10, %v3967_v4  ;;  %v3986_v13 = vmul.f32 %v3983_v58, %v3974_v9  ;;  %v4210_v9 = vpop.permute.xlu1 %4209 }
0x179f   :  { %v3985_v14 = vmul.f32 %v3978_v3, %v3973_v11  ;;  %v3998_v46 = vadd.f32 %v3995_v50, %v3986_v13  ;;  %v4204_v3 = vpop.permute.xlu0 %4203 }
0x17a1   :  { %v3997_v6 = vadd.f32 %v3990_v21, %v3985_v14  ;;  %v4000_v15 = vmax.f32 %v3998_v46, 0.0 }
0x17a3   :  { %v3999_v59 = vmax.f32 %v3997_v6, 0.0 }
0x17a5   :  { %v4001_v16 = vpack.c.bf16 %v4000_v15, %v3999_v59 }
0x17a7   :  { %7909 = vmatpush3.bf16.msra.mxu1 %v4001_v16 }
0x17a8   :  { %7925 = vmatprep.subr.mxu1 %v8630_v12 }
0x17aa   :  { %7911 = vmatmul.mubr.msk.bf16.vlgmr.msra.gmra.mxu1 %vm370_vm1, %v6288_v63 }
0x17ab   :  { %7926 = vmatpush3.msra.mxu1 %v8628_v0  ;;  %7933 = vmatprep.mubr.msk.f32.mxu1 %vm8631_vm0, %v8630_v12 }
0x17ac   :  { %7927 = vmatprep.subr.mxu1 %v8630_v12 }
0x17ad   :  { %7928 = vmatpush3.msra.mxu1 %v8628_v0 }
0x17ae   :  { %7929 = vmatprep.subr.mxu1 %v8630_v12 }
0x17af   :  { %7930 = vmatpush3.msra.mxu1 %v8628_v0 }
0x17b0   :  { %7931 = vmatprep.subr.mxu1 %v8630_v12 }
0x17b1   :  { %7932 = vmatpush3.msra.mxu1 %v8628_v0 }
0x17b2   :  { %7944 = vmatprep.subr.bf16.mxu1 %v8630_v12 }
0x186a   :  { %v4039_v17 = vpop.f32.mrf.mxu1 }
0x186b   :  { %v4119_v19 = vmul.f32 %v4039_v17, %v4039_v17  ;;  %7923 = vmatmul.mubr.msk.f32.vlgmr.msra.gmra.mxu0 %vm2591_vm12, %v4039_v17 }
0x186c   :  { %v7912_v20 = vpop.f32.mrf.mxu1  ;;  %7937 = vmatpush3.bf16.msra.mxu0 %v9916_v52  ;;  %7940 = vmatprep.mubr.msk.bf16.mxu0 %vm8631_vm0, %v8630_v12 }
0x186d   :  { %7934 = vmatmul.mubr.msk.f32.vlgmr.msra.gmra.mxu1 %vm2591_vm12, %v4119_v19  ;;  %7938 = vmatprep.subr.bf16.mxu0 %v8630_v12 }
0x186e   :  { %v4042_v25 = vpop.f32.mrf.mxu1  ;;  %7945 = vmatpush3.bf16.msra.mxu1 %v9921_v53  ;;  %7948 = vmatprep.mubr.msk.bf16.mxu1 %vm8631_vm0, %v8630_v12 }
0x186f   :  { %7946 = vmatprep.subr.bf16.mxu1 %v8630_v12 }
0x1870   :  { %v7913_v29 = vpop.f32.mrf.mxu1  ;;  %7939 = vmatpush3.bf16.msra.mxu0 %v9930_v54 }
0x1871   :  { %7952 = vmatprep.subr.bf16.mxu0 %v8630_v12 }
0x1872   :  { %7947 = vmatpush3.bf16.msra.mxu1 %v9935_v56 }
0x1873   :  { %7960 = vmatprep.subr.bf16.mxu1 %v8630_v12 }
0x192b   :  { %v4114_v52 = vpop.f32.mrf.mxu0 }
0x192c   :  { %v4118_v47 = vmul.f32 0.03125, %v4114_v52 }
0x192d   :  { %v4189_v7 = vpop.f32.mrf.mxu1  ;;  %v7924_v40 = vpop.f32.mrf.mxu0 }
0x192e   :  { %v4194_v34 = vmul.f32 %v4118_v47, %v4118_v47  ;;  %v4193_v53 = vmul.f32 0.03125, %v4189_v7  ;;  %v4197_v60 = vsub.f32 %v4039_v17, %v4118_v47 }
0x192f   :  { %v7935_v48 = vpop.f32.mrf.mxu1 }
0x1930   :  { %v4195_v49 = vsub.f32 %v4193_v53, %v4194_v34 }
0x1932   :  { %v4196_v51 = vmax.f32 %v4195_v49, 0.0 }
0x1934   :  { %v4198_v58 = vadd.f32 1e-05, %v4196_v51 }
0x1936   :  { %8566 = vrsqrt.f32 %v4198_v58 }
0x1943   :  { %v8567_v61 = vpop.eup %8566 }
0x1944   :  { %v4200_v54 = vmul.f32 %v8567_v61, %v4197_v60 }
0x1946   :  { %v4206_v4 = vmul.f32 %v4204_v3, %v4200_v54 }
0x1948   :  { %v4212_v56 = vadd.f32 %v4210_v9, %v4206_v4 }
0x194a   :  { %v4213_v10 = vmax.f32 %v4212_v56, 0.0 }
0x194c   :  { %v4214_v11 = vpack.c.bf16 %v4213_v10, %v4213_v10 }
0x194e   :  { %7941 = vmatmul.mubr.msk.bf16.vlgmr.msra.gmra.mxu0 %vm2591_vm12, %v4214_v11  ;;  %7949 = vmatmul.mubr.msk.bf16.vlgmr.msra.gmra.mxu1 %vm2591_vm12, %v4214_v11 }
0x194f   :  { %7953 = vmatpush3.bf16.msra.mxu0 %v9944_v26  ;;  %7961 = vmatpush3.bf16.msra.mxu1 %v9949_v28 }
0x1950   :  { %7954 = vmatprep.subr.bf16.mxu0 %v8630_v12  ;;  %7962 = vmatprep.subr.bf16.mxu1 %v8630_v12 }
0x1951   :  { %7956 = vmatprep.mubr.msk.bf16.mxu0 %vm8631_vm0, %v8630_v12  ;;  %7964 = vmatprep.mubr.msk.bf16.mxu1 %vm8631_vm0, %v8630_v12 }
0x1953   :  { %7955 = vmatpush3.bf16.msra.mxu0 %v9958_v32  ;;  %7963 = vmatpush3.bf16.msra.mxu1 %v9963_v33 }
0x1954   :  { %7968 = vmatprep.subr.bf16.mxu0 %v8630_v12  ;;  %7976 = vmatprep.subr.bf16.mxu1 %v8630_v12 }
0x1956   :  { %7957 = vmatmul.mubr.msk.bf16.vlgmr.msra.gmra.mxu0 %vm2591_vm12, %v4214_v11  ;;  %7965 = vmatmul.mubr.msk.bf16.vlgmr.msra.gmra.mxu1 %vm2591_vm12, %v4214_v11 }
0x1957   :  { %7969 = vmatpush3.bf16.msra.mxu0 %v9976_v35  ;;  %7977 = vmatpush3.bf16.msra.mxu1 %v9981_v36 }
0x1958   :  { %7970 = vmatprep.subr.bf16.mxu0 %v8630_v12  ;;  %7978 = vmatprep.subr.bf16.mxu1 %v8630_v12 }
0x1959   :  { %7972 = vmatprep.mubr.msk.bf16.mxu0 %vm8631_vm0, %v8630_v12  ;;  %7980 = vmatprep.mubr.msk.bf16.mxu1 %vm8631_vm0, %v8630_v12 }
0x195b   :  { %7971 = vmatpush3.bf16.msra.mxu0 %v9992_v37  ;;  %7979 = vmatpush3.bf16.msra.mxu1 %v9997_v18 }
0x195c   :  { %7984 = vmatprep.subr.bf16.mxu0 %v8630_v12  ;;  %7992 = vmatprep.subr.bf16.mxu1 %v8630_v12 }
0x195e   :  { %7973 = vmatmul.mubr.msk.bf16.vlgmr.msra.gmra.mxu0 %vm2591_vm12, %v4214_v11  ;;  %7981 = vmatmul.mubr.msk.bf16.vlgmr.msra.gmra.mxu1 %vm2591_vm12, %v4214_v11 }
0x195f   :  { %7985 = vmatpush3.bf16.msra.mxu0 %v10010_v41  ;;  %7993 = vmatpush3.bf16.msra.mxu1 %v10015_v42 }
0x1960   :  { %7986 = vmatprep.subr.bf16.mxu0 %v8630_v12  ;;  %7994 = vmatprep.subr.bf16.mxu1 %v8630_v12 }
0x1961   :  { %7988 = vmatprep.mubr.msk.bf16.mxu0 %vm8631_vm0, %v8630_v12  ;;  %7996 = vmatprep.mubr.msk.bf16.mxu1 %vm8631_vm0, %v8630_v12 }
0x1963   :  { %7987 = vmatpush3.bf16.msra.mxu0 %v10026_v1  ;;  %7995 = vmatpush3.bf16.msra.mxu1 %v10031_v2 }
0x1964   :  { %8000 = vmatprep.subr.bf16.mxu0 %v8630_v12  ;;  %8008 = vmatprep.subr.bf16.mxu1 %v8630_v12 }
0x1966   :  { %7989 = vmatmul.mubr.msk.bf16.vlgmr.msra.gmra.mxu0 %vm2591_vm12, %v4214_v11  ;;  %7997 = vmatmul.mubr.msk.bf16.vlgmr.msra.gmra.mxu1 %vm2591_vm12, %v4214_v11 }
0x1967   :  { %8001 = vmatpush3.bf16.msra.mxu0 %v10044_v43  ;;  %8004 = vmatprep.mubr.msk.bf16.mxu0 %vm8631_vm0, %v8630_v12 }
0x1968   :  { %8002 = vmatprep.subr.bf16.mxu0 %v8630_v12  ;;  %8014 = vmatprep.mubr.msk.bf16.mxu1 %vm8631_vm0, %v8630_v12 }
0x196b   :  { %8003 = vmatpush3.bf16.msra.mxu0 %v10054_v44 }
0x196c   :  { %8018 = vmatprep.subr.mxu0 %v8630_v12 }
0x196e   :  { %8005 = vmatmul.mubr.msk.bf16.vlgmr.msra.gmra.mxu0 %vm2591_vm12, %v4214_v11 }
0x196f   :  { %8019 = vmatpush3.msra.mxu0 %v8628_v0  ;;  %8026 = vmatprep.mubr.msk.f32.mxu0 %vm8631_vm0, %v8630_v12 }
0x1970   :  { %8020 = vmatprep.subr.mxu0 %v8630_v12 }
0x1971   :  { %8021 = vmatpush3.msra.mxu0 %v8628_v0 }
0x1972   :  { %8022 = vmatprep.subr.mxu0 %v8630_v12 }
0x1973   :  { %8023 = vmatpush3.msra.mxu0 %v8628_v0 }
0x1974   :  { %8024 = vmatprep.subr.mxu0 %v8630_v12 }
0x1975   :  { %8025 = vmatpush3.msra.mxu0 %v8628_v0 }
0x1976   :  { %8040 = vmatprep.subr.bf16.mxu0 %v8630_v12 }
0x1a0e   :  { %v4252_v26 = vpop.f32.mrf.mxu0  ;;  %v4292_v28 = vpop.f32.mrf.mxu1 }
0x1a0f   :  { %v4579_v54 = vrot.slane %v4292_v28, 4 }
0x1a10   :  { %v7942_v32 = vpop.f32.mrf.mxu0  ;;  %v7950_v33 = vpop.f32.mrf.mxu1 }
0x1a11   :  { %v4590_v10 = vsel %vm613_vm3, %v4252_v26, %v4579_v54  ;;  %v6291_v32 = vld [vmem:[%s10734_s6 + $0x8] sm:$0x3] }
0x1a12   :  { %v4255_v35 = vpop.f32.mrf.mxu0  ;;  %v4295_v36 = vpop.f32.mrf.mxu1 }
0x1a14   :  { %v7943_v37 = vpop.f32.mrf.mxu0  ;;  %v7951_v18 = vpop.f32.mrf.mxu1 }
0x1a16   :  { %v4332_v41 = vpop.f32.mrf.mxu0  ;;  %v4372_v42 = vpop.f32.mrf.mxu1 }
0x1a17   :  { %v4582_v51 = vrot.slane %v4372_v42, 4 }
0x1a18   :  { %v7958_v1 = vpop.f32.mrf.mxu0  ;;  %v7966_v2 = vpop.f32.mrf.mxu1 }
0x1a19   :  { %v4591_v56 = vsel %vm613_vm3, %v4332_v41, %v4582_v51 }
0x1a1a   :  { %v4335_v43 = vpop.f32.mrf.mxu0  ;;  %v4375_v44 = vpop.f32.mrf.mxu1  ;;  %v4594_v11 = vpack.c.bf16 %v4591_v56, %v4590_v10 }
0x1a1c   :  { %v7959_v13 = vpop.f32.mrf.mxu0  ;;  %v7967_v50 = vpop.f32.mrf.mxu1 }
0x1a1e   :  { %v4412_v14 = vpop.f32.mrf.mxu0  ;;  %v4452_v46 = vpop.f32.mrf.mxu1 }
0x1a1f   :  { %v4585_v53 = vrot.slane %v4452_v46, 4 }
0x1a20   :  { %v7974_v21 = vpop.f32.mrf.mxu0  ;;  %v7982_v6 = vpop.f32.mrf.mxu1 }
0x1a21   :  { %v4592_v3 = vsel %vm613_vm3, %v4412_v14, %v4585_v53  ;;  %v4802_v6 = vpop.permute.xlu0 %4801 }
0x1a22   :  { %v4415_v59 = vpop.f32.mrf.mxu0  ;;  %v4455_v15 = vpop.f32.mrf.mxu1 }
0x1a23   :  { %v4808_v15 = vpop.permute.xlu1 %4807 }
0x1a24   :  { %v7975_v16 = vpop.f32.mrf.mxu0  ;;  %v7983_v63 = vpop.f32.mrf.mxu1 }
0x1a26   :  { %v4492_v17 = vpop.f32.mrf.mxu0  ;;  %v4532_v19 = vpop.f32.mrf.mxu1 }
0x1a27   :  { %v4588_v40 = vrot.slane %v4532_v19, 4 }
0x1a28   :  { %v7990_v20 = vpop.f32.mrf.mxu0  ;;  %v7998_v25 = vpop.f32.mrf.mxu1 }
0x1a29   :  { %v4593_v58 = vsel %vm613_vm3, %v4492_v17, %v4588_v40  ;;  %v8524_v20 = vld [vmem:[%s10737_s9 + $0x20] sm:$0xff]   ;;  %v8525_v25 = vld [vmem:[%s10800_s19 + $0x8] sm:$0xff]  }
0x1a2a   :  { %v4495_v29 = vpop.f32.mrf.mxu0  ;;  %v4535_v52 = vpop.f32.mrf.mxu1  ;;  %v4595_v4 = vpack.c.bf16 %v4593_v58, %v4592_v3  ;;  %v10362_v58 = vadd.f32 %v9864_v57, %v9463_v5 }
0x1a2b   :  { %v8526_v29 = vld [vmem:[%s10800_s19] sm:$0xff]  }
0x1a2c   :  { %v7991_v47 = vpop.f32.mrf.mxu0  ;;  %v7999_v7 = vpop.f32.mrf.mxu1 }
0x1a2e   :  { %v4572_v34 = vpop.f32.mrf.mxu0 }
0x1a2f   :  { %v4596_v48 = vpack.c.bf16 %v4572_v34, %v4572_v34 }
0x1a30   :  { %v8006_v49 = vpop.f32.mrf.mxu0 }
0x1a31   :  { %v4601_v60 = vsel %vm625_vm2, %v4596_v48, 0 }
0x1a32   :  { %v4575_v61 = vpop.f32.mrf.mxu0  ;;  %8009 = vmatpush3.bf16.msra.mxu1 %v4601_v60 }
0x1a33   :  { %8010 = vmatprep.subr.bf16.mxu1 %v8630_v12 }
0x1a34   :  { %v8007_v9 = vpop.f32.mrf.mxu0 }
0x1a36   :  { %8011 = vmatpush3.bf16.msra.mxu1 %v4595_v4 }
0x1a37   :  { %8012 = vmatprep.subr.bf16.mxu1 %v8630_v12 }
0x1a3a   :  { %8013 = vmatpush3.bf16.msra.mxu1 %v4594_v11 }
0x1a3b   :  { %8029 = vmatprep.subr.mxu1 %v8630_v12 }
0x1a3d   :  { %8015 = vmatmul.mubr.msk.bf16.vlgmr.msra.gmra.mxu1 %vm621_vm4, %v6291_v32 }
0x1a3e   :  { %8030 = vmatpush3.msra.mxu1 %v8628_v0  ;;  %8037 = vmatprep.mubr.msk.f32.mxu1 %vm8631_vm0, %v8630_v12 }
0x1a3f   :  { %8031 = vmatprep.subr.mxu1 %v8630_v12 }
0x1a40   :  { %8032 = vmatpush3.msra.mxu1 %v8628_v0 }
0x1a41   :  { %8033 = vmatprep.subr.mxu1 %v8630_v12 }
0x1a42   :  { %8034 = vmatpush3.msra.mxu1 %v8628_v0 }
0x1a43   :  { %8035 = vmatprep.subr.mxu1 %v8630_v12 }
0x1a44   :  { %8036 = vmatpush3.msra.mxu1 %v8628_v0 }
0x1a45   :  { %8054 = vmatprep.subr.mxu1 %v8628_v0 }
0x1afd   :  { %v4637_v26 = vpop.f32.mrf.mxu1 }
0x1afe   :  { %v4717_v28 = vmul.f32 %v4637_v26, %v4637_v26  ;;  %8027 = vmatmul.mubr.msk.f32.vlgmr.msra.gmra.mxu0 %vm2591_vm12, %v4637_v26 }
0x1aff   :  { %v8016_v33 = vpop.f32.mrf.mxu1  ;;  %8042 = vmatprep.mubr.msk.bf16.mxu0 %vm8631_vm0, %v8630_v12 }
0x1b00   :  { %8038 = vmatmul.mubr.msk.f32.vlgmr.msra.gmra.mxu1 %vm2591_vm12, %v4717_v28 }
0x1b01   :  { %v4640_v35 = vpop.f32.mrf.mxu1  ;;  %8055 = vmatpush3.msra.mxu1 %v8628_v0 }
0x1b02   :  { %8056 = vmatprep.subr.mxu1 %v8628_v0 }
0x1b03   :  { %v8017_v36 = vpop.f32.mrf.mxu1  ;;  %8057 = vmatpush3.msra.mxu1 %v8628_v0 }
0x1b04   :  { %8058 = vmatprep.subr.mxu1 %v8628_v0 }
0x1b05   :  { %8059 = vmatpush3.msra.mxu1 %v8628_v0 }
0x1b06   :  { %8060 = vmatprep.subr.mxu1 %v8628_v0 }
0x1b07   :  { %8061 = vmatpush3.msra.mxu1 %v8628_v0 }
0x1b08   :  { %8062 = vmatprep.subr.mxu1 %v8628_v0 }
0x1b09   :  { %8063 = vmatpush3.msra.mxu1 %v8628_v0 }
0x1b0a   :  { %8064 = vmatprep.subr.mxu1 %v8628_v0 }
0x1b0b   :  { %8065 = vmatpush3.msra.mxu1 %v8628_v0 }
0x1b0c   :  { %8066 = vmatprep.subr.mxu1 %v8628_v0 }
0x1b0d   :  { %8067 = vmatpush3.msra.mxu1 %v8628_v0 }
0x1b0e   :  { %8068 = vmatprep.subr.mxu1 %v8628_v0 }
0x1b0f   :  { %8069 = vmatpush3.msra.mxu1 %v8628_v0 }
0x1b10   :  { %8070 = vmatprep.subr.mxu1 %v8628_v0 }
0x1b11   :  { %8071 = vmatpush3.msra.mxu1 %v8628_v0 }
0x1b12   :  { %8072 = vmatprep.subr.mxu1 %v8628_v0 }
0x1b13   :  { %8073 = vmatpush3.msra.mxu1 %v8628_v0 }
0x1b14   :  { %8074 = vmatprep.subr.mxu1 %v8628_v0 }
0x1b15   :  { %8075 = vmatpush3.msra.mxu1 %v8628_v0 }
0x1b16   :  { %8076 = vmatprep.subr.mxu1 %v8628_v0 }
0x1b17   :  { %8077 = vmatpush3.msra.mxu1 %v8628_v0 }
0x1b18   :  { %8078 = vmatprep.subr.mxu1 %v8628_v0 }
0x1b19   :  { %8079 = vmatpush3.msra.mxu1 %v8628_v0 }
0x1b1a   :  { %8080 = vmatprep.subr.mxu1 %v8628_v0 }
0x1b1b   :  { %8081 = vmatpush3.msra.mxu1 %v8628_v0 }
0x1b1c   :  { %8082 = vmatprep.subr.mxu1 %v8628_v0 }
0x1b1d   :  { %8083 = vmatpush3.msra.mxu1 %v8628_v0 }
0x1b1e   :  { %8084 = vmatprep.subr.mxu1 %v8628_v0 }
0x1b1f   :  { %8085 = vmatpush3.msra.mxu1 %v8628_v0 }
0x1b20   :  { %8124 = vmatprep.subr.bf16.mxu1 %v8630_v12 }
0x1bbe   :  { %v4712_v37 = vpop.f32.mrf.mxu0 }
0x1bbf   :  { %v4716_v18 = vmul.f32 0.03125, %v4712_v37 }
0x1bc0   :  { %v4787_v41 = vpop.f32.mrf.mxu1  ;;  %v8028_v42 = vpop.f32.mrf.mxu0 }
0x1bc1   :  { %v4792_v1 = vmul.f32 %v4716_v18, %v4716_v18  ;;  %v4791_v2 = vmul.f32 0.03125, %v4787_v41  ;;  %v4795_v14 = vsub.f32 %v4637_v26, %v4716_v18  ;;  %v5108_v41 = vpop.permute.xlu1 %5107 }
0x1bc2   :  { %v8039_v43 = vpop.f32.mrf.mxu1 }
0x1bc3   :  { %v4793_v44 = vsub.f32 %v4791_v2, %v4792_v1  ;;  %v5103_v2 = vpop.permute.xlu0 %5102 }
0x1bc5   :  { %v4794_v13 = vmax.f32 %v4793_v44, 0.0 }
0x1bc7   :  { %v4796_v50 = vadd.f32 1e-05, %v4794_v13 }
0x1bc9   :  { %8568 = vrsqrt.f32 %v4796_v50 }
0x1bd6   :  { %v8569_v46 = vpop.eup %8568 }
0x1bd7   :  { %v4798_v21 = vmul.f32 %v8569_v46, %v4795_v14  ;;  %v5120_v46 = vpop.permute.xlu1 %5119 }
0x1bd9   :  { %v4804_v59 = vmul.f32 %v4802_v6, %v4798_v21 }
0x1bdb   :  { %v4810_v16 = vadd.f32 %v4808_v15, %v4804_v59  ;;  %v5115_v59 = vpop.permute.xlu0 %5114 }
0x1bdd   :  { %v4811_v63 = vmax.f32 %v4810_v16, 0.0 }
0x1bdf   :  { %v4812_v17 = vpack.c.bf16 %v4811_v63, %v4811_v63 }
0x1be1   :  { %v4822_v19 = vsel %vm625_vm2, %v4812_v17, 0 }
0x1be2   :  { %8041 = vmatpush3.bf16.msra.mxu0 %v4822_v19  ;;  %v8527_v19 = vld [vmem:[%s10801_s14] sm:$0xff]  }
0x1be3   :  { %8046 = vmatprep.subr.bf16.mxu0 %v8630_v12 }
0x1be5   :  { %8043 = vmatmul.mubr.msk.bf16.vlgmr.msra.gmra.mxu0 %vm838_vm5, %v8524_v20 }
0x1be6   :  { %8050 = vmatprep.mubr.msk.bf16.mxu0 %vm8631_vm0, %v8630_v12  ;;  %8047 = vmatpush3.bf16.msra.mxu0 %v8525_v25 }
0x1be7   :  { %8048 = vmatprep.subr.bf16.mxu0 %v8630_v12 }
0x1bea   :  { %8049 = vmatpush3.bf16.msra.mxu0 %v8526_v29 }
0x1beb   :  { %8089 = vmatprep.subr.mxu0 %v8628_v0 }
0x1ca5   :  { %v4858_v52 = vpop.f32.mrf.mxu0 }
0x1ca6   :  { %v4859_v40 = vadd.f32 %v4858_v52, %v10123_v8  ;;  %v10355_v8 = vadd.f32 %v9862_v55, %v9457_v62 }
0x1ca7   :  { %v8044_v47 = vpop.f32.mrf.mxu0 }
0x1ca9   :  { %v4861_v7 = vpop.f32.mrf.mxu0 }
0x1caa   :  { %v4862_v34 = vadd.f32 %v4861_v7, %v10130_v45 }
0x1cab   :  { %v8045_v53 = vpop.f32.mrf.mxu0 }
0x1cac   :  { %v4865_v48 = vpack.c.bf16 %v4862_v34, %v4859_v40 }
0x1cae   :  { %8051 = vmatmul.mubr.msk.bf16.vlgmr.msra.gmra.mxu0 %vm2591_vm12, %v4865_v48 }
0x1caf   :  { %8090 = vmatpush3.msra.mxu0 %v8628_v0 }
0x1cb0   :  { %8091 = vmatprep.subr.mxu0 %v8628_v0 }
0x1cb1   :  { %8092 = vmatpush3.msra.mxu0 %v8628_v0 }
0x1cb2   :  { %8093 = vmatprep.subr.mxu0 %v8628_v0 }
0x1cb3   :  { %8094 = vmatpush3.msra.mxu0 %v8628_v0 }
0x1cb4   :  { %8095 = vmatprep.subr.mxu0 %v8628_v0 }
0x1cb5   :  { %8096 = vmatpush3.msra.mxu0 %v8628_v0 }
0x1cb6   :  { %8097 = vmatprep.subr.mxu0 %v8628_v0 }
0x1cb7   :  { %8098 = vmatpush3.msra.mxu0 %v8628_v0 }
0x1cb8   :  { %8099 = vmatprep.subr.mxu0 %v8628_v0 }
0x1cb9   :  { %8100 = vmatpush3.msra.mxu0 %v8628_v0 }
0x1cba   :  { %8101 = vmatprep.subr.mxu0 %v8628_v0 }
0x1cbb   :  { %8102 = vmatpush3.msra.mxu0 %v8628_v0 }
0x1cbc   :  { %8103 = vmatprep.subr.mxu0 %v8628_v0 }
0x1cbd   :  { %8104 = vmatpush3.msra.mxu0 %v8628_v0 }
0x1cbe   :  { %8105 = vmatprep.subr.mxu0 %v8628_v0 }
0x1cbf   :  { %8106 = vmatpush3.msra.mxu0 %v8628_v0 }
0x1cc0   :  { %8107 = vmatprep.subr.mxu0 %v8628_v0 }
0x1cc1   :  { %8108 = vmatpush3.msra.mxu0 %v8628_v0 }
0x1cc2   :  { %8109 = vmatprep.subr.mxu0 %v8628_v0 }
0x1cc3   :  { %8110 = vmatpush3.msra.mxu0 %v8628_v0 }
0x1cc4   :  { %8111 = vmatprep.subr.mxu0 %v8628_v0 }
0x1cc5   :  { %8112 = vmatpush3.msra.mxu0 %v8628_v0 }
0x1cc6   :  { %8113 = vmatprep.subr.mxu0 %v8628_v0 }
0x1cc7   :  { %8114 = vmatpush3.msra.mxu0 %v8628_v0 }
0x1cc8   :  { %8115 = vmatprep.subr.mxu0 %v8628_v0 }
0x1cc9   :  { %8116 = vmatpush3.msra.mxu0 %v8628_v0 }
0x1cca   :  { %8117 = vmatprep.subr.mxu0 %v8628_v0 }
0x1ccb   :  { %8118 = vmatpush3.msra.mxu0 %v8628_v0 }
0x1ccc   :  { %8119 = vmatprep.subr.mxu0 %v8628_v0 }
0x1ccd   :  { %8120 = vmatpush3.msra.mxu0 %v8628_v0 }
0x1cce   :  { %8165 = vmatprep.subr.mxu0 %v8628_v0 }
0x1d6e   :  { %v4919_v45 = vpop.f32.mrf.mxu0 }
0x1d6f   :  { %v10358_v49 = vadd.f32 %v4919_v45, %v10355_v8 }
0x1d70   :  { %v8052_v51 = vpop.f32.mrf.mxu0 }
0x1d71   :  { %8086 = vmatprep.mubr.f32.mxu1 %v10358_v49  ;;  %v5007_v60 = vmul.f32 %v10358_v49, %v10358_v49 }
0x1d72   :  { %v4922_v61 = vpop.f32.mrf.mxu0 }
0x1d73   :  { %v10368_v54 = vadd.f32 %v4922_v61, %v10362_v58  ;;  %8121 = vmatprep.mubr.f32.mxu0 %v5007_v60 }
0x1d74   :  { %v8053_v62 = vpop.f32.mrf.mxu0 }
0x1d75   :  { %v5008_v55 = vmul.f32 %v10368_v54, %v10368_v54  ;;  %8087 = vmatmul.mubr.f32.vlgmr.msra.gmra.mxu1 %v10368_v54 }
0x1d76   :  { %8126 = vmatprep.mubr.msk.bf16.mxu1 %vm8631_vm0, %v8630_v12 }
0x1d77   :  { %8122 = vmatmul.mubr.f32.vlgmr.msra.gmra.mxu0 %v5008_v55 }
0x1d78   :  { %8166 = vmatpush3.msra.mxu0 %v8628_v0 }
0x1d79   :  { %8167 = vmatprep.subr.mxu0 %v8628_v0 }
0x1d7a   :  { %8168 = vmatpush3.msra.mxu0 %v8628_v0 }
0x1d7b   :  { %8169 = vmatprep.subr.mxu0 %v8628_v0 }
0x1d7c   :  { %8170 = vmatpush3.msra.mxu0 %v8628_v0 }
0x1d7d   :  { %8171 = vmatprep.subr.mxu0 %v8628_v0 }
0x1d7e   :  { %8172 = vmatpush3.msra.mxu0 %v8628_v0 }
0x1d7f   :  { %8173 = vmatprep.subr.mxu0 %v8628_v0 }
0x1d80   :  { %8174 = vmatpush3.msra.mxu0 %v8628_v0 }
0x1d81   :  { %8175 = vmatprep.subr.mxu0 %v8628_v0 }
0x1d82   :  { %8176 = vmatpush3.msra.mxu0 %v8628_v0 }
0x1d83   :  { %8177 = vmatprep.subr.mxu0 %v8628_v0 }
0x1d84   :  { %8178 = vmatpush3.msra.mxu0 %v8628_v0 }
0x1d85   :  { %8179 = vmatprep.subr.mxu0 %v8628_v0 }
0x1d86   :  { %8180 = vmatpush3.msra.mxu0 %v8628_v0 }
0x1d87   :  { %8181 = vmatprep.subr.mxu0 %v8628_v0 }
0x1d88   :  { %8182 = vmatpush3.msra.mxu0 %v8628_v0 }
0x1d89   :  { %8183 = vmatprep.subr.mxu0 %v8628_v0 }
0x1d8a   :  { %8184 = vmatpush3.msra.mxu0 %v8628_v0 }
0x1d8b   :  { %8185 = vmatprep.subr.mxu0 %v8628_v0 }
0x1d8c   :  { %8186 = vmatpush3.msra.mxu0 %v8628_v0 }
0x1d8d   :  { %8187 = vmatprep.subr.mxu0 %v8628_v0 }
0x1d8e   :  { %8188 = vmatpush3.msra.mxu0 %v8628_v0 }
0x1d8f   :  { %8189 = vmatprep.subr.mxu0 %v8628_v0 }
0x1d90   :  { %8190 = vmatpush3.msra.mxu0 %v8628_v0 }
0x1d91   :  { %8191 = vmatprep.subr.mxu0 %v8628_v0 }
0x1d92   :  { %8192 = vmatpush3.msra.mxu0 %v8628_v0 }
0x1d93   :  { %8193 = vmatprep.subr.mxu0 %v8628_v0 }
0x1d94   :  { %8194 = vmatpush3.msra.mxu0 %v8628_v0 }
0x1d95   :  { %8195 = vmatprep.subr.mxu0 %v8628_v0 }
0x1d96   :  { %8196 = vmatpush3.msra.mxu0 %v8628_v0 }
0x1d97   :  { %8206 = vmatprep.subr.mxu0 %v8628_v0 }
0x1e35   :  { %v8088_v5 = vpop.f32.mrf.mxu1 }
0x1e36   :  { %v5006_v57 = vmul.f32 0.0078125, %v8088_v5 }
0x1e37   :  { %v4996_v3 = vpop.f32.mrf.mxu1  ;;  %v8123_v4 = vpop.f32.mrf.mxu0 }
0x1e38   :  { %v5087_v9 = vmul.f32 %v5006_v57, %v5006_v57  ;;  %v5005_v56 = vmul.f32 0.0078125, %v4996_v3  ;;  %v5085_v10 = vmul.f32 0.0078125, %v8123_v4  ;;  %v5093_v42 = vsub.f32 %v10368_v54, %v5006_v57 }
0x1e39   :  { %v5075_v11 = vpop.f32.mrf.mxu0 }
0x1e3a   :  { %v5086_v32 = vmul.f32 %v5005_v56, %v5005_v56  ;;  %v5089_v26 = vsub.f32 %v5085_v10, %v5087_v9  ;;  %v5084_v28 = vmul.f32 0.0078125, %v5075_v11  ;;  %v5092_v43 = vsub.f32 %v10358_v49, %v5005_v56  ;;  %v5360_v9 = vpop.permute.xlu1 %5359  ;;  %v5355_v11 = vpop.permute.xlu0 %5354 }
0x1e3c   :  { %v5091_v33 = vmax.f32 %v5089_v26, 0.0  ;;  %v5088_v35 = vsub.f32 %v5084_v28, %v5086_v32 }
0x1e3e   :  { %v5095_v36 = vadd.f32 1e-05, %v5091_v33  ;;  %v5090_v37 = vmax.f32 %v5088_v35, 0.0 }
0x1e40   :  { %8570 = vrsqrt.f32 %v5095_v36  ;;  %v5094_v18 = vadd.f32 1e-05, %v5090_v37  ;;  %v5372_v36 = vpop.permute.xlu1 %5371 }
0x1e42   :  { %8572 = vrsqrt.f32 %v5094_v18 }
0x1e4d   :  { %v8571_v1 = vpop.eup %8570 }
0x1e4e   :  { %v5099_v44 = vmul.f32 %v8571_v1, %v5093_v42 }
0x1e4f   :  { %v8573_v13 = vpop.eup %8572 }
0x1e50   :  { %v5098_v50 = vmul.f32 %v8573_v13, %v5092_v43  ;;  %v5111_v14 = vmul.f32 %v5108_v41, %v5099_v44  ;;  %v5367_v41 = vpop.permute.xlu0 %5366  ;;  %v8528_v44 = vld [vmem:[%s10802_s4] sm:$0xff]  }
0x1e52   :  { %v5110_v21 = vmul.f32 %v5103_v2, %v5098_v50  ;;  %v5123_v6 = vadd.f32 %v5120_v46, %v5111_v14 }
0x1e54   :  { %v5122_v15 = vadd.f32 %v5115_v59, %v5110_v21  ;;  %v5125_v63 = vmax.f32 %v5123_v6, 0.0 }
0x1e56   :  { %v5124_v16 = vmax.f32 %v5122_v15, 0.0 }
0x1e58   :  { %v5128_v17 = vpack.c.bf16 %v5125_v63, %v5124_v16 }
0x1e5a   :  { %8125 = vmatpush3.bf16.msra.mxu1 %v5128_v17 }
0x1e5b   :  { %8130 = vmatprep.subr.mxu1 %v8628_v0 }
0x1e5d   :  { %8127 = vmatmul.mubr.msk.bf16.vlgmr.msra.gmra.mxu1 %vm370_vm1, %v8527_v19 }
0x1e5e   :  { %8131 = vmatpush3.msra.mxu1 %v8628_v0 }
0x1e5f   :  { %8132 = vmatprep.subr.mxu1 %v8628_v0 }
0x1e60   :  { %8133 = vmatpush3.msra.mxu1 %v8628_v0 }
0x1e61   :  { %8134 = vmatprep.subr.mxu1 %v8628_v0 }
0x1e62   :  { %8135 = vmatpush3.msra.mxu1 %v8628_v0 }
0x1e63   :  { %8136 = vmatprep.subr.mxu1 %v8628_v0 }
0x1e64   :  { %8137 = vmatpush3.msra.mxu1 %v8628_v0 }
0x1e65   :  { %8138 = vmatprep.subr.mxu1 %v8628_v0 }
0x1e66   :  { %8139 = vmatpush3.msra.mxu1 %v8628_v0 }
0x1e67   :  { %8140 = vmatprep.subr.mxu1 %v8628_v0 }
0x1e68   :  { %8141 = vmatpush3.msra.mxu1 %v8628_v0 }
0x1e69   :  { %8142 = vmatprep.subr.mxu1 %v8628_v0 }
0x1e6a   :  { %8143 = vmatpush3.msra.mxu1 %v8628_v0 }
0x1e6b   :  { %8144 = vmatprep.subr.mxu1 %v8628_v0 }
0x1e6c   :  { %8145 = vmatpush3.msra.mxu1 %v8628_v0 }
0x1e6d   :  { %8146 = vmatprep.subr.mxu1 %v8628_v0 }
0x1e6e   :  { %8147 = vmatpush3.msra.mxu1 %v8628_v0 }
0x1e6f   :  { %8148 = vmatprep.subr.mxu1 %v8628_v0 }
0x1e70   :  { %8149 = vmatpush3.msra.mxu1 %v8628_v0 }
0x1e71   :  { %8150 = vmatprep.subr.mxu1 %v8628_v0 }
0x1e72   :  { %8151 = vmatpush3.msra.mxu1 %v8628_v0 }
0x1e73   :  { %8152 = vmatprep.subr.mxu1 %v8628_v0 }
0x1e74   :  { %8153 = vmatpush3.msra.mxu1 %v8628_v0 }
0x1e75   :  { %8154 = vmatprep.subr.mxu1 %v8628_v0 }
0x1e76   :  { %8155 = vmatpush3.msra.mxu1 %v8628_v0 }
0x1e77   :  { %8156 = vmatprep.subr.mxu1 %v8628_v0 }
0x1e78   :  { %8157 = vmatpush3.msra.mxu1 %v8628_v0 }
0x1e79   :  { %8158 = vmatprep.subr.mxu1 %v8628_v0 }
0x1e7a   :  { %8159 = vmatpush3.msra.mxu1 %v8628_v0 }
0x1e7b   :  { %8160 = vmatprep.subr.mxu1 %v8628_v0 }
0x1e7c   :  { %8161 = vmatpush3.msra.mxu1 %v8628_v0 }
0x1e7d   :  { %8200 = vmatprep.subr.bf16.mxu1 %v8630_v12 }
0x1f1d   :  { %v10446_v20 = vpop.f32.mrf.mxu1 }
0x1f1e   :  { %v5259_v25 = vmul.f32 %v10446_v20, %v10446_v20  ;;  %8162 = vmatprep.mubr.f32.mxu1 %v10446_v20 }
0x1f1f   :  { %v8128_v29 = vpop.f32.mrf.mxu1 }
0x1f20   :  { %8197 = vmatprep.mubr.f32.mxu0 %v5259_v25 }
0x1f21   :  { %v5174_v52 = vpop.f32.mrf.mxu1 }
0x1f22   :  { %v5260_v47 = vmul.f32 %v5174_v52, %v5174_v52  ;;  %8163 = vmatmul.mubr.f32.vlgmr.msra.gmra.mxu1 %v5174_v52 }
0x1f23   :  { %v8129_v7 = vpop.f32.mrf.mxu1  ;;  %8202 = vmatprep.mubr.msk.bf16.mxu1 %vm8631_vm0, %v8630_v12 }
0x1f24   :  { %8198 = vmatmul.mubr.f32.vlgmr.msra.gmra.mxu0 %v5260_v47 }
0x1f25   :  { %8207 = vmatpush3.msra.mxu0 %v8628_v0 }
0x1f26   :  { %8208 = vmatprep.subr.mxu0 %v8628_v0 }
0x1f27   :  { %8209 = vmatpush3.msra.mxu0 %v8628_v0 }
0x1f28   :  { %8210 = vmatprep.subr.mxu0 %v8628_v0 }
0x1f29   :  { %8211 = vmatpush3.msra.mxu0 %v8628_v0 }
0x1f2a   :  { %8212 = vmatprep.subr.mxu0 %v8628_v0 }
0x1f2b   :  { %8213 = vmatpush3.msra.mxu0 %v8628_v0 }
0x1f2c   :  { %8214 = vmatprep.subr.mxu0 %v8628_v0 }
0x1f2d   :  { %8215 = vmatpush3.msra.mxu0 %v8628_v0 }
0x1f2e   :  { %8216 = vmatprep.subr.mxu0 %v8628_v0 }
0x1f2f   :  { %8217 = vmatpush3.msra.mxu0 %v8628_v0 }
0x1f30   :  { %8218 = vmatprep.subr.mxu0 %v8628_v0 }
0x1f31   :  { %8219 = vmatpush3.msra.mxu0 %v8628_v0 }
0x1f32   :  { %8220 = vmatprep.subr.mxu0 %v8628_v0 }
0x1f33   :  { %8221 = vmatpush3.msra.mxu0 %v8628_v0 }
0x1f34   :  { %8222 = vmatprep.subr.mxu0 %v8628_v0 }
0x1f35   :  { %8223 = vmatpush3.msra.mxu0 %v8628_v0 }
0x1f36   :  { %8224 = vmatprep.subr.mxu0 %v8628_v0 }
0x1f37   :  { %8225 = vmatpush3.msra.mxu0 %v8628_v0 }
0x1f38   :  { %8226 = vmatprep.subr.mxu0 %v8628_v0 }
0x1f39   :  { %8227 = vmatpush3.msra.mxu0 %v8628_v0 }
0x1f3a   :  { %8228 = vmatprep.subr.mxu0 %v8628_v0 }
0x1f3b   :  { %8229 = vmatpush3.msra.mxu0 %v8628_v0 }
0x1f3c   :  { %8230 = vmatprep.subr.mxu0 %v8628_v0 }
0x1f3d   :  { %8231 = vmatpush3.msra.mxu0 %v8628_v0 }
0x1f3e   :  { %8232 = vmatprep.subr.mxu0 %v8628_v0 }
0x1f3f   :  { %8233 = vmatpush3.msra.mxu0 %v8628_v0 }
0x1f40   :  { %8234 = vmatprep.subr.mxu0 %v8628_v0 }
0x1f41   :  { %8235 = vmatpush3.msra.mxu0 %v8628_v0 }
0x1f42   :  { %8236 = vmatprep.subr.mxu0 %v8628_v0 }
0x1f43   :  { %8237 = vmatpush3.msra.mxu0 %v8628_v0 }
0x1f44   :  { %8276 = vmatprep.subr.bf16.mxu0 %v8630_v12 }
0x1fe2   :  { %v8164_v40 = vpop.f32.mrf.mxu1 }
0x1fe3   :  { %v5258_v34 = vmul.f32 0.0078125, %v8164_v40 }
0x1fe4   :  { %v5248_v53 = vpop.f32.mrf.mxu1  ;;  %v8199_v48 = vpop.f32.mrf.mxu0 }
0x1fe5   :  { %v5339_v45 = vmul.f32 %v5258_v34, %v5258_v34  ;;  %v5257_v49 = vmul.f32 0.0078125, %v5248_v53  ;;  %v5337_v51 = vmul.f32 0.0078125, %v8199_v48  ;;  %v5345_v56 = vsub.f32 %v5174_v52, %v5258_v34 }
0x1fe6   :  { %v5327_v60 = vpop.f32.mrf.mxu0 }
0x1fe7   :  { %v5338_v61 = vmul.f32 %v5257_v49, %v5257_v49  ;;  %v5341_v54 = vsub.f32 %v5337_v51, %v5339_v45  ;;  %v5336_v62 = vmul.f32 0.0078125, %v5327_v60  ;;  %v5344_v32 = vsub.f32 %v10446_v20, %v5257_v49 }
0x1fe9   :  { %v5343_v55 = vmax.f32 %v5341_v54, 0.0  ;;  %v5340_v5 = vsub.f32 %v5336_v62, %v5338_v61 }
0x1feb   :  { %v5347_v57 = vadd.f32 1e-05, %v5343_v55  ;;  %v5342_v3 = vmax.f32 %v5340_v5, 0.0 }
0x1fed   :  { %8574 = vrsqrt.f32 %v5347_v57  ;;  %v5346_v4 = vadd.f32 1e-05, %v5342_v3  ;;  %v5641_v3 = vpop.permute.xlu1 %5640 }
0x1fef   :  { %8576 = vrsqrt.f32 %v5346_v4 }
0x1ffa   :  { %v8575_v10 = vpop.eup %8574 }
0x1ffb   :  { %v5351_v26 = vmul.f32 %v8575_v10, %v5345_v56  ;;  %v5636_v56 = vpop.permute.xlu0 %5635 }
0x1ffc   :  { %v8577_v28 = vpop.eup %8576 }
0x1ffd   :  { %v5350_v33 = vmul.f32 %v8577_v28, %v5344_v32  ;;  %v5363_v35 = vmul.f32 %v5360_v9, %v5351_v26 }
0x1fff   :  { %v5362_v37 = vmul.f32 %v5355_v11, %v5350_v33  ;;  %v5375_v18 = vadd.f32 %v5372_v36, %v5363_v35  ;;  %v5653_v33 = vpop.permute.xlu1 %5652 }
0x2001   :  { %v5374_v42 = vadd.f32 %v5367_v41, %v5362_v37  ;;  %v5377_v2 = vmax.f32 %v5375_v18, 0.0  ;;  %v5648_v37 = vpop.permute.xlu0 %5647 }
0x2003   :  { %v5376_v1 = vmax.f32 %v5374_v42, 0.0 }
0x2005   :  { %v5380_v43 = vpack.c.bf16 %v5377_v2, %v5376_v1  ;;  %v6328_v2 = vld [vmem:[%s10789_s27 + $0xa] sm:$0x3]  ;;  %s10803_s27 = smov 9  }
0x2007   :  { %8201 = vmatpush3.bf16.msra.mxu1 %v5380_v43 }
0x2008   :  { %8241 = vmatprep.subr.mxu1 %v8628_v0 }
0x200a   :  { %8203 = vmatmul.mubr.msk.bf16.vlgmr.msra.gmra.mxu1 %vm370_vm1, %v8528_v44 }
0x200b   :  { %8242 = vmatpush3.msra.mxu1 %v8628_v0 }
0x200c   :  { %8243 = vmatprep.subr.mxu1 %v8628_v0 }
0x200d   :  { %8244 = vmatpush3.msra.mxu1 %v8628_v0 }
0x200e   :  { %8245 = vmatprep.subr.mxu1 %v8628_v0 }
0x200f   :  { %8246 = vmatpush3.msra.mxu1 %v8628_v0 }
0x2010   :  { %8247 = vmatprep.subr.mxu1 %v8628_v0 }
0x2011   :  { %8248 = vmatpush3.msra.mxu1 %v8628_v0 }
0x2012   :  { %8249 = vmatprep.subr.mxu1 %v8628_v0 }
0x2013   :  { %8250 = vmatpush3.msra.mxu1 %v8628_v0 }
0x2014   :  { %8251 = vmatprep.subr.mxu1 %v8628_v0 }
0x2015   :  { %8252 = vmatpush3.msra.mxu1 %v8628_v0 }
0x2016   :  { %8253 = vmatprep.subr.mxu1 %v8628_v0 }
0x2017   :  { %8254 = vmatpush3.msra.mxu1 %v8628_v0 }
0x2018   :  { %8255 = vmatprep.subr.mxu1 %v8628_v0 }
0x2019   :  { %8256 = vmatpush3.msra.mxu1 %v8628_v0 }
0x201a   :  { %8257 = vmatprep.subr.mxu1 %v8628_v0 }
0x201b   :  { %8258 = vmatpush3.msra.mxu1 %v8628_v0 }
0x201c   :  { %8259 = vmatprep.subr.mxu1 %v8628_v0 }
0x201d   :  { %8260 = vmatpush3.msra.mxu1 %v8628_v0 }
0x201e   :  { %8261 = vmatprep.subr.mxu1 %v8628_v0 }
0x201f   :  { %8262 = vmatpush3.msra.mxu1 %v8628_v0 }
0x2020   :  { %8263 = vmatprep.subr.mxu1 %v8628_v0 }
0x2021   :  { %8264 = vmatpush3.msra.mxu1 %v8628_v0 }
0x2022   :  { %8265 = vmatprep.subr.mxu1 %v8628_v0 }
0x2023   :  { %8266 = vmatpush3.msra.mxu1 %v8628_v0 }
0x2024   :  { %8267 = vmatprep.subr.mxu1 %v8628_v0 }
0x2025   :  { %8268 = vmatpush3.msra.mxu1 %v8628_v0 }
0x2026   :  { %8269 = vmatprep.subr.mxu1 %v8628_v0 }
0x2027   :  { %8270 = vmatpush3.msra.mxu1 %v8628_v0 }
0x2028   :  { %8271 = vmatprep.subr.mxu1 %v8628_v0 }
0x2029   :  { %8272 = vmatpush3.msra.mxu1 %v8628_v0 }
0x202a   :  { %8282 = vmatprep.subr.mxu1 %v8630_v12 }
0x20ca   :  { %v5423_v13 = vpop.f32.mrf.mxu1 }
0x20cb   :  { %v5430_v50 = vmul.f32 0.5, %v5423_v13 }
0x20cc   :  { %v8204_v14 = vpop.f32.mrf.mxu1 }
0x20cd   :  { %8578 = vtanh.f32 %v5430_v50 }
0x20ce   :  { %v5426_v46 = vpop.f32.mrf.mxu1 }
0x20cf   :  { %v5431_v21 = vmul.f32 0.5, %v5426_v46 }
0x20d0   :  { %v8205_v6 = vpop.f32.mrf.mxu1 }
0x20d1   :  { %8580 = vtanh.f32 %v5431_v21 }
0x20da   :  { %v8579_v59 = vpop.eup %8578 }
0x20db   :  { %v5434_v15 = vadd.f32 1.0, %v8579_v59 }
0x20dd   :  { %v5436_v16 = vmul.f32 0.5, %v5434_v15 }
0x20de   :  { %v8581_v63 = vpop.eup %8580 }
0x20df   :  { %v5438_v17 = vadd.f32 1.0, %v5436_v16  ;;  %v5435_v19 = vadd.f32 1.0, %v8581_v63 }
0x20e1   :  { %v5437_v20 = vmul.f32 0.5, %v5435_v19  ;;  %v10524_v25 = vmul.f32 %v5438_v17, %v10355_v8 }
0x20e3   :  { %v5439_v29 = vadd.f32 1.0, %v5437_v20  ;;  %8238 = vmatprep.mubr.f32.mxu0 %v10524_v25  ;;  %v5540_v52 = vmul.f32 %v10524_v25, %v10524_v25 }
0x20e5   :  { %8273 = vmatprep.mubr.f32.mxu1 %v5540_v52  ;;  %v10530_v47 = vmul.f32 %v5439_v29, %v10362_v58 }
0x20e7   :  { %8239 = vmatmul.mubr.f32.vlgmr.msra.gmra.mxu0 %v10530_v47  ;;  %v5541_v7 = vmul.f32 %v10530_v47, %v10530_v47 }
0x20e8   :  { %8278 = vmatprep.mubr.msk.bf16.mxu0 %vm8631_vm0, %v8630_v12 }
0x20e9   :  { %8274 = vmatmul.mubr.f32.vlgmr.msra.gmra.mxu1 %v5541_v7 }
0x20ea   :  { %8283 = vmatpush3.msra.mxu1 %v8628_v0  ;;  %8314 = vmatprep.mubr.msk.f32.mxu1 %vm8631_vm0, %v8630_v12 }
0x20eb   :  { %8284 = vmatprep.subr.mxu1 %v8630_v12 }
0x20ec   :  { %8285 = vmatpush3.msra.mxu1 %v8628_v0 }
0x20ed   :  { %8286 = vmatprep.subr.mxu1 %v8630_v12 }
0x20ee   :  { %8287 = vmatpush3.msra.mxu1 %v8628_v0 }
0x20ef   :  { %8288 = vmatprep.subr.mxu1 %v8630_v12 }
0x20f0   :  { %8289 = vmatpush3.msra.mxu1 %v8628_v0 }
0x20f1   :  { %8290 = vmatprep.subr.mxu1 %v8630_v12 }
0x20f2   :  { %8291 = vmatpush3.msra.mxu1 %v8628_v0 }
0x20f3   :  { %8292 = vmatprep.subr.mxu1 %v8630_v12 }
0x20f4   :  { %8293 = vmatpush3.msra.mxu1 %v8628_v0 }
0x20f5   :  { %8294 = vmatprep.subr.mxu1 %v8630_v12 }
0x20f6   :  { %8295 = vmatpush3.msra.mxu1 %v8628_v0 }
0x20f7   :  { %8296 = vmatprep.subr.mxu1 %v8630_v12 }
0x20f8   :  { %8297 = vmatpush3.msra.mxu1 %v8628_v0 }
0x20f9   :  { %8298 = vmatprep.subr.mxu1 %v8630_v12 }
0x20fa   :  { %8299 = vmatpush3.msra.mxu1 %v8628_v0 }
0x20fb   :  { %8300 = vmatprep.subr.mxu1 %v8630_v12 }
0x20fc   :  { %8301 = vmatpush3.msra.mxu1 %v8628_v0 }
0x20fd   :  { %8302 = vmatprep.subr.mxu1 %v8630_v12 }
0x20fe   :  { %8303 = vmatpush3.msra.mxu1 %v8628_v0 }
0x20ff   :  { %8304 = vmatprep.subr.mxu1 %v8630_v12 }
0x2100   :  { %8305 = vmatpush3.msra.mxu1 %v8628_v0 }
0x2101   :  { %8306 = vmatprep.subr.mxu1 %v8630_v12 }
0x2102   :  { %8307 = vmatpush3.msra.mxu1 %v8628_v0 }
0x2103   :  { %8308 = vmatprep.subr.mxu1 %v8630_v12 }
0x2104   :  { %8309 = vmatpush3.msra.mxu1 %v8628_v0 }
0x2105   :  { %8310 = vmatprep.subr.mxu1 %v8630_v12 }
0x2106   :  { %8311 = vmatpush3.msra.mxu1 %v8628_v0 }
0x2107   :  { %8312 = vmatprep.subr.mxu1 %v8630_v12 }
0x2108   :  { %8313 = vmatpush3.msra.mxu1 %v8628_v0 }
0x2109   :  { %8352 = vmatprep.subr.bf16.mxu1 %v8630_v12 }
0x21a7   :  { %v8240_v8 = vpop.f32.mrf.mxu0 }
0x21a8   :  { %v5539_v58 = vmul.f32 0.0078125, %v8240_v8  ;;  %v5856_v8 = vpop.permute.xlu0 %5855 }
0x21a9   :  { %v5529_v40 = vpop.f32.mrf.mxu0  ;;  %v8275_v34 = vpop.f32.mrf.mxu1 }
0x21aa   :  { %v5620_v53 = vmul.f32 %v5539_v58, %v5539_v58  ;;  %v5538_v48 = vmul.f32 0.0078125, %v5529_v40  ;;  %v5618_v45 = vmul.f32 0.0078125, %v8275_v34  ;;  %v5626_v4 = vsub.f32 %v10530_v47, %v5539_v58  ;;  %v5862_v40 = vpop.permute.xlu1 %5861 }
0x21ab   :  { %v5608_v49 = vpop.f32.mrf.mxu1 }
0x21ac   :  { %v5619_v51 = vmul.f32 %v5538_v48, %v5538_v48  ;;  %v5622_v60 = vsub.f32 %v5618_v45, %v5620_v53  ;;  %v5617_v61 = vmul.f32 0.0078125, %v5608_v49  ;;  %v5625_v10 = vsub.f32 %v10524_v25, %v5538_v48  ;;  %v6333_v48 = vld [vmem:[%s10736_s8 + $0x14] sm:$0xf] }
0x21ad   :  { %v6332_v45 = vld [vmem:[%s10735_s7 + $0x14] sm:$0xf] }
0x21ae   :  { %v5624_v54 = vmax.f32 %v5622_v60, 0.0  ;;  %v5621_v62 = vsub.f32 %v5617_v61, %v5619_v51 }
0x21b0   :  { %v5628_v55 = vadd.f32 1e-05, %v5624_v54  ;;  %v5623_v5 = vmax.f32 %v5621_v62, 0.0 }
0x21b2   :  { %8582 = vrsqrt.f32 %v5628_v55  ;;  %v5627_v57 = vadd.f32 1e-05, %v5623_v5 }
0x21b4   :  { %8584 = vrsqrt.f32 %v5627_v57 }
0x21bf   :  { %v8583_v9 = vpop.eup %8582 }
0x21c0   :  { %v5632_v11 = vmul.f32 %v8583_v9, %v5626_v4 }
0x21c1   :  { %v8585_v32 = vpop.eup %8584 }
0x21c2   :  { %v5631_v26 = vmul.f32 %v8585_v32, %v5625_v10  ;;  %v5644_v28 = vmul.f32 %v5641_v3, %v5632_v11 }
0x21c4   :  { %v5643_v35 = vmul.f32 %v5636_v56, %v5631_v26  ;;  %v5656_v36 = vadd.f32 %v5653_v33, %v5644_v28 }
0x21c6   :  { %v5655_v18 = vadd.f32 %v5648_v37, %v5643_v35  ;;  %v5658_v42 = vmax.f32 %v5656_v36, 0.0 }
0x21c8   :  { %v5657_v41 = vmax.f32 %v5655_v18, 0.0 }
0x21ca   :  { %v5659_v1 = vpack.c.bf16 %v5658_v42, %v5657_v41 }
0x21cc   :  { %8277 = vmatpush3.bf16.msra.mxu0 %v5659_v1 }
0x21cd   :  { %8317 = vmatprep.subr.mxu0 %v8630_v12 }
0x21cf   :  { %8279 = vmatmul.mubr.msk.bf16.vlgmr.msra.gmra.mxu0 %vm370_vm1, %v6328_v2 }
0x21d0   :  { %8318 = vmatpush3.msra.mxu0 %v8628_v0  ;;  %8349 = vmatprep.mubr.msk.f32.mxu0 %vm8631_vm0, %v8630_v12 }
0x21d1   :  { %8319 = vmatprep.subr.mxu0 %v8630_v12 }
0x21d2   :  { %8320 = vmatpush3.msra.mxu0 %v8628_v0 }
0x21d3   :  { %8321 = vmatprep.subr.mxu0 %v8630_v12 }
0x21d4   :  { %8322 = vmatpush3.msra.mxu0 %v8628_v0 }
0x21d5   :  { %8323 = vmatprep.subr.mxu0 %v8630_v12 }
0x21d6   :  { %8324 = vmatpush3.msra.mxu0 %v8628_v0 }
0x21d7   :  { %8325 = vmatprep.subr.mxu0 %v8630_v12 }
0x21d8   :  { %8326 = vmatpush3.msra.mxu0 %v8628_v0 }
0x21d9   :  { %8327 = vmatprep.subr.mxu0 %v8630_v12 }
0x21da   :  { %8328 = vmatpush3.msra.mxu0 %v8628_v0 }
0x21db   :  { %8329 = vmatprep.subr.mxu0 %v8630_v12 }
0x21dc   :  { %8330 = vmatpush3.msra.mxu0 %v8628_v0 }
0x21dd   :  { %8331 = vmatprep.subr.mxu0 %v8630_v12 }
0x21de   :  { %8332 = vmatpush3.msra.mxu0 %v8628_v0 }
0x21df   :  { %8333 = vmatprep.subr.mxu0 %v8630_v12 }
0x21e0   :  { %8334 = vmatpush3.msra.mxu0 %v8628_v0 }
0x21e1   :  { %8335 = vmatprep.subr.mxu0 %v8630_v12 }
0x21e2   :  { %8336 = vmatpush3.msra.mxu0 %v8628_v0 }
0x21e3   :  { %8337 = vmatprep.subr.mxu0 %v8630_v12 }
0x21e4   :  { %8338 = vmatpush3.msra.mxu0 %v8628_v0 }
0x21e5   :  { %8339 = vmatprep.subr.mxu0 %v8630_v12 }
0x21e6   :  { %8340 = vmatpush3.msra.mxu0 %v8628_v0 }
0x21e7   :  { %8341 = vmatprep.subr.mxu0 %v8630_v12 }
0x21e8   :  { %8342 = vmatpush3.msra.mxu0 %v8628_v0 }
0x21e9   :  { %8343 = vmatprep.subr.mxu0 %v8630_v12 }
0x21ea   :  { %8344 = vmatpush3.msra.mxu0 %v8628_v0 }
0x21eb   :  { %8345 = vmatprep.subr.mxu0 %v8630_v12 }
0x21ec   :  { %8346 = vmatpush3.msra.mxu0 %v8628_v0 }
0x21ed   :  { %8347 = vmatprep.subr.mxu0 %v8630_v12 }
0x21ee   :  { %8348 = vmatpush3.msra.mxu0 %v8628_v0 }
0x21ef   :  { %8362 = vmatprep.subr.mxu0 %v8630_v12 }
0x228f   :  { %v5697_v43 = vpop.f32.mrf.mxu0 }
0x2290   :  { %v5774_v44 = vmul.f32 %v5697_v43, %v5697_v43  ;;  %8315 = vmatmul.mubr.f32.vlgmr.msra.gmra.mxu1 %v5697_v43 }
0x2291   :  { %v8280_v13 = vpop.f32.mrf.mxu0  ;;  %8358 = vmatprep.mubr.msk.bf16.mxu1 %vm8631_vm0, %v8630_v12 }
0x2292   :  { %8350 = vmatmul.mubr.f32.vlgmr.msra.gmra.mxu0 %v5774_v44 }
0x2293   :  { %v5700_v50 = vpop.f32.mrf.mxu0  ;;  %8363 = vmatpush3.msra.mxu0 %v8628_v0  ;;  %8394 = vmatprep.mubr.msk.f32.mxu0 %vm8631_vm0, %v8630_v12 }
0x2294   :  { %8364 = vmatprep.subr.mxu0 %v8630_v12 }
0x2295   :  { %v8281_v14 = vpop.f32.mrf.mxu0  ;;  %8365 = vmatpush3.msra.mxu0 %v8628_v0 }
0x2296   :  { %8366 = vmatprep.subr.mxu0 %v8630_v12 }
0x2297   :  { %8367 = vmatpush3.msra.mxu0 %v8628_v0 }
0x2298   :  { %8368 = vmatprep.subr.mxu0 %v8630_v12 }
0x2299   :  { %8369 = vmatpush3.msra.mxu0 %v8628_v0 }
0x229a   :  { %8370 = vmatprep.subr.mxu0 %v8630_v12 }
0x229b   :  { %8371 = vmatpush3.msra.mxu0 %v8628_v0 }
0x229c   :  { %8372 = vmatprep.subr.mxu0 %v8630_v12 }
0x229d   :  { %8373 = vmatpush3.msra.mxu0 %v8628_v0 }
0x229e   :  { %8374 = vmatprep.subr.mxu0 %v8630_v12 }
0x229f   :  { %8375 = vmatpush3.msra.mxu0 %v8628_v0 }
0x22a0   :  { %8376 = vmatprep.subr.mxu0 %v8630_v12 }
0x22a1   :  { %8377 = vmatpush3.msra.mxu0 %v8628_v0 }
0x22a2   :  { %8378 = vmatprep.subr.mxu0 %v8630_v12 }
0x22a3   :  { %8379 = vmatpush3.msra.mxu0 %v8628_v0 }
0x22a4   :  { %8380 = vmatprep.subr.mxu0 %v8630_v12 }
0x22a5   :  { %8381 = vmatpush3.msra.mxu0 %v8628_v0 }
0x22a6   :  { %8382 = vmatprep.subr.mxu0 %v8630_v12 }
0x22a7   :  { %8383 = vmatpush3.msra.mxu0 %v8628_v0 }
0x22a8   :  { %8384 = vmatprep.subr.mxu0 %v8630_v12 }
0x22a9   :  { %8385 = vmatpush3.msra.mxu0 %v8628_v0 }
0x22aa   :  { %8386 = vmatprep.subr.mxu0 %v8630_v12 }
0x22ab   :  { %8387 = vmatpush3.msra.mxu0 %v8628_v0 }
0x22ac   :  { %8388 = vmatprep.subr.mxu0 %v8630_v12 }
0x22ad   :  { %8389 = vmatpush3.msra.mxu0 %v8628_v0 }
0x22ae   :  { %8390 = vmatprep.subr.mxu0 %v8630_v12 }
0x22af   :  { %8391 = vmatpush3.msra.mxu0 %v8628_v0 }
0x22b0   :  { %8392 = vmatprep.subr.mxu0 %v8630_v12 }
0x22b1   :  { %8393 = vmatpush3.msra.mxu0 %v8628_v0 }
0x22b2   :  { %8432 = vmatprep.subr.bf16.mxu0 %v8630_v12 }
0x2350   :  { %v5769_v46 = vpop.f32.mrf.mxu1 }
0x2351   :  { %v5773_v21 = vmul.f32 0.0078125, %v5769_v46 }
0x2352   :  { %v5841_v6 = vpop.f32.mrf.mxu0  ;;  %v8316_v59 = vpop.f32.mrf.mxu1 }
0x2353   :  { %v5846_v15 = vmul.f32 %v5773_v21, %v5773_v21  ;;  %v5845_v16 = vmul.f32 0.0078125, %v5841_v6  ;;  %v5849_v29 = vsub.f32 %v5697_v43, %v5773_v21 }
0x2354   :  { %v8351_v63 = vpop.f32.mrf.mxu0 }
0x2355   :  { %v5847_v17 = vsub.f32 %v5845_v16, %v5846_v15 }
0x2357   :  { %v5848_v19 = vmax.f32 %v5847_v17, 0.0 }
0x2359   :  { %v5850_v20 = vadd.f32 1e-05, %v5848_v19 }
0x235b   :  { %8586 = vrsqrt.f32 %v5850_v20 }
0x2368   :  { %v8587_v52 = vpop.eup %8586 }
0x2369   :  { %v5852_v7 = vmul.f32 %v8587_v52, %v5849_v29 }
0x236b   :  { %v5858_v58 = vmul.f32 %v5856_v8, %v5852_v7  ;;  %v8529_v7 = vld [vmem:[%s10737_s9 + $0x28] sm:$0xff]  }
0x236d   :  { %v5864_v34 = vadd.f32 %v5862_v40, %v5858_v58 }
0x236f   :  { %v5865_v53 = vmax.f32 %v5864_v34, 0.0 }
0x2371   :  { %5878 = vrot.lane.b32.xlu1 %v5865_v53, %s10797_s28  ;;  %5887 = vrot.lane.b32.xlu0 %v5865_v53, %s10790_s22 }
0x2375   :  { %5881 = vrot.lane.b32.xlu1 %v5865_v53, %s10791_s24  ;;  %5884 = vrot.lane.b32.xlu0 %v5865_v53, %s10792_s2  ;;  %s8640_s24 = smov [#allocation2]  }
0x2376   :  { %s6178_s2 = sshll.u32 %s8640_s24, 4  ;;  %s6179_s2 = int_to_ptr.vmem [resolvable:$true] %s6178_s2 }
0x2377   :  { %p8611_p1 = scmp.lt.s32.totalorder %s6179_s2, %s6179_s2 }
0x2379   :  { %5875 = vrot.lane.b32.xlu1 %v5865_v53, %s10793_s25  ;;  %5869 = vrot.lane.b32.xlu0 %v5865_v53, %s10794_s0  ;;  %s8606_s25 = scalar_lea.vmem %s6179_s2, 256 }
0x237a   :  { %p8607_p0 = scmp.ne.s32.totalorder %s6179_s2, %s8606_s25  ;;  %p8612_p2 = scmp.lt.s32.totalorder %s8606_s25, %s8606_s25 }
0x237c   :  { %p8613_p3 = por %p8612_p2, %p8611_p1 }
0x237d   :  { %5872 = vrot.lane.b32.xlu1 %v5865_v53, %s10795_s3  ;;  %5866 = vrot.lane.b32.xlu0 %v5865_v53, %s10803_s27 }
0x237e   :  { %p8614_p4 = pnand %p8613_p3, %p8607_p0 }
0x2381   :  { %6113 = vperm.xlu1 %8453, %v6333_v48   ;;  %6107 = vperm.xlu0 %8452, %v6332_v45  }
0x23e3   :  { %v5879_v49 = vpop.permute.xlu1 %5878  ;;  %v5888_v51 = vpop.permute.xlu0 %5887 }
0x23e4   :  { %v5880_v60 = vmul.f32 %v9009_v22, %v5879_v49  ;;  %v5889_v61 = vmul.f32 %v9014_v23, %v5888_v51 }
0x23e6   :  { %v5908_v54 = vpack.c.bf16 %v5889_v61, %v5889_v61  ;;  %v5897_v5 = vrot.slane %v5880_v60, 4 }
0x23e7   :  { %v5882_v62 = vpop.permute.xlu1 %5881  ;;  %v5885_v55 = vpop.permute.xlu0 %5884 }
0x23e8   :  { %v5913_v57 = vsel %vm625_vm2, %v5908_v54, 0  ;;  %v5886_v3 = vmul.f32 %v9019_v24, %v5885_v55  ;;  %v5883_v4 = vmul.f32 %v9024_v27, %v5882_v62  ;;  %v5904_v22 = vsel %vm613_vm3, %v5865_v53, %v5897_v5 }
0x23e9   :  { %8353 = vmatpush3.bf16.msra.mxu1 %v5913_v57 }
0x23ea   :  { %v5900_v9 = vrot.slane %v5886_v3, 4  ;;  %8354 = vmatprep.subr.bf16.mxu1 %v8630_v12 }
0x23eb   :  { %v5876_v56 = vpop.permute.xlu1 %5875  ;;  %v5870_v10 = vpop.permute.xlu0 %5869 }
0x23ec   :  { %v5905_v23 = vsel %vm613_vm3, %v5883_v4, %v5900_v9  ;;  %v5877_v11 = vmul.f32 %v9031_v30, %v5876_v56  ;;  %v5871_v32 = vmul.f32 %v9036_v31, %v5870_v10  ;;  %v6331_v30 = vld [vmem:[%s10734_s6 + $0xa] sm:$0x3] }
0x23ed   :  { %v5907_v26 = vpack.c.bf16 %v5905_v23, %v5904_v22 }
0x23ee   :  { %v5894_v33 = vrot.slane %v5877_v11, 4  ;;  %v5891_v35 = vrot.slane %v5871_v32, 4 }
0x23ef   :  { %v5873_v28 = vpop.permute.xlu1 %5872  ;;  %8355 = vmatpush3.bf16.msra.mxu1 %v5907_v26  ;;  %v5867_v24 = vpop.permute.xlu0 %5866 }
0x23f0   :  { %v5874_v27 = vmul.f32 %v9043_v38, %v5873_v28  ;;  %v5868_v36 = vmul.f32 %v9048_v39, %v5867_v24  ;;  %8356 = vmatprep.subr.bf16.mxu1 %v8630_v12 }
0x23f2   :  { %v5903_v37 = vsel %vm613_vm3, %v5874_v27, %v5894_v33  ;;  %v5902_v18 = vsel %vm613_vm3, %v5868_v36, %v5891_v35 }
0x23f3   :  { %v5906_v41 = vpack.c.bf16 %v5903_v37, %v5902_v18 }
0x23f5   :  { %8357 = vmatpush3.bf16.msra.mxu1 %v5906_v41 }
0x23f6   :  { %8397 = vmatprep.subr.mxu1 %v8630_v12 }
0x23f8   :  { %8359 = vmatmul.mubr.msk.bf16.vlgmr.msra.gmra.mxu1 %vm621_vm4, %v6331_v30 }
0x23f9   :  { %8398 = vmatpush3.msra.mxu1 %v8628_v0  ;;  %8429 = vmatprep.mubr.msk.f32.mxu1 %vm8631_vm0, %v8630_v12 }
0x23fa   :  { %8399 = vmatprep.subr.mxu1 %v8630_v12 }
0x23fb   :  { %8400 = vmatpush3.msra.mxu1 %v8628_v0 }
0x23fc   :  { %8401 = vmatprep.subr.mxu1 %v8630_v12  ;;  %v6108_v63 = vpop.permute.xlu0 %6107 }
0x23fd   :  { %8402 = vmatpush3.msra.mxu1 %v8628_v0 }
0x23fe   :  { %8403 = vmatprep.subr.mxu1 %v8630_v12 }
0x23ff   :  { %8404 = vmatpush3.msra.mxu1 %v8628_v0 }
0x2400   :  { %8405 = vmatprep.subr.mxu1 %v8630_v12 }
0x2401   :  { %8406 = vmatpush3.msra.mxu1 %v8628_v0 }
0x2402   :  { %8407 = vmatprep.subr.mxu1 %v8630_v12 }
0x2403   :  { %8408 = vmatpush3.msra.mxu1 %v8628_v0 }
0x2404   :  { %8409 = vmatprep.subr.mxu1 %v8630_v12 }
0x2405   :  { %8410 = vmatpush3.msra.mxu1 %v8628_v0 }
0x2406   :  { %8411 = vmatprep.subr.mxu1 %v8630_v12 }
0x2407   :  { %8412 = vmatpush3.msra.mxu1 %v8628_v0 }
0x2408   :  { %8413 = vmatprep.subr.mxu1 %v8630_v12 }
0x2409   :  { %8414 = vmatpush3.msra.mxu1 %v8628_v0 }
0x240a   :  { %8415 = vmatprep.subr.mxu1 %v8630_v12 }
0x240b   :  { %8416 = vmatpush3.msra.mxu1 %v8628_v0 }
0x240c   :  { %8417 = vmatprep.subr.mxu1 %v8630_v12 }
0x240d   :  { %8418 = vmatpush3.msra.mxu1 %v8628_v0 }
0x240e   :  { %8419 = vmatprep.subr.mxu1 %v8630_v12 }
0x240f   :  { %8420 = vmatpush3.msra.mxu1 %v8628_v0 }
0x2410   :  { %8421 = vmatprep.subr.mxu1 %v8630_v12 }
0x2411   :  { %8422 = vmatpush3.msra.mxu1 %v8628_v0 }
0x2412   :  { %8423 = vmatprep.subr.mxu1 %v8630_v12 }
0x2413   :  { %8424 = vmatpush3.msra.mxu1 %v8628_v0 }
0x2414   :  { %8425 = vmatprep.subr.mxu1 %v8630_v12 }
0x2415   :  { %8426 = vmatpush3.msra.mxu1 %v8628_v0 }
0x2416   :  { %8427 = vmatprep.subr.mxu1 %v8630_v12 }
0x2417   :  { %8428 = vmatpush3.msra.mxu1 %v8628_v0 }
0x24b8   :  { %v5949_v31 = vpop.f32.mrf.mxu1 }
0x24b9   :  { %v6026_v38 = vmul.f32 %v5949_v31, %v5949_v31  ;;  %8395 = vmatmul.mubr.f32.vlgmr.msra.gmra.mxu0 %v5949_v31 }
0x24ba   :  { %v8360_v39 = vpop.f32.mrf.mxu1  ;;  %8434 = vmatprep.mubr.msk.bf16.mxu0 %vm8631_vm0, %v8630_v12  ;;  %v6114_v12 = vpop.permute.xlu1 %6113 }
0x24bb   :  { %8430 = vmatmul.mubr.f32.vlgmr.msra.gmra.mxu1 %v6026_v38 }
0x24bc   :  { %v5952_v42 = vpop.f32.mrf.mxu1 }
0x24be   :  { %v8361_v1 = vpop.f32.mrf.mxu1 }
0x2579   :  { %v6021_v2 = vpop.f32.mrf.mxu0 }
0x257a   :  { %v6025_v43 = vmul.f32 0.0078125, %v6021_v2 }
0x257b   :  { %v6093_v44 = vpop.f32.mrf.mxu1  ;;  %v8396_v13 = vpop.f32.mrf.mxu0 }
0x257c   :  { %v6098_v50 = vmul.f32 %v6025_v43, %v6025_v43  ;;  %v6097_v14 = vmul.f32 0.0078125, %v6093_v44  ;;  %v6101_v59 = vsub.f32 %v5949_v31, %v6025_v43 }
0x257d   :  { %v8431_v46 = vpop.f32.mrf.mxu1 }
0x257e   :  { %v6099_v21 = vsub.f32 %v6097_v14, %v6098_v50 }
0x2580   :  { %v6100_v6 = vmax.f32 %v6099_v21, 0.0 }
0x2582   :  { %v6102_v0 = vadd.f32 1e-05, %v6100_v6 }
0x2584   :  { %8588 = vrsqrt.f32 %v6102_v0 }
0x2591   :  { %v8589_v15 = vpop.eup %8588 }
0x2592   :  { %v6104_v16 = vmul.f32 %v8589_v15, %v6101_v59 }
0x2594   :  { %v6110_v17 = vmul.f32 %v6108_v63, %v6104_v16 }
0x2596   :  { %v6116_v19 = vadd.f32 %v6114_v12, %v6110_v17 }
0x2598   :  { %v6117_v20 = vmax.f32 %v6116_v19, 0.0 }
0x259a   :  { %v6118_v29 = vpack.c.bf16 %v6117_v20, %v6117_v20 }
0x259c   :  { %v6128_v52 = vsel %vm625_vm2, %v6118_v29, 0 }
0x259d   :  { %8433 = vmatpush3.bf16.msra.mxu0 %v6128_v52 }
0x25a0   :  { %8435 = vmatmul.mubr.msk.bf16.vlgmr.msra.gmra.mxu0 %vm838_vm5, %v8529_v7 }
0x2660   :  { %v6164_v8 = vpop.f32.mrf.mxu0 }
0x2661   :  { %v6165_v58 = vadd.f32 %v6164_v8, %v10524_v25 }
0x2662   :  { %v8436_v40 = vpop.f32.mrf.mxu0 }
0x2663   :  { %6171 = vst [vmem:[#allocation2] sm:$0xff] %v6165_v58 }
0x2664   :  { %v6167_v34 = vpop.f32.mrf.mxu0 }
0x2665   :  { %v6168_v53 = vadd.f32 %v6167_v34, %v10530_v47 }
0x2666   :  { %v8437_v48 = vpop.f32.mrf.mxu0 }
0x2667   :  { %6172 = vst [vmem:[#allocation2 + $0x8] sm:$0xff] %v6168_v53 }
0x2668   :  { %8617 = shalt.err (!%p8614_p4)
}
0x2669   :  { %s8641_s9 = smov 128   ;;  %s10804_s13 = sld [smem:[#allocation15_spill]] }
0x266f   :  { %6184 = dma.vmem_to_hbm [thread:$0]  %s6179_s2, 256, %s10804_s13, [#allocation3], %s8641_s9, %s8641_s9, %s10794_s0  }
0x2670   :  { %8626 = dma.done.wait [#allocation3], 256  }
0x2671   :  { %8627 = vsyncadd [#allocation3], 4294967040 }
0x2672   :  { %6188 = vsyncpa [#allocation3], 1 }

</bundles_post_ra>
